<compile_context>
chip_gen: v7x
topology: tpu7x:2x2x1
jax: 0.10.0
libtpu: 0.0.40
codegen_flags: <defaults>
</compile_context>

<pallas_src>
import math

import jax
import jax.numpy as jnp
import numpy as np
from jax.experimental import pallas as pl
from jax.experimental.pallas import tpu as pltpu


def _simple_block_kernel(xpad_ref, w1_ref, b1_ref, w2_ref, b2_ref,
                         out_ref, mid_ref):
    """One batch element per grid step; activations kept in (rows, W*C) layout.

    xpad_ref : (1, H+2, W*Cin)    input, 1-row zero halo top/bottom (lane dense)
    w1_ref   : (3, W*Cin, W*Cout) block-banded packed conv1 weights (per ky)
    b1_ref   : (1, W*Cout)        conv1 bias tiled across W
    w2_ref   : (3, W*Cout, W*Cout)
    b2_ref   : (1, W*Cout)
    out_ref  : (1, H, W*Cout)
    mid_ref  : (H+2, W*Cout)      VMEM scratch: conv1 output with row halo
    """
    _, hp2, _ = xpad_ref.shape
    H = hp2 - 2
    WCout = out_ref.shape[2]
    f32 = jnp.float32

    # ---- conv1: one K = W*Cin matmul per kernel row (kx taps + W-padding are
    #      folded into the packed weights). ----
    x_mid = xpad_ref[0, 1:1 + H, :]                    # interior rows == residual
    acc1 = jnp.dot(xpad_ref[0, 0:H, :], w1_ref[0], preferred_element_type=f32)
    acc1 += jnp.dot(x_mid, w1_ref[1], preferred_element_type=f32)
    acc1 += jnp.dot(xpad_ref[0, 2:2 + H, :], w1_ref[2], preferred_element_type=f32)
    acc1 += b1_ref[...]
    acc1 = jnp.where(acc1 >= 0, acc1, 0.2 * acc1)      # LeakyReLU(0.2)

    # Stage conv1 output in a lane-dense, row-padded scratch.  Only the two
    # halo rows are zeroed; the interior is fully overwritten every step.
    mid_ref[0:1, :] = jnp.zeros((1, WCout), f32)
    mid_ref[H + 1:H + 2, :] = jnp.zeros((1, WCout), f32)
    mid_ref[1:1 + H, :] = acc1

    # ---- conv2 + bias + identity residual + LeakyReLU ----
    acc2 = jnp.dot(mid_ref[0:H, :], w2_ref[0], preferred_element_type=f32)
    acc2 += jnp.dot(acc1, w2_ref[1], preferred_element_type=f32)   # center row: reuse value
    acc2 += jnp.dot(mid_ref[2:2 + H, :], w2_ref[2], preferred_element_type=f32)
    acc2 += b2_ref[...]
    acc2 += x_mid                                      # residual (Cin == Cout)
    acc2 = jnp.where(acc2 >= 0, acc2, 0.2 * acc2)      # LeakyReLU(0.2)

    out_ref[...] = acc2[None]                          # unmasked lane-dense store


def _pack_conv_weight(w_oihw, width):
    """PyTorch OIHW 3x3 weight -> (3, width*Cin, width*Cout) block-banded
    matrices (one per kernel row).  The kx taps and the zero padding along W
    are folded into the band structure, so the conv becomes 3 plain matmuls."""
    cout, cin, kh, kw = w_oihw.shape
    w_hwio = jnp.transpose(w_oihw, (2, 3, 1, 0))                  # (3, 3, Cin, Cout)
    w_in = jnp.arange(width)[:, None]
    w_out = jnp.arange(width)[None, :]
    kx = w_in - w_out + 1                                         # (W, W)
    valid = (kx >= 0) & (kx < kw)
    big = w_hwio[:, jnp.clip(kx, 0, kw - 1), :, :]                # (3, W, W, Cin, Cout)
    big = big * valid[None, :, :, None, None].astype(w_oihw.dtype)
    big = jnp.transpose(big, (0, 1, 3, 2, 4))                     # (3, W, Cin, W, Cout)
    return big.reshape(kh, width * cin, width * cout)


def simple_block_forward(x_nchw, w1, b1, w2, b2):
    """x_nchw: (N, Cin, H, W); weights in PyTorch OIHW layout. Returns NCHW."""
    N, Cin, H, W = x_nchw.shape
    Cout = w1.shape[0]
    assert Cin == Cout, "identity residual requires Cin == Cout (downsample=None)"

    # Wrapper-side layout plumbing (plain XLA): pack channels into lanes,
    # add the 1-row halo, and pre-pack weights / biases.
    x_packed = jnp.transpose(x_nchw, (0, 2, 3, 1)).reshape(N, H, W * Cin)
    xpad = jnp.pad(x_packed, ((0, 0), (1, 1), (0, 0)))            # rows-only halo
    bw1 = _pack_conv_weight(w1, W).astype(jnp.float32)            # (3, W*Cin, W*Cout)
    bw2 = _pack_conv_weight(w2, W).astype(jnp.float32)            # (3, W*Cout, W*Cout)
    b1p = jnp.tile(b1, W).reshape(1, W * Cout).astype(jnp.float32)
    b2p = jnp.tile(b2, W).reshape(1, W * Cout).astype(jnp.float32)

    out_packed = pl.pallas_call(
        _simple_block_kernel,
        out_shape=jax.ShapeDtypeStruct((N, H, W * Cout), jnp.float32),
        grid_spec=pltpu.PrefetchScalarGridSpec(
            num_scalar_prefetch=0,
            grid=(N,),
            in_specs=[
                pl.BlockSpec((1, H + 2, W * Cin), lambda n: (n, 0, 0)),
                pl.BlockSpec((3, W * Cin, W * Cout), lambda n: (0, 0, 0)),
                pl.BlockSpec((1, W * Cout), lambda n: (0, 0)),
                pl.BlockSpec((3, W * Cout, W * Cout), lambda n: (0, 0, 0)),
                pl.BlockSpec((1, W * Cout), lambda n: (0, 0)),
            ],
            out_specs=pl.BlockSpec((1, H, W * Cout), lambda n: (n, 0, 0)),
            scratch_shapes=[pltpu.VMEM((H + 2, W * Cout), jnp.float32)],
        ),
        compiler_params=pltpu.CompilerParams(
            dimension_semantics=("parallel",)),
    )(xpad, bw1, b1p, bw2, b2p)

    out = out_packed.reshape(N, H, W, Cout)
    return jnp.transpose(out, (0, 3, 1, 2))                       # back to NCHW


def reference_forward(x, w1, b1, w2, b2):
    """Pure-JAX reference matching the PyTorch forward (NCHW)."""
    dn = ("NCHW", "OIHW", "NCHW")
    out = jax.lax.conv_general_dilated(x, w1, (1, 1), "SAME",
                                       dimension_numbers=dn)
    out = out + b1[None, :, None, None]
    out = jnp.where(out >= 0, out, 0.2 * out)
    out = jax.lax.conv_general_dilated(out, w2, (1, 1), "SAME",
                                       dimension_numbers=dn)
    out = out + b2[None, :, None, None]
    out = out + x
    out = jnp.where(out >= 0, out, 0.2 * out)
    return out


if __name__ == "__main__":
    N, Cin, H, W = 2, 24, 16, 16          # in_channels = 24 as in the module
    Cout = 24                              # == Cin so the identity residual works

    key = jax.random.PRNGKey(0)
    k1, k2, k3, k4, k5 = jax.random.split(key, 5)

    w1 = jax.random.normal(k1, (Cout, Cin, 3, 3), jnp.float32) / math.sqrt(Cin * 9)
    b1 = 0.01 * jax.random.normal(k2, (Cout,), jnp.float32)
    w2 = jax.random.normal(k3, (Cout, Cout, 3, 3), jnp.float32) / math.sqrt(Cout * 9)
    b2 = 0.01 * jax.random.normal(k4, (Cout,), jnp.float32)
    x = jax.random.normal(k5, (N, Cin, H, W), jnp.float32)

    out = jax.block_until_ready(simple_block_forward(x, w1, b1, w2, b2))
    ref = jax.block_until_ready(reference_forward(x, w1, b1, w2, b2))
    np.testing.assert_allclose(np.asarray(out), np.asarray(ref),
                               rtol=1e-3, atol=1e-3)

    print("KERNEL_OK")
</pallas_src>

<mosaic_0001>
module attributes {stable_mosaic.version = 11 : i64} {
  func.func @_simple_block_kernel(%arg0: i32, %arg1: memref<1x18x384xf32, #tpu.memory_space<vmem>>, %arg2: memref<3x384x384xf32, #tpu.memory_space<vmem>>, %arg3: memref<1x384xf32, #tpu.memory_space<vmem>>, %arg4: memref<3x384x384xf32, #tpu.memory_space<vmem>>, %arg5: memref<1x384xf32, #tpu.memory_space<vmem>>, %arg6: memref<1x16x384xf32, #tpu.memory_space<vmem>>, %arg7: memref<18x384xf32, #tpu.memory_space<vmem>>) attributes {dimension_semantics = [#tpu.dimension_semantics<parallel>], iteration_bounds = array<i64: 2>, scalar_prefetch = 0 : i64, scratch_operands = 1 : i64, tpu.core_type = #tpu.core_type<tc>, window_params = [{transform_indices = @transform_0, window_bounds = array<i64: 1, 18, 384>}, {pipeline_mode = #tpu.pipeline_mode<synchronous>, transform_indices = @transform_1, window_bounds = array<i64: 3, 384, 384>}, {pipeline_mode = #tpu.pipeline_mode<synchronous>, transform_indices = @transform_2, window_bounds = array<i64: 1, 384>}, {pipeline_mode = #tpu.pipeline_mode<synchronous>, transform_indices = @transform_3, window_bounds = array<i64: 3, 384, 384>}, {pipeline_mode = #tpu.pipeline_mode<synchronous>, transform_indices = @transform_4, window_bounds = array<i64: 1, 384>}, {transform_indices = @transform_5, window_bounds = array<i64: 1, 16, 384>}]} {
    %c0 = arith.constant 0 : index
    %c1 = arith.constant 1 : index
    %c0_0 = arith.constant 0 : index
    %0 = vector.load %arg1[%c0, %c1, %c0_0] : memref<1x18x384xf32, #tpu.memory_space<vmem>>, vector<1x16x384xf32>
    %1 = vector.shape_cast %0 : vector<1x16x384xf32> to vector<16x384xf32>
    %c0_1 = arith.constant 0 : index
    %c0_2 = arith.constant 0 : index
    %c0_3 = arith.constant 0 : index
    %2 = vector.load %arg1[%c0_1, %c0_2, %c0_3] : memref<1x18x384xf32, #tpu.memory_space<vmem>>, vector<1x16x384xf32>
    %3 = vector.shape_cast %2 : vector<1x16x384xf32> to vector<16x384xf32>
    %c0_4 = arith.constant 0 : index
    %c0_5 = arith.constant 0 : index
    %c0_6 = arith.constant 0 : index
    %4 = vector.load %arg2[%c0_4, %c0_5, %c0_6] : memref<3x384x384xf32, #tpu.memory_space<vmem>>, vector<1x384x384xf32>
    %5 = vector.shape_cast %4 : vector<1x384x384xf32> to vector<384x384xf32>
    %cst = arith.constant dense<0.000000e+00> : vector<16x384xf32>
    %6 = tpu.matmul %3, %5, %cst {dimension_numbers = #tpu.dot_dimension_numbers<[1], [0], [0], [1], [0, 0, 1, 1], [], []>} : vector<16x384xf32>, vector<384x384xf32>, vector<16x384xf32> -> vector<16x384xf32>
    %c1_7 = arith.constant 1 : index
    %c0_8 = arith.constant 0 : index
    %c0_9 = arith.constant 0 : index
    %7 = vector.load %arg2[%c1_7, %c0_8, %c0_9] : memref<3x384x384xf32, #tpu.memory_space<vmem>>, vector<1x384x384xf32>
    %8 = vector.shape_cast %7 : vector<1x384x384xf32> to vector<384x384xf32>
    %cst_10 = arith.constant dense<0.000000e+00> : vector<16x384xf32>
    %9 = tpu.matmul %1, %8, %cst_10 {dimension_numbers = #tpu.dot_dimension_numbers<[1], [0], [0], [1], [0, 0, 1, 1], [], []>} : vector<16x384xf32>, vector<384x384xf32>, vector<16x384xf32> -> vector<16x384xf32>
    %10 = arith.addf %6, %9 : vector<16x384xf32>
    %c0_11 = arith.constant 0 : index
    %c2 = arith.constant 2 : index
    %c0_12 = arith.constant 0 : index
    %11 = vector.load %arg1[%c0_11, %c2, %c0_12] : memref<1x18x384xf32, #tpu.memory_space<vmem>>, vector<1x16x384xf32>
    %12 = vector.shape_cast %11 : vector<1x16x384xf32> to vector<16x384xf32>
    %c2_13 = arith.constant 2 : index
    %c0_14 = arith.constant 0 : index
    %c0_15 = arith.constant 0 : index
    %13 = vector.load %arg2[%c2_13, %c0_14, %c0_15] : memref<3x384x384xf32, #tpu.memory_space<vmem>>, vector<1x384x384xf32>
    %14 = vector.shape_cast %13 : vector<1x384x384xf32> to vector<384x384xf32>
    %cst_16 = arith.constant dense<0.000000e+00> : vector<16x384xf32>
    %15 = tpu.matmul %12, %14, %cst_16 {dimension_numbers = #tpu.dot_dimension_numbers<[1], [0], [0], [1], [0, 0, 1, 1], [], []>} : vector<16x384xf32>, vector<384x384xf32>, vector<16x384xf32> -> vector<16x384xf32>
    %16 = arith.addf %10, %15 : vector<16x384xf32>
    %c0_17 = arith.constant 0 : index
    %c0_18 = arith.constant 0 : index
    %17 = vector.load %arg3[%c0_17, %c0_18] : memref<1x384xf32, #tpu.memory_space<vmem>>, vector<1x384xf32>
    %18 = vector.broadcast %17 : vector<1x384xf32> to vector<16x384xf32>
    %19 = arith.addf %16, %18 : vector<16x384xf32>
    %cst_19 = arith.constant 0.000000e+00 : f32
    %20 = vector.broadcast %cst_19 : f32 to vector<16x384xf32>
    %21 = arith.cmpf oge, %19, %20 : vector<16x384xf32>
    %cst_20 = arith.constant 2.000000e-01 : f32
    %22 = vector.broadcast %cst_20 : f32 to vector<16x384xf32>
    %23 = arith.mulf %22, %19 : vector<16x384xf32>
    %24 = arith.select %21, %19, %23 : vector<16x384xi1>, vector<16x384xf32>
    %cst_21 = arith.constant 0.000000e+00 : f32
    %25 = vector.broadcast %cst_21 : f32 to vector<1x384xf32>
    %c0_22 = arith.constant 0 : index
    %c0_23 = arith.constant 0 : index
    %26 = vector.load %arg7[%c0_22, %c0_23] : memref<18x384xf32, #tpu.memory_space<vmem>>, vector<1x384xf32>
    tpu.vector_store %arg7[%c0_22, %c0_23], %25 {strides = array<i32>} : memref<18x384xf32, #tpu.memory_space<vmem>>, vector<1x384xf32>,
    %cst_24 = arith.constant 0.000000e+00 : f32
    %27 = vector.broadcast %cst_24 : f32 to vector<1x384xf32>
    %c17 = arith.constant 17 : index
    %c0_25 = arith.constant 0 : index
    %28 = vector.load %arg7[%c17, %c0_25] : memref<18x384xf32, #tpu.memory_space<vmem>>, vector<1x384xf32>
    tpu.vector_store %arg7[%c17, %c0_25], %27 {strides = array<i32>} : memref<18x384xf32, #tpu.memory_space<vmem>>, vector<1x384xf32>,
    %c1_26 = arith.constant 1 : index
    %c0_27 = arith.constant 0 : index
    %29 = vector.load %arg7[%c1_26, %c0_27] : memref<18x384xf32, #tpu.memory_space<vmem>>, vector<16x384xf32>
    tpu.vector_store %arg7[%c1_26, %c0_27], %24 {strides = array<i32>} : memref<18x384xf32, #tpu.memory_space<vmem>>, vector<16x384xf32>,
    %c0_28 = arith.constant 0 : index
    %c0_29 = arith.constant 0 : index
    %30 = vector.load %arg7[%c0_28, %c0_29] : memref<18x384xf32, #tpu.memory_space<vmem>>, vector<16x384xf32>
    %c0_30 = arith.constant 0 : index
    %c0_31 = arith.constant 0 : index
    %c0_32 = arith.constant 0 : index
    %31 = vector.load %arg4[%c0_30, %c0_31, %c0_32] : memref<3x384x384xf32, #tpu.memory_space<vmem>>, vector<1x384x384xf32>
    %32 = vector.shape_cast %31 : vector<1x384x384xf32> to vector<384x384xf32>
    %cst_33 = arith.constant dense<0.000000e+00> : vector<16x384xf32>
    %33 = tpu.matmul %30, %32, %cst_33 {dimension_numbers = #tpu.dot_dimension_numbers<[1], [0], [0], [1], [0, 0, 1, 1], [], []>} : vector<16x384xf32>, vector<384x384xf32>, vector<16x384xf32> -> vector<16x384xf32>
    %c1_34 = arith.constant 1 : index
    %c0_35 = arith.constant 0 : index
    %c0_36 = arith.constant 0 : index
    %34 = vector.load %arg4[%c1_34, %c0_35, %c0_36] : memref<3x384x384xf32, #tpu.memory_space<vmem>>, vector<1x384x384xf32>
    %35 = vector.shape_cast %34 : vector<1x384x384xf32> to vector<384x384xf32>
    %cst_37 = arith.constant dense<0.000000e+00> : vector<16x384xf32>
    %36 = tpu.matmul %24, %35, %cst_37 {dimension_numbers = #tpu.dot_dimension_numbers<[1], [0], [0], [1], [0, 0, 1, 1], [], []>} : vector<16x384xf32>, vector<384x384xf32>, vector<16x384xf32> -> vector<16x384xf32>
    %37 = arith.addf %33, %36 : vector<16x384xf32>
    %c2_38 = arith.constant 2 : index
    %c0_39 = arith.constant 0 : index
    %38 = vector.load %arg7[%c2_38, %c0_39] : memref<18x384xf32, #tpu.memory_space<vmem>>, vector<16x384xf32>
    %c2_40 = arith.constant 2 : index
    %c0_41 = arith.constant 0 : index
    %c0_42 = arith.constant 0 : index
    %39 = vector.load %arg4[%c2_40, %c0_41, %c0_42] : memref<3x384x384xf32, #tpu.memory_space<vmem>>, vector<1x384x384xf32>
    %40 = vector.shape_cast %39 : vector<1x384x384xf32> to vector<384x384xf32>
    %cst_43 = arith.constant dense<0.000000e+00> : vector<16x384xf32>
    %41 = tpu.matmul %38, %40, %cst_43 {dimension_numbers = #tpu.dot_dimension_numbers<[1], [0], [0], [1], [0, 0, 1, 1], [], []>} : vector<16x384xf32>, vector<384x384xf32>, vector<16x384xf32> -> vector<16x384xf32>
    %42 = arith.addf %37, %41 : vector<16x384xf32>
    %c0_44 = arith.constant 0 : index
    %c0_45 = arith.constant 0 : index
    %43 = vector.load %arg5[%c0_44, %c0_45] : memref<1x384xf32, #tpu.memory_space<vmem>>, vector<1x384xf32>
    %44 = vector.broadcast %43 : vector<1x384xf32> to vector<16x384xf32>
    %45 = arith.addf %42, %44 : vector<16x384xf32>
    %46 = arith.addf %45, %1 : vector<16x384xf32>
    %cst_46 = arith.constant 0.000000e+00 : f32
    %47 = vector.broadcast %cst_46 : f32 to vector<16x384xf32>
    %48 = arith.cmpf oge, %46, %47 : vector<16x384xf32>
    %cst_47 = arith.constant 2.000000e-01 : f32
    %49 = vector.broadcast %cst_47 : f32 to vector<16x384xf32>
    %50 = arith.mulf %49, %46 : vector<16x384xf32>
    %51 = arith.select %48, %46, %50 : vector<16x384xi1>, vector<16x384xf32>
    %52 = vector.shape_cast %51 : vector<16x384xf32> to vector<1x16x384xf32>
    %c0_48 = arith.constant 0 : index
    %c0_49 = arith.constant 0 : index
    %c0_50 = arith.constant 0 : index
    %53 = vector.load %arg6[%c0_48, %c0_49, %c0_50] : memref<1x16x384xf32, #tpu.memory_space<vmem>>, vector<1x16x384xf32>
    tpu.vector_store %arg6[%c0_48, %c0_49, %c0_50], %52 {strides = array<i32>} : memref<1x16x384xf32, #tpu.memory_space<vmem>>, vector<1x16x384xf32>,
    return
  }
  func.func @transform_0(%arg0: i32) -> (i32, i32, i32) {
    %c0_i32 = arith.constant 0 : i32
    %c0_i32_0 = arith.constant 0 : i32
    %c0_i32_1 = arith.constant 0 : i32
    return %arg0, %c0_i32, %c0_i32_0 : i32, i32, i32
  }
  func.func @transform_1(%arg0: i32) -> (i32, i32, i32) {
    %c0_i32 = arith.constant 0 : i32
    %c0_i32_0 = arith.constant 0 : i32
    %c0_i32_1 = arith.constant 0 : i32
    %c0_i32_2 = arith.constant 0 : i32
    return %c0_i32, %c0_i32_0, %c0_i32_1 : i32, i32, i32
  }
  func.func @transform_2(%arg0: i32) -> (i32, i32) {
    %c0_i32 = arith.constant 0 : i32
    %c0_i32_0 = arith.constant 0 : i32
    %c0_i32_1 = arith.constant 0 : i32
    return %c0_i32, %c0_i32_0 : i32, i32
  }
  func.func @transform_3(%arg0: i32) -> (i32, i32, i32) {
    %c0_i32 = arith.constant 0 : i32
    %c0_i32_0 = arith.constant 0 : i32
    %c0_i32_1 = arith.constant 0 : i32
    %c0_i32_2 = arith.constant 0 : i32
    return %c0_i32, %c0_i32_0, %c0_i32_1 : i32, i32, i32
  }
  func.func @transform_4(%arg0: i32) -> (i32, i32) {
    %c0_i32 = arith.constant 0 : i32
    %c0_i32_0 = arith.constant 0 : i32
    %c0_i32_1 = arith.constant 0 : i32
    return %c0_i32, %c0_i32_0 : i32, i32
  }
  func.func @transform_5(%arg0: i32) -> (i32, i32, i32) {
    %c0_i32 = arith.constant 0 : i32
    %c0_i32_0 = arith.constant 0 : i32
    %c0_i32_1 = arith.constant 0 : i32
    return %arg0, %c0_i32, %c0_i32_0 : i32, i32, i32
  }
}

</mosaic_0001>

<bundles_post_ra>
// kernel: tpu_custom_call.1
= control target key start
LH: loop header
LB: loop body
LE: loop exit
PB: predicated region body
PF: predicated region fallthrough
CT: control target
= control target key end

     0   :  { %s5741_s0 = inlined_call_operand.vmem [shape: f32[2,18,384], index: 0, kind: input, shape index: {}]   ;;  %s5742_s1 = inlined_call_operand.hbm [shape: f32[3,384,384], index: 1, kind: input, shape index: {}]   ;;  %s5743_s2 = inlined_call_operand.hbm [shape: f32[1,384], index: 2, kind: input, shape index: {}]   ;;  %s5744_s3 = inlined_call_operand.hbm [shape: f32[3,384,384], index: 3, kind: input, shape index: {}]   ;;  %s5745_s4 = inlined_call_operand.hbm [shape: f32[1,384], index: 4, kind: input, shape index: {}]   ;;  %s5746_s5 = inlined_call_operand.hbm [shape: f32[2,16,384], index: 5, kind: output, shape index: {}]  }
   0x1   :  { %5750 = sst [smem:[#allocation16_spill]] %s5742_s1 }
   0x2   :  { %10 = vsyncpa [#allocation4], 0 }
   0x3   :  { %11 = vsyncpa [#allocation7], 0 }
   0x4   :  { %12 = vsyncpa [#allocation10], 0 }
   0x5   :  { %13 = vsyncpa [#allocation5], 0 }
   0x6   :  { %15 = vsyncpa [#allocation5 + $0x1], 0  ;;  %s5258_s18 = smov 0   ;;  %s5260_s19 = smov 0  }
   0x7   :  { %s5262_s20 = smov 0   ;;  %s5264_s21 = smov 0  }
   0x8 LB: > { %s5279_s22 = sadd.s32 4294967295, %s5216_s21   ;;  %s3358_s23 = sadd.s32 4294967294, %s5216_s21   ;;  %s5216_s21 = sphi %s5264_s21, %s5769_s21   ;;  %s5212_s20 = sphi %s5262_s20, %s5768_s20   ;;  %s5208_s19 = sphi %s5260_s19, %s5767_s19   ;;  %s5204_s18 = sphi %s5258_s18, %s5766_s18  }
   0x9   : > { %s5283_s24 = sadd.s32 1, %s5216_s21   ;;  %s138_s25 = sadd.s32 1, %s5212_s20 }
   0xa   : > { %s135_s26 = ssub.s32 %s5216_s21, %s5283_s24  ;;  %p148_p0 = scmp.ne.s32.totalorder %s5212_s20, %s5208_s19 }
   0xb   : > { %p136_p1 = scmp.eq.s32.totalorder %s135_s26, 0  ;;  %p149_p2 = scmp.eq.s32.totalorder %s5279_s22, 1 }
   0xc   : > { %p154_p3 = scmp.ne.s32.totalorder %s5208_s19, %s5204_s18  ;;  %p155_p4 = scmp.eq.s32.totalorder %s3358_s23, 1 }
   0xd   : > { %s5294_s27 = scalar_select %p136_p1, %s5212_s20, %s138_s25  }
   0xe   : > { %p5296_p5 = por %p149_p2, %p148_p0  ;;  %p5300_p6 = por %p155_p4, %p154_p3 }
   0xf   : > { %p3359_p7 = scmp.ge.s32.totalorder %s5216_s21, 1  ;;  %p162_p8 = scmp.lt.s32.totalorder %s5216_s21, 3 }
  0x10   : > { %s5751_s28 = scalar_select %p5296_p5, 1, 0 }
  0x11   : > { %s5752_s29 = scalar_select %p5300_p6, 1, 0 }
  0x12   : > { %p5747_p9 = scmp.eq.s32.totalorder %s5279_s22, 0  ;;  %p5307_p10 = pnand %p3359_p7, %p162_p8 }
  0x13   : > { %s5218_s6 = smov [#allocation6]   ;;  %s5219_s8 = smov [#allocation3]  }
  0x14   : > { %s5753_s30 = scalar_select %p5307_p10, 1, 0 }
  0x15   : > { %s188_s7 = sshll.u32 %s5218_s6, 4  ;;  %p4961_p11 = pneg %p5307_p10  ;;  %s189_s7 = int_to_ptr.vmem [resolvable:$true] %s188_s7 }
  0x16   : > { %s174_s9 = sshll.u32 %s5219_s8, 4  ;;  %s5220_s11 = smov [#allocation8]   ;;  %s5319_s9 = int_to_ptr.vmem [resolvable:$true] %s174_s9 }
  0x17   : > { %p5315_p12 = pnand %p5747_p9, %p4961_p11  ;;  %s5321_s12 = sshll.u32 %s5220_s11, 4  ;;  %s199_s12 = int_to_ptr.vmem [resolvable:$true] %s5321_s12 }
  0x18   : > { %s5030_s15 = scalar_lea.hbm %s5743_s2, 48 }
  0x19   : > { %p5031_p13 = scmp.ne.s32.totalorder %s5743_s2, %s5030_s15  ;;  %p5331_p0 = pneg %p5315_p12 }
  0x1a   : > { %p5037_p3 = scmp.lt.u32.totalorder %s5030_s15, %s5743_s2 }
  0x1b   : > { %p5033_p1 = pnand %p5331_p0, %p5031_p13 }
  0x1d   : > { %p5034_p2 = pneg %p5033_p1 }
  0x1f   : > { %p5039_p4 = pnand %p5037_p3, %p5034_p2 }
  0x21   : > { %5042 = shalt.err (!%p5039_p4)
}
  0x22   : > { %s5043_s6 = scalar_lea.vmem %s189_s7, 48  ;;  %s5050_s8 = scalar_lea.vmem %s189_s7, 64 }
  0x23   : > { %p5044_p7 = scmp.ne.s32.totalorder %s189_s7, %s5043_s6  ;;  %p5051_p9 = scmp.lt.s32.totalorder %s189_s7, %s189_s7 }
  0x24   : > { %p5052_p6 = scmp.lt.s32.totalorder %s5050_s8, %s5043_s6 }
  0x25   : > { %p5046_p8 = pnand %p5044_p7, %p5331_p0 }
  0x26   : > { %p5053_p5 = por %p5052_p6, %p5051_p9 }
  0x27   : > { %p5047_p11 = pneg %p5046_p8 }
  0x29   : > { %p5054_p10 = pnand %p5053_p5, %p5047_p11 }
  0x2b   : > { %5057 = shalt.err (!%p5054_p10)
}
  0x2c   : > { %4967 = dma.hbm_to_vmem [thread:$0]  (!%p5315_p12), %s5743_s2, 48, %s189_s7, [#allocation7]  }
  0x2d   : > { %s5756_s1 = sld [smem:[#allocation16_spill]] }
  0x33   : > { %s5058_s16 = scalar_lea.hbm %s5756_s1, 55296 }
  0x34   : > { %p5059_p13 = scmp.ne.s32.totalorder %s5756_s1, %s5058_s16  ;;  %p5065_p5 = scmp.lt.u32.totalorder %s5058_s16, %s5756_s1 }
  0x36   : > { %p5061_p1 = pnand %p5059_p13, %p5331_p0 }
  0x38   : > { %p5062_p6 = pneg %p5061_p1 }
  0x3a   : > { %p5067_p9 = pnand %p5065_p5, %p5062_p6 }
  0x3c   : > { %5070 = shalt.err (!%p5067_p9)
}
  0x3d   : > { %s5071_s7 = scalar_lea.vmem %s5319_s9, 55296  ;;  %p5079_p4 = scmp.lt.s32.totalorder %s5319_s9, %s5319_s9 }
  0x3e   : > { %p5072_p10 = scmp.ne.s32.totalorder %s5319_s9, %s5071_s7  ;;  %p5080_p7 = scmp.lt.s32.totalorder %s5071_s7, %s5071_s7 }
  0x40   : > { %p5074_p2 = pnand %p5072_p10, %p5331_p0  ;;  %p5081_p8 = por %p5080_p7, %p5079_p4 }
  0x42   : > { %p5075_p3 = pneg %p5074_p2 }
  0x44   : > { %p5082_p11 = pnand %p5081_p8, %p5075_p3 }
  0x46   : > { %5085 = shalt.err (!%p5082_p11)
}
  0x47   : > { %s5221_s8 = smov 384   ;;  %s5222_s11 = smov 24  }
  0x48   : > { %4964 = dma.hbm_to_vmem [thread:$0]  (!%p5315_p12), %s5756_s1, 55296, %s5319_s9, [#allocation4], %s5221_s8, %s5221_s8, %s5222_s11  }
  0x49   : > { %s5086_s17 = scalar_lea.hbm %s5744_s3, 55296 }
  0x4a   : > { %p5087_p13 = scmp.ne.s32.totalorder %s5744_s3, %s5086_s17  ;;  %p5093_p5 = scmp.lt.u32.totalorder %s5086_s17, %s5744_s3 }
  0x4c   : > { %p5089_p1 = pnand %p5087_p13, %p5331_p0 }
  0x4e   : > { %p5090_p6 = pneg %p5089_p1 }
  0x50   : > { %p5095_p9 = pnand %p5093_p5, %p5090_p6 }
  0x52   : > { %5098 = shalt.err (!%p5095_p9)
}
  0x53   : > { %s5099_s13 = scalar_lea.vmem %s199_s12, 55296  ;;  %p5107_p4 = scmp.lt.s32.totalorder %s199_s12, %s199_s12 }
  0x54   : > { %p5100_p10 = scmp.ne.s32.totalorder %s199_s12, %s5099_s13  ;;  %p5108_p7 = scmp.lt.s32.totalorder %s5099_s13, %s5099_s13 }
  0x56   : > { %p5102_p2 = pnand %p5100_p10, %p5331_p0  ;;  %p5109_p8 = por %p5108_p7, %p5107_p4 }
  0x58   : > { %p5103_p3 = pneg %p5102_p2 }
  0x5a   : > { %p5110_p11 = pnand %p5109_p8, %p5103_p3 }
  0x5c   : > { %5113 = shalt.err (!%p5110_p11)
}
  0x5d   : > { %4970 = dma.hbm_to_vmem [thread:$0]  (!%p5315_p12), %s5744_s3, 55296, %s199_s12, [#allocation7], %s5221_s8, %s5221_s8, %s5222_s11  }
  0x5e   : > { %s5223_s15 = smov [#allocation9]   ;;  %s5114_s26 = scalar_lea.hbm %s5745_s4, 48 }
  0x5f   : > { %s212_s16 = sshll.u32 %s5223_s15, 4  ;;  %p5115_p13 = scmp.ne.s32.totalorder %s5745_s4, %s5114_s26  ;;  %s213_s16 = int_to_ptr.vmem [resolvable:$true] %s212_s16 }
  0x60   : > { %p5121_p5 = scmp.lt.u32.totalorder %s5114_s26, %s5745_s4 }
  0x61   : > { %p5117_p1 = pnand %p5115_p13, %p5331_p0 }
  0x63   : > { %p5118_p6 = pneg %p5117_p1 }
  0x65   : > { %p5123_p9 = pnand %p5121_p5, %p5118_p6 }
  0x67   : > { %5126 = shalt.err (!%p5123_p9)
}
  0x68   : > { %s5127_s12 = scalar_lea.vmem %s213_s16, 48  ;;  %s5134_s8 = scalar_lea.vmem %s213_s16, 64 }
  0x69   : > { %p5128_p10 = scmp.ne.s32.totalorder %s213_s16, %s5127_s12  ;;  %p5135_p4 = scmp.lt.s32.totalorder %s213_s16, %s213_s16 }
  0x6a   : > { %p5136_p7 = scmp.lt.s32.totalorder %s5134_s8, %s5127_s12 }
  0x6b   : > { %p5130_p2 = pnand %p5128_p10, %p5331_p0 }
  0x6c   : > { %p5137_p8 = por %p5136_p7, %p5135_p4 }
  0x6d   : > { %p5131_p3 = pneg %p5130_p2 }
  0x6f   : > { %p5138_p11 = pnand %p5137_p8, %p5131_p3 }
  0x71   : > { %5141 = shalt.err (!%p5138_p11)
}
  0x72   : > { %4973 = dma.hbm_to_vmem [thread:$0]  (!%p5315_p12), %s5745_s4, 48, %s213_s16, [#allocation10]  }
  0x73   : > { %p5757_p13 = scmp.ne.s32.totalorder %s5753_s30, 0 }
  0x74   : > { %p5758_p1 = scmp.eq.s32.totalorder (!%p5757_p13), %s5279_s22, 0 }
  0x75   : > { %233 = sbr.rel (%p5757_p13) target bundleno = 1114 (0x45a), region = 40 }
  0x7c   : > { %5187 = dma.done.wait (%p5758_p1), [#allocation4], 55296   ;;  %p5759_p0 = pmov %p5758_p1 }
  0x7e   : > { %5189 = vsyncadd (%p5759_p0), [#allocation4], 4294912000  ;;  %p5760_p6 = pmov %p5759_p0 }
  0x7f   : > { %p5761_p5 = pmov %p5759_p0 }
  0x80   : > { %5191 = dma.done.wait (%p5760_p6), [#allocation7], 55344  }
  0x81   : > { %5193 = vsyncadd (%p5761_p5), [#allocation7], 4294911952  ;;  %p5762_p9 = pmov %p5759_p0 }
  0x82   : > { %p5763_p12 = pmov %p5759_p0 }
  0x83   : > { %5195 = dma.done.wait (%p5762_p9), [#allocation10], 48  }
  0x84   : > { %5197 = vsyncadd (%p5763_p12), [#allocation10], 4294967248  ;;  %v436_v0 = vld [vmem:[#allocation3 + $0x488] sm:$0xff]  ;;  %v439_v1 = vld [vmem:[#allocation3 + $0x4a0] sm:$0xff]  ;;  %p273_p10 = scmp.lt.s32.totalorder %s5279_s22, 1  ;;  %vm588_vm0 = vcmask 1046528  }
  0x85   : > { %v533_v2 = vld [vmem:[#allocation3 + $0x790] sm:$0xff]  ;;  %v3920_v3 = vpack.c.bf16 %v439_v1, %v436_v0  ;;  %v536_v4 = vld [vmem:[#allocation3 + $0x7a8] sm:$0xff]  ;;  %v435_v5 = vld [vmem:[#allocation3 + $0x480] sm:$0xff]  ;;  %vm1375_vm1 = vcmask 1045504   ;;  %vm1763_vm5 = vcmask 1040384   ;;  %s270_s15 = sand.u32 1, %s5208_s19  }
  0x86   : > { %v438_v6 = vld [vmem:[#allocation3 + $0x498] sm:$0xff]  ;;  %v4048_v7 = vpack.c.bf16 %v536_v4, %v533_v2  ;;  %v445_v10 = vld [vmem:[#allocation3 + $0x4d0] sm:$0xff]  ;;  %v539_v11 = vld [vmem:[#allocation3 + $0x7c0] sm:$0xff]  ;;  %s5425_s1 = scalar_select %p273_p10, %s5279_s22, 1 }
  0x87   : > { %v3922_v8 = vpack.c.bf16 %v438_v6, %v435_v5  ;;  %v442_v9 = vld [vmem:[#allocation3 + $0x4b8] sm:$0xff]  ;;  %3921 = vmatprep.subr.bf16.mxu0 %v3920_v3  ;;  %v441_v14 = vld [vmem:[#allocation3 + $0x4b0] sm:$0xff]  ;;  %v444_v15 = vld [vmem:[#allocation3 + $0x4c8] sm:$0xff]  ;;  %s4940_s16 = smul.u32 48, %s270_s15  ;;  %p5764_p3 = scmp.ne.s32.totalorder %s5751_s28, 0 }
  0x88   : > { %v3924_v12 = vpack.c.bf16 %v445_v10, %v442_v9  ;;  %v542_v13 = vld [vmem:[#allocation3 + $0x7d8] sm:$0xff]  ;;  %4049 = vmatprep.subr.bf16.mxu1 %v4048_v7  ;;  %v3926_v17 = vpack.c.bf16 %v444_v15, %v441_v14  ;;  %v448_v18 = vld [vmem:[#allocation3 + $0x4e8] sm:$0xff]  ;;  %v451_v19 = vld [vmem:[#allocation3 + $0x500] sm:$0xff]  ;;  %s4941_s30 = smul.u32 72, %s5425_s1  ;;  %s5225_s8 = smov [#allocation11]  }
  0x89   : > { %3923 = vmatpush1.bf16.msra.mxu0 %v3922_v8  ;;  %v4052_v16 = vpack.c.bf16 %v542_v13, %v539_v11  ;;  %v545_v20 = vld [vmem:[#allocation3 + $0x7f0] sm:$0xff]  ;;  %4051 = vmatpush3.bf16.msra.mxu1 %v4048_v7  ;;  %v3928_v21 = vpack.c.bf16 %v451_v19, %v448_v18  ;;  %v548_v22 = vld [vmem:[#allocation3 + $0x808] sm:$0xff]  ;;  %v447_v23 = vld [vmem:[#allocation3 + $0x4e0] sm:$0xff]  ;;  %s5676_s17 = scalar_lea.vmem [#allocation11], %s4940_s16  ;;  %s4942_s25 = smul.u32 768, %s5279_s22 }
  0x8a   : > { %3925 = vmatprep.subr.bf16.mxu0 %v3924_v12  ;;  %v450_v24 = vld [vmem:[#allocation3 + $0x4f8] sm:$0xff]  ;;  %v4056_v25 = vpack.c.bf16 %v548_v22, %v545_v20  ;;  %v457_v27 = vld [vmem:[#allocation3 + $0x530] sm:$0xff]  ;;  %v551_v28 = vld [vmem:[#allocation3 + $0x820] sm:$0xff]  ;;  %s5431_s14 = scalar_lea.vmem %s5741_s0, %s4941_s30  ;;  %s3255_s26 = sshll.u32 %s5676_s17, 4  ;;  %s5694_s26 = int_to_ptr.vmem [resolvable:$true] %s3255_s26 }
  0x8b   : > { %4053 = vmatprep.subr.bf16.mxu1 %v4052_v16  ;;  %v454_v26 = vld [vmem:[#allocation3 + $0x518] sm:$0xff]  ;;  %v3930_v30 = vpack.c.bf16 %v450_v24, %v447_v23  ;;  %v453_v32 = vld [vmem:[#allocation3 + $0x510] sm:$0xff]  ;;  %v456_v33 = vld [vmem:[#allocation3 + $0x528] sm:$0xff]  ;;  %s5692_s13 = scalar_lea.hbm %s5746_s5, %s4942_s25  ;;  %s5700_s22 = scalar_lea.sflag [#allocation5], %s270_s15 }
  0x8c   : > { %v554_v29 = vld [vmem:[#allocation3 + $0x838] sm:$0xff]  ;;  %v3932_v31 = vpack.c.bf16 %v457_v27, %v454_v26  ;;  %v460_v35 = vld [vmem:[#allocation3 + $0x548] sm:$0xff]  ;;  %v463_v36 = vld [vmem:[#allocation3 + $0x560] sm:$0xff]  ;;  %v3934_v39 = vpack.c.bf16 %v456_v33, %v453_v32  ;;  %s5142_s12 = scalar_lea.vmem %s5694_s26, 768  ;;  %s5146_s11 = sshll.u32 %s5225_s8, 4  ;;  %s5147_s11 = int_to_ptr.vmem [resolvable:$false] %s5146_s11 }
  0x8d   : > { %3927 = vmatpush1.bf16.msra.mxu0 %v3926_v17  ;;  %4055 = vmatpush3.bf16.msra.mxu1 %v4052_v16  ;;  %v4060_v34 = vpack.c.bf16 %v554_v29, %v551_v28  ;;  %v557_v37 = vld [vmem:[#allocation3 + $0x850] sm:$0xff]  ;;  %v560_v38 = vld [vmem:[#allocation3 + $0x868] sm:$0xff]  ;;  %v3936_v40 = vpack.c.bf16 %v463_v36, %v460_v35  ;;  %v459_v41 = vld [vmem:[#allocation3 + $0x540] sm:$0xff]  ;;  %p5143_p2 = scmp.ne.s32.totalorder %s5694_s26, %s5142_s12  ;;  %s5148_s9 = scalar_lea.vmem %s5147_s11, 1536 }
  0x8e   : > { %3929 = vmatprep.subr.bf16.mxu0 %v3928_v21  ;;  %4057 = vmatprep.subr.bf16.mxu1 %v4056_v25  ;;  %v462_v42 = vld [vmem:[#allocation3 + $0x558] sm:$0xff]  ;;  %v4064_v43 = vpack.c.bf16 %v560_v38, %v557_v37  ;;  %v469_v45 = vld [vmem:[#allocation3 + $0x590] sm:$0xff]  ;;  %v563_v46 = vld [vmem:[#allocation3 + $0x880] sm:$0xff]  ;;  %p5149_p8 = scmp.lt.s32.totalorder %s5694_s26, %s5147_s11  ;;  %p5150_p11 = scmp.lt.s32.totalorder %s5148_s9, %s5142_s12 }
  0x8f   : > { %v466_v44 = vld [vmem:[#allocation3 + $0x578] sm:$0xff]  ;;  %v3938_v48 = vpack.c.bf16 %v462_v42, %v459_v41  ;;  %v280_v49 = vld [vmem:[%s5431_s14 + $0x10] sm:$0xfe]  ;;  %v465_v51 = vld [vmem:[#allocation3 + $0x570] sm:$0xff]  ;;  %p5144_p4 = pnand %p5143_p2, %p5764_p3 }
  0x90   : > { %v566_v47 = vld [vmem:[#allocation3 + $0x898] sm:$0xff]  ;;  %v3940_v50 = vpack.c.bf16 %v469_v45, %v466_v44  ;;  %v468_v52 = vld [vmem:[#allocation3 + $0x588] sm:$0xff]  ;;  %v5435_v53 = vld [vmem:[%s5431_s14 + $0x28] sm:$0xff]  ;;  %v595_v54 = vrot.slane %v280_v49, 1  ;;  %p5151_p13 = por %p5150_p11, %p5149_p8 }
  0x91   : > { %3931 = vmatpush1.bf16.msra.mxu0 %v3930_v30  ;;  %4059 = vmatpush3.bf16.msra.mxu1 %v4056_v25  ;;  %v4068_v55 = vpack.c.bf16 %v566_v47, %v563_v46  ;;  %v472_v56 = vld [vmem:[#allocation3 + $0x5a8] sm:$0xff]  ;;  %v475_v57 = vld [vmem:[#allocation3 + $0x5c0] sm:$0xff]  ;;  %v596_v58 = vrot.slane %v5435_v53, 1  ;;  %v569_v59 = vld [vmem:[#allocation3 + $0x8b0] sm:$0xff]  ;;  %v3942_v61 = vpack.c.bf16 %v468_v52, %v465_v51  ;;  %p5145_p7 = pneg %p5144_p4 }
  0x92   : > { %3933 = vmatprep.subr.bf16.mxu0 %v3932_v31  ;;  %4061 = vmatprep.subr.bf16.mxu1 %v4060_v34  ;;  %v572_v60 = vld [vmem:[#allocation3 + $0x8c8] sm:$0xff]  ;;  %v3944_v63 = vpack.c.bf16 %v475_v57, %v472_v56  ;;  %v471_v0 = vld [vmem:[#allocation3 + $0x5a0] sm:$0xff]  ;;  %v474_v1 = vld [vmem:[#allocation3 + $0x5b8] sm:$0xff] }
  0x93   : > { %v5439_v62 = vsel %vm588_vm0, %v595_v54, %v596_v58  ;;  %v4072_v2 = vpack.c.bf16 %v572_v60, %v569_v59  ;;  %v478_v3 = vld [vmem:[#allocation3 + $0x5d8] sm:$0xff]  ;;  %v481_v4 = vld [vmem:[#allocation3 + $0x5f0] sm:$0xff]  ;;  %v575_v5 = vld [vmem:[#allocation3 + $0x8e0] sm:$0xff]  ;;  %v3946_v7 = vpack.c.bf16 %v474_v1, %v471_v0  ;;  %p5152_p1 = pnand %p5151_p13, %p5145_p7 }
  0x94   : > { %3742 = vmatprep.mubr.f32.mxu1 %v5439_v62  ;;  %v578_v6 = vld [vmem:[#allocation3 + $0x8f8] sm:$0xff]  ;;  %v3948_v8 = vpack.c.bf16 %v481_v4, %v478_v3  ;;  %v477_v9 = vld [vmem:[#allocation3 + $0x5d0] sm:$0xff]  ;;  %v480_v10 = vld [vmem:[#allocation3 + $0x5e8] sm:$0xff] }
  0x95   : > { %3935 = vmatpush1.bf16.msra.mxu0 %v3934_v39  ;;  %4063 = vmatpush3.bf16.msra.mxu1 %v4060_v34  ;;  %v4076_v11 = vpack.c.bf16 %v578_v6, %v575_v5  ;;  %v484_v12 = vld [vmem:[#allocation3 + $0x608] sm:$0xff]  ;;  %v487_v13 = vld [vmem:[#allocation3 + $0x620] sm:$0xff]  ;;  %v286_v14 = vld [vmem:[%s5431_s14 + $0x40] sm:$0x1]  ;;  %v3950_v17 = vpack.c.bf16 %v480_v10, %v477_v9 }
  0x96   : > { %3937 = vmatprep.subr.bf16.mxu0 %v3936_v40  ;;  %4065 = vmatprep.subr.bf16.mxu1 %v4064_v43  ;;  %v340_v15 = vld [vmem:[#allocation3 + $0x190] sm:$0xff]  ;;  %v343_v16 = vld [vmem:[#allocation3 + $0x1a8] sm:$0xff]  ;;  %v3952_v18 = vpack.c.bf16 %v487_v13, %v484_v12  ;;  %v483_v19 = vld [vmem:[#allocation3 + $0x600] sm:$0xff]  ;;  %v602_v21 = vrot.slane %v286_v14, 1 }
  0x97   : > { %v486_v20 = vld [vmem:[#allocation3 + $0x618] sm:$0xff]  ;;  %v292_v22 = vld [vmem:[#allocation3 + $0x10] sm:$0xff]  ;;  %v4176_v23 = vpack.c.bf16 %v343_v16, %v340_v15  ;;  %v295_v24 = vld [vmem:[#allocation3 + $0x28] sm:$0xff] }
  0x98   : > { %v490_v25 = vld [vmem:[#allocation3 + $0x638] sm:$0xff]  ;;  %v493_v26 = vld [vmem:[#allocation3 + $0x650] sm:$0xff]  ;;  %v346_v27 = vld [vmem:[#allocation3 + $0x1c0] sm:$0xff]  ;;  %v3954_v29 = vpack.c.bf16 %v486_v20, %v483_v19  ;;  %v5444_v30 = vsel %vm588_vm0, %v596_v58, %v602_v21  ;;  %v4178_v31 = vpack.c.bf16 %v295_v24, %v292_v22 }
  0x99   : > { %3939 = vmatpush1.bf16.msra.mxu0 %v3938_v48  ;;  %4067 = vmatpush3.bf16.msra.mxu1 %v4064_v43  ;;  %v349_v28 = vld [vmem:[#allocation3 + $0x1d8] sm:$0xff]  ;;  %v3956_v32 = vpack.c.bf16 %v493_v26, %v490_v25  ;;  %v489_v33 = vld [vmem:[#allocation3 + $0x630] sm:$0xff]  ;;  %v492_v34 = vld [vmem:[#allocation3 + $0x648] sm:$0xff] }
  0x9a   : > { %3941 = vmatprep.subr.bf16.mxu0 %v3940_v50  ;;  %4069 = vmatprep.subr.bf16.mxu1 %v4068_v55  ;;  %v298_v35 = vld [vmem:[#allocation3 + $0x40] sm:$0xff]  ;;  %v4180_v36 = vpack.c.bf16 %v349_v28, %v346_v27  ;;  %v301_v37 = vld [vmem:[#allocation3 + $0x58] sm:$0xff]  ;;  %v496_v38 = vld [vmem:[#allocation3 + $0x668] sm:$0xff]  ;;  %v3958_v42 = vpack.c.bf16 %v492_v34, %v489_v33 }
  0x9b   : > { %v499_v39 = vld [vmem:[#allocation3 + $0x680] sm:$0xff]  ;;  %v352_v40 = vld [vmem:[#allocation3 + $0x1f0] sm:$0xff]  ;;  %v355_v41 = vld [vmem:[#allocation3 + $0x208] sm:$0xff]  ;;  %v4182_v45 = vpack.c.bf16 %v301_v37, %v298_v35 }
  0x9c   : > { %v495_v43 = vld [vmem:[#allocation3 + $0x660] sm:$0xff]  ;;  %v498_v44 = vld [vmem:[#allocation3 + $0x678] sm:$0xff]  ;;  %v3960_v46 = vpack.c.bf16 %v499_v39, %v496_v38  ;;  %v304_v47 = vld [vmem:[#allocation3 + $0x70] sm:$0xff]  ;;  %v4184_v50 = vpack.c.bf16 %v355_v41, %v352_v40 }
  0x9d   : > { %3943 = vmatpush1.bf16.msra.mxu0 %v3942_v61  ;;  %4071 = vmatpush3.bf16.msra.mxu1 %v4068_v55  ;;  %v307_v48 = vld [vmem:[#allocation3 + $0x88] sm:$0xff]  ;;  %v502_v49 = vld [vmem:[#allocation3 + $0x698] sm:$0xff]  ;;  %v505_v51 = vld [vmem:[#allocation3 + $0x6b0] sm:$0xff]  ;;  %v3962_v60 = vpack.c.bf16 %v498_v44, %v495_v43 }
  0x9e   : > { %3945 = vmatprep.subr.bf16.mxu0 %v3944_v63  ;;  %4073 = vmatprep.subr.bf16.mxu1 %v4072_v2  ;;  %v279_v52 = vld [vmem:[%s5431_s14 + $0x8] sm:$0xfe]  ;;  %v5449_v54 = vld [vmem:[%s5431_s14 + $0x20] sm:$0xff]  ;;  %v4186_v61 = vpack.c.bf16 %v307_v48, %v304_v47  ;;  %v3964_v63 = vpack.c.bf16 %v505_v51, %v502_v49  ;;  %v501_v0 = vld [vmem:[#allocation3 + $0x690] sm:$0xff] }
  0x9f   : > { %v358_v55 = vld [vmem:[#allocation3 + $0x220] sm:$0xff]  ;;  %v361_v56 = vld [vmem:[#allocation3 + $0x238] sm:$0xff]  ;;  %v592_v57 = vrot.slane %v279_v52, 1  ;;  %v593_v58 = vrot.slane %v5449_v54, 1  ;;  %v504_v1 = vld [vmem:[#allocation3 + $0x6a8] sm:$0xff] }
  0xa0   : > { %v5453_v59 = vld [vmem:[%s5431_s14 + $0x8] sm:$0xff]  ;;  %v4188_v4 = vpack.c.bf16 %v361_v56, %v358_v55  ;;  %v313_v5 = vld [vmem:[#allocation3 + $0xb8] sm:$0xff]  ;;  %v508_v6 = vld [vmem:[#allocation3 + $0x6c8] sm:$0xff]  ;;  %v3966_v10 = vpack.c.bf16 %v504_v1, %v501_v0 }
  0xa1   : > { %3947 = vmatpush1.bf16.msra.mxu0 %v3946_v7  ;;  %4075 = vmatpush3.bf16.msra.mxu1 %v4072_v2  ;;  %v310_v2 = vld [vmem:[#allocation3 + $0xa0] sm:$0xff]  ;;  %v5459_v3 = vsel %vm588_vm0, %v592_v57, %v593_v58  ;;  %v367_v9 = vld [vmem:[#allocation3 + $0x268] sm:$0xff]  ;;  %v510_v14 = vld [vmem:[#allocation3 + $0x6d8] sm:$0xff] }
  0xa2   : > { %3949 = vmatprep.subr.bf16.mxu0 %v3948_v8  ;;  %4077 = vmatprep.subr.bf16.mxu1 %v4076_v11  ;;  %v511_v7 = vld [vmem:[#allocation3 + $0x6e0] sm:$0xff]  ;;  %v364_v8 = vld [vmem:[#allocation3 + $0x250] sm:$0xff]  ;;  %v373_v21 = vld [vmem:[#allocation3 + $0x298] sm:$0xff] }
  0xa3   : > { %674 = vmatprep.mubr.f32.mxu0 %v5459_v3  ;;  %v3968_v12 = vpack.c.bf16 %v511_v7, %v508_v6  ;;  %v507_v13 = vld [vmem:[#allocation3 + $0x6c0] sm:$0xff]  ;;  %v316_v15 = vld [vmem:[#allocation3 + $0xd0] sm:$0xff]  ;;  %v4192_v16 = vpack.c.bf16 %v367_v9, %v364_v8  ;;  %v516_v26 = vld [vmem:[#allocation3 + $0x708] sm:$0xff] }
  0xa4   : > { %v517_v19 = vld [vmem:[#allocation3 + $0x710] sm:$0xff]  ;;  %v370_v20 = vld [vmem:[#allocation3 + $0x280] sm:$0xff]  ;;  %v3970_v22 = vpack.c.bf16 %v510_v14, %v507_v13  ;;  %v379_v34 = vld [vmem:[#allocation3 + $0x2c8] sm:$0xff] }
  0xa5   : > { %3951 = vmatpush1.bf16.msra.mxu0 %v3950_v17  ;;  %4079 = vmatpush3.bf16.msra.mxu1 %v4076_v11  ;;  %v4190_v11 = vpack.c.bf16 %v313_v5, %v310_v2  ;;  %v319_v17 = vld [vmem:[#allocation3 + $0xe8] sm:$0xff]  ;;  %v513_v25 = vld [vmem:[#allocation3 + $0x6f0] sm:$0xff]  ;;  %v322_v27 = vld [vmem:[#allocation3 + $0x100] sm:$0xff]  ;;  %v4196_v28 = vpack.c.bf16 %v373_v21, %v370_v20 }
  0xa6   : > { %3953 = vmatprep.subr.bf16.mxu0 %v3952_v18  ;;  %4177 = vmatprep.subr.bf16.mxu1 %v4176_v23  ;;  %v514_v18 = vld [vmem:[#allocation3 + $0x6f8] sm:$0xff]  ;;  %v4194_v23 = vpack.c.bf16 %v319_v17, %v316_v15  ;;  %v376_v33 = vld [vmem:[#allocation3 + $0x2b0] sm:$0xff]  ;;  %v3974_v35 = vpack.c.bf16 %v516_v26, %v513_v25  ;;  %v519_v38 = vld [vmem:[#allocation3 + $0x720] sm:$0xff] }
  0xa7   : > { %v3972_v24 = vpack.c.bf16 %v517_v19, %v514_v18  ;;  %v522_v39 = vld [vmem:[#allocation3 + $0x738] sm:$0xff]  ;;  %v328_v40 = vld [vmem:[#allocation3 + $0x130] sm:$0xff]  ;;  %v4200_v41 = vpack.c.bf16 %v379_v34, %v376_v33  ;;  %v528_v49 = vld [vmem:[#allocation3 + $0x768] sm:$0xff] }
  0xa8   : > { %3743 = vmatmul.mubr.f32.vlgmr.msra.gmra.mrb[0].mxu1 %v5444_v30  ;;  %v526_v43 = vld [vmem:[#allocation3 + $0x758] sm:$0xff]  ;;  %v529_v44 = vld [vmem:[#allocation3 + $0x770] sm:$0xff]  ;;  %v3978_v47 = vpack.c.bf16 %v522_v39, %v519_v38  ;;  %v334_v52 = vld [vmem:[#allocation3 + $0x160] sm:$0xff] }
  0xa9   : > { %3955 = vmatpush1.bf16.msra.mxu0 %v3954_v29  ;;  %4179 = vmatpush3.bf16.msra.mxu1 %v4178_v31  ;;  %v325_v29 = vld [vmem:[#allocation3 + $0x118] sm:$0xff]  ;;  %v520_v31 = vld [vmem:[#allocation3 + $0x728] sm:$0xff]  ;;  %v525_v48 = vld [vmem:[#allocation3 + $0x750] sm:$0xff]  ;;  %v3980_v51 = vpack.c.bf16 %v529_v44, %v526_v43 }
  0xaa   : > { %3957 = vmatprep.subr.bf16.mxu0 %v3956_v32  ;;  %4181 = vmatprep.subr.bf16.mxu1 %v4180_v36  ;;  %v523_v32 = vld [vmem:[#allocation3 + $0x740] sm:$0xff]  ;;  %v4198_v36 = vpack.c.bf16 %v325_v29, %v322_v27  ;;  %v278_v55 = vld [vmem:[%s5431_s14] sm:$0xfe]  ;;  %v5464_v56 = vld [vmem:[%s5431_s14 + $0x18] sm:$0xff]  ;;  %v3982_v2 = vpack.c.bf16 %v528_v49, %v525_v48  ;;  %v5224_v49 = vmov 0.0  }
  0xab   : > { %1132 = vmatprep.mubr.f32.mxu1 %v5453_v59  ;;  %v3976_v37 = vpack.c.bf16 %v523_v32, %v520_v31  ;;  %v388_v0 = vld [vmem:[#allocation3 + $0x310] sm:$0xff]  ;;  %v391_v1 = vld [vmem:[#allocation3 + $0x328] sm:$0xff]  ;;  %v590_v5 = vrot.slane %v5464_v56, 1  ;;  %v531_v9 = vld [vmem:[#allocation3 + $0x780] sm:$0xff] }
  0xac   : > { %v285_v6 = vld [vmem:[%s5431_s14 + $0x38] sm:$0x1]  ;;  %v538_v13 = vld [vmem:[#allocation3 + $0x7b8] sm:$0xff]  ;;  %v394_v15 = vld [vmem:[#allocation3 + $0x340] sm:$0xff] }
  0xad   : > { %3959 = vmatpush1.bf16.msra.mxu0 %v3958_v42  ;;  %4183 = vmatpush3.bf16.msra.mxu1 %v4182_v45  ;;  %v331_v42 = vld [vmem:[#allocation3 + $0x148] sm:$0xff]  ;;  %v382_v45 = vld [vmem:[#allocation3 + $0x2e0] sm:$0xff]  ;;  %v541_v14 = vld [vmem:[#allocation3 + $0x7d0] sm:$0xff]  ;;  %v600_v17 = vrot.slane %v285_v6, 1 }
  0xae   : > { %3961 = vmatprep.subr.bf16.mxu0 %v3960_v46  ;;  %4185 = vmatprep.subr.bf16.mxu1 %v4184_v50  ;;  %v385_v46 = vld [vmem:[#allocation3 + $0x2f8] sm:$0xff]  ;;  %v4202_v50 = vpack.c.bf16 %v331_v42, %v328_v40  ;;  %v544_v26 = vld [vmem:[#allocation3 + $0x7e8] sm:$0xff]  ;;  %v547_v27 = vld [vmem:[#allocation3 + $0x800] sm:$0xff] }
  0xaf   : > { %v4204_v57 = vpack.c.bf16 %v385_v46, %v382_v45  ;;  %v5473_v21 = vld [vmem:[%s5431_s14] sm:$0xff]  ;;  %v403_v29 = vld [vmem:[#allocation3 + $0x388] sm:$0xff]  ;;  %v5479_v31 = vsel %vm588_vm0, %v593_v58, %v600_v17  ;;  %v3992_v34 = vpack.c.bf16 %v547_v27, %v544_v26  ;;  %v553_v39 = vld [vmem:[#allocation3 + $0x830] sm:$0xff] }
  0xb0   : > { %v550_v38 = vld [vmem:[#allocation3 + $0x818] sm:$0xff]  ;;  %v406_v58 = vld [vmem:[#allocation3 + $0x3a0] sm:$0xff]  ;;  %v5490_v42 = vld [vmem:[%s5431_s14 + $0x10] sm:$0xff] }
  0xb1   : > { %3963 = vmatpush1.bf16.msra.mxu0 %v3962_v60  ;;  %4187 = vmatpush3.bf16.msra.mxu1 %v4186_v61  ;;  %v337_v60 = vld [vmem:[#allocation3 + $0x178] sm:$0xff]  ;;  %v532_v61 = vld [vmem:[#allocation3 + $0x788] sm:$0xff]  ;;  %v3996_v43 = vpack.c.bf16 %v553_v39, %v550_v38  ;;  %v549_v44 = vld [vmem:[#allocation3 + $0x810] sm:$0xff] }
  0xb2   : > { %3965 = vmatprep.subr.bf16.mxu0 %v3964_v63  ;;  %4189 = vmatprep.subr.bf16.mxu1 %v4188_v4  ;;  %v535_v63 = vld [vmem:[#allocation3 + $0x7a0] sm:$0xff]  ;;  %v589_v4 = vrot.slane %v278_v55, 1  ;;  %v4206_v7 = vpack.c.bf16 %v337_v60, %v334_v52  ;;  %v409_v40 = vld [vmem:[#allocation3 + $0x3b8] sm:$0xff]  ;;  %v552_v45 = vld [vmem:[#allocation3 + $0x828] sm:$0xff] }
  0xb3   : > { %v3984_v8 = vpack.c.bf16 %v535_v63, %v532_v61  ;;  %v4220_v46 = vpack.c.bf16 %v409_v40, %v406_v58  ;;  %v559_v48 = vld [vmem:[#allocation3 + $0x860] sm:$0xff]  ;;  %v3998_v52 = vpack.c.bf16 %v552_v45, %v549_v44  ;;  %v558_v60 = vld [vmem:[#allocation3 + $0x858] sm:$0xff]  ;;  %v561_v6 = vld [vmem:[#allocation3 + $0x870] sm:$0xff] }
  0xb4   : > { %v5470_v18 = vsel %vm588_vm0, %v589_v4, %v590_v5  ;;  %v562_v63 = vld [vmem:[#allocation3 + $0x878] sm:$0xff]  ;;  %v573_v26 = vld [vmem:[#allocation3 + $0x8d0] sm:$0xff]  ;;  %v576_v27 = vld [vmem:[#allocation3 + $0x8e8] sm:$0xff] }
  0xb5   : > { %3967 = vmatpush1.bf16.msra.mxu0 %v3966_v10  ;;  %4191 = vmatpush3.bf16.msra.mxu1 %v4190_v11  ;;  %v534_v10 = vld [vmem:[#allocation3 + $0x798] sm:$0xff]  ;;  %v284_v11 = vld [vmem:[%s5431_s14 + $0x30] sm:$0x1]  ;;  %v1227_v58 = vld [vmem:[#allocation3 + $0x910] sm:$0xff] }
  0xb6   : > { %3969 = vmatprep.subr.bf16.mxu0 %v3968_v12  ;;  %4193 = vmatprep.subr.bf16.mxu1 %v4192_v16  ;;  %v4208_v12 = vpack.c.bf16 %v391_v1, %v388_v0  ;;  %v397_v16 = vld [vmem:[#allocation3 + $0x358] sm:$0xff]  ;;  %v3986_v19 = vpack.c.bf16 %v534_v10, %v531_v9  ;;  %v598_v20 = vrot.slane %v284_v11, 1  ;;  %v565_v0 = vld [vmem:[#allocation3 + $0x890] sm:$0xff]  ;;  %v418_v1 = vld [vmem:[#allocation3 + $0x400] sm:$0xff] }
  0xb7   : > { %v4212_v25 = vpack.c.bf16 %v397_v16, %v394_v15  ;;  %v568_v9 = vld [vmem:[#allocation3 + $0x8a8] sm:$0xff]  ;;  %v571_v10 = vld [vmem:[#allocation3 + $0x8c0] sm:$0xff]  ;;  %v424_v11 = vld [vmem:[#allocation3 + $0x430] sm:$0xff] }
  0xb8   : > { %v5483_v33 = vsel %vm588_vm0, %v590_v5, %v598_v20  ;;  %v4004_v5 = vpack.c.bf16 %v565_v0, %v562_v63  ;;  %v567_v15 = vld [vmem:[#allocation3 + $0x8a0] sm:$0xff]  ;;  %v570_v16 = vld [vmem:[#allocation3 + $0x8b8] sm:$0xff]  ;;  %v577_v20 = vld [vmem:[#allocation3 + $0x8f0] sm:$0xff] }
  0xb9   : > { %3971 = vmatpush1.bf16.msra.mxu0 %v3970_v22  ;;  %4195 = vmatpush3.bf16.msra.mxu1 %v4194_v23  ;;  %v3988_v22 = vpack.c.bf16 %v541_v14, %v538_v13  ;;  %v537_v23 = vld [vmem:[#allocation3 + $0x7b0] sm:$0xff]  ;;  %v4008_v14 = vpack.c.bf16 %v571_v10, %v568_v9  ;;  %v440_v39 = vld [vmem:[#allocation3 + $0x4a8] sm:$0xff]  ;;  %v1219_v40 = vld [vmem:[%s5431_s14 + $0x8] sm:$0xfc] }
  0xba   : > { %3973 = vmatprep.subr.bf16.mxu0 %v3972_v24  ;;  %4197 = vmatprep.subr.bf16.mxu1 %v4196_v28  ;;  %v540_v24 = vld [vmem:[#allocation3 + $0x7c8] sm:$0xff]  ;;  %v400_v28 = vld [vmem:[#allocation3 + $0x370] sm:$0xff]  ;;  %v491_v44 = vld [vmem:[#allocation3 + $0x640] sm:$0xff] }
  0xbb   : > { %v3990_v32 = vpack.c.bf16 %v540_v24, %v537_v23  ;;  %v433_v23 = vld [vmem:[#allocation3 + $0x478] sm:$0xff]  ;;  %v4010_v24 = vpack.c.bf16 %v570_v16, %v567_v15  ;;  %v449_v10 = vld [vmem:[#allocation3 + $0x4f0] sm:$0xff]  ;;  %v503_v15 = vld [vmem:[#allocation3 + $0x6a0] sm:$0xff] }
  0xbc   : > { %v494_v45 = vld [vmem:[#allocation3 + $0x658] sm:$0xff] }
  0xbd   : > { %3975 = vmatpush1.bf16.msra.mxu0 %v3974_v35  ;;  %4199 = vmatpush3.bf16.msra.mxu1 %v4198_v36  ;;  %v543_v35 = vld [vmem:[#allocation3 + $0x7e0] sm:$0xff]  ;;  %v546_v36 = vld [vmem:[#allocation3 + $0x7f8] sm:$0xff] }
  0xbe   : > { %3977 = vmatprep.subr.bf16.mxu0 %v3976_v37  ;;  %4201 = vmatprep.subr.bf16.mxu1 %v4200_v41  ;;  %v4216_v37 = vpack.c.bf16 %v403_v29, %v400_v28  ;;  %v3994_v41 = vpack.c.bf16 %v546_v36, %v543_v35  ;;  %v485_v29 = vld [vmem:[#allocation3 + $0x610] sm:$0xff]  ;;  %v1278_v35 = vld [vmem:[#allocation3 + $0xaa8] sm:$0xff]  ;;  %v4014_v36 = vpack.c.bf16 %v576_v27, %v573_v26  ;;  %v1236_v0 = vld [vmem:[#allocation3 + $0x958] sm:$0xff] }
  0xbf   : > { %v506_v16 = vld [vmem:[#allocation3 + $0x6b8] sm:$0xff]  ;;  %v1245_v26 = vld [vmem:[#allocation3 + $0x9a0] sm:$0xff] }
  0xc1   : > { %3979 = vmatpush1.bf16.msra.mxu0 %v3978_v47  ;;  %4203 = vmatpush3.bf16.msra.mxu1 %v4202_v50  ;;  %v556_v47 = vld [vmem:[#allocation3 + $0x848] sm:$0xff]  ;;  %v412_v50 = vld [vmem:[#allocation3 + $0x3d0] sm:$0xff] }
  0xc2   : > { %3981 = vmatprep.subr.bf16.mxu0 %v3980_v51  ;;  %4205 = vmatprep.subr.bf16.mxu1 %v4204_v57  ;;  %v415_v51 = vld [vmem:[#allocation3 + $0x3e8] sm:$0xff]  ;;  %v4000_v55 = vpack.c.bf16 %v559_v48, %v556_v47  ;;  %v555_v57 = vld [vmem:[#allocation3 + $0x840] sm:$0xff]  ;;  %v1284_v47 = vld [vmem:[#allocation3 + $0xad8] sm:$0xff] }
  0xc3   : > { %v4224_v61 = vpack.c.bf16 %v415_v51, %v412_v50  ;;  %v4002_v4 = vpack.c.bf16 %v558_v60, %v555_v57  ;;  %v1379_v50 = vrot.slane %v1219_v40, 2  ;;  %v1380_v51 = vrot.slane %v5449_v54, 2  ;;  %v443_v57 = vld [vmem:[#allocation3 + $0x4c0] sm:$0xff]  ;;  %v446_v60 = vld [vmem:[#allocation3 + $0x4d8] sm:$0xff]  ;;  %v1251_v40 = vld [vmem:[#allocation3 + $0x9d0] sm:$0xff] }
  0xc5   : > { %3983 = vmatpush1.bf16.msra.mxu0 %v3982_v2  ;;  %4207 = vmatpush3.bf16.msra.mxu1 %v4206_v7  ;;  %v421_v2 = vld [vmem:[#allocation3 + $0x418] sm:$0xff]  ;;  %v564_v7 = vld [vmem:[#allocation3 + $0x888] sm:$0xff] }
  0xc6   : > { %3985 = vmatprep.subr.bf16.mxu0 %v3984_v8  ;;  %4209 = vmatprep.subr.bf16.mxu1 %v4208_v12  ;;  %v4228_v8 = vpack.c.bf16 %v421_v2, %v418_v1  ;;  %v4006_v13 = vpack.c.bf16 %v564_v7, %v561_v6  ;;  %v497_v1 = vld [vmem:[#allocation3 + $0x670] sm:$0xff]  ;;  %v500_v2 = vld [vmem:[#allocation3 + $0x688] sm:$0xff]  ;;  %v4022_v6 = vpack.c.bf16 %v446_v60, %v443_v57  ;;  %v470_v57 = vld [vmem:[#allocation3 + $0x598] sm:$0xff] }
  0xc7   : > { %v5501_v7 = vsel %vm1375_vm1, %v1379_v50, %v1380_v51  ;;  %v4024_v9 = vpack.c.bf16 %v500_v2, %v497_v1  ;;  %v1257_v60 = vld [vmem:[#allocation3 + $0xa00] sm:$0xff]  ;;  %v524_v1 = vld [vmem:[#allocation3 + $0x748] sm:$0xff]  ;;  %v1311_v2 = vld [vmem:[#allocation3 + $0xbb0] sm:$0xff] }
  0xc8   : > { %675 = vmatmul.mubr.f32.vlgmr.msra.gmra.mrb[0].mxu0 %v5470_v18  ;;  %1133 = vmatmul.mubr.f32.vlgmr.msra.gmra.mrb[2].mxu1 %v5473_v21 }
  0xc9   : > { %3987 = vmatpush1.bf16.msra.mxu0 %v3986_v19  ;;  %4211 = vmatpush3.bf16.msra.mxu1 %v4208_v12  ;;  %v427_v12 = vld [vmem:[#allocation3 + $0x448] sm:$0xff]  ;;  %v574_v19 = vld [vmem:[#allocation3 + $0x8d8] sm:$0xff] }
  0xca   : > { %3989 = vmatprep.subr.bf16.mxu0 %v3988_v22  ;;  %4213 = vmatprep.subr.bf16.mxu1 %v4212_v25  ;;  %v4232_v17 = vpack.c.bf16 %v427_v12, %v424_v11  ;;  %v430_v22 = vld [vmem:[#allocation3 + $0x460] sm:$0xff]  ;;  %v452_v11 = vld [vmem:[#allocation3 + $0x508] sm:$0xff]  ;;  %v1239_v12 = vld [vmem:[#allocation3 + $0x970] sm:$0xff] }
  0xcb   : > { %680 = vmatprep.mubr.f32.mxu0 %v5479_v31  ;;  %1137 = vmatprep.mubr.f32.mxu1 %v5449_v54  ;;  %v4236_v28 = vpack.c.bf16 %v433_v23, %v430_v22  ;;  %v4028_v23 = vpack.c.bf16 %v506_v16, %v503_v15  ;;  %v530_v15 = vld [vmem:[#allocation3 + $0x778] sm:$0xff]  ;;  %v1317_v16 = vld [vmem:[#allocation3 + $0xbe0] sm:$0xff] }
  0xcc   : > { %681 = vmatmul.mubr.f32.gmra.mrb[2].mxu0 %v5483_v33  ;;  %1138 = vmatmul.mubr.f32.gmra.mrb[4].mxu1 %v5464_v56 }
  0xcd   : > { %3991 = vmatpush1.bf16.msra.mxu0 %v3990_v32  ;;  %4215 = vmatpush3.bf16.msra.mxu1 %v4212_v25  ;;  %v4012_v25 = vpack.c.bf16 %v577_v20, %v574_v19  ;;  %v488_v32 = vld [vmem:[#allocation3 + $0x628] sm:$0xff]  ;;  %v1296_v19 = vld [vmem:[#allocation3 + $0xb38] sm:$0xff]  ;;  %v4026_v20 = vpack.c.bf16 %v452_v11, %v449_v10  ;;  %v1263_v11 = vld [vmem:[#allocation3 + $0xa30] sm:$0xff] }
  0xce   : > { %3993 = vmatprep.subr.bf16.mxu0 %v3992_v34  ;;  %4217 = vmatprep.subr.bf16.mxu1 %v4216_v37  ;;  %v1275_v34 = vld [vmem:[#allocation3 + $0xa90] sm:$0xff]  ;;  %v4016_v38 = vpack.c.bf16 %v488_v32, %v485_v29  ;;  %v512_v32 = vld [vmem:[#allocation3 + $0x6e8] sm:$0xff] }
  0xcf   : > { %751 = vmatprep.mubr.f32.mxu0 %v5224_v49  ;;  %3777 = vmatprep.mubr.f32.mxu1 %v5490_v42  ;;  %v509_v29 = vld [vmem:[#allocation3 + $0x6d0] sm:$0xff]  ;;  %v476_v10 = vld [vmem:[#allocation3 + $0x5c8] sm:$0xff] }
  0xd1   : > { %3995 = vmatpush1.bf16.msra.mxu0 %v3994_v41  ;;  %4219 = vmatpush3.bf16.msra.mxu1 %v4216_v37  ;;  %v437_v37 = vld [vmem:[#allocation3 + $0x490] sm:$0xff]  ;;  %v4336_v41 = vpack.c.bf16 %v1278_v35, %v1275_v34  ;;  %v1302_v35 = vld [vmem:[#allocation3 + $0xb68] sm:$0xff] }
  0xd2   : > { %3997 = vmatprep.subr.bf16.mxu0 %v3996_v43  ;;  %4221 = vmatprep.subr.bf16.mxu1 %v4220_v46  ;;  %v1230_v43 = vld [vmem:[#allocation3 + $0x928] sm:$0xff]  ;;  %v4018_v48 = vpack.c.bf16 %v440_v39, %v437_v37  ;;  %v1299_v34 = vld [vmem:[#allocation3 + $0xb50] sm:$0xff] }
  0xd3   : > { %v461_v39 = vld [vmem:[#allocation3 + $0x550] sm:$0xff] }
  0xd5   : > { %3999 = vmatpush1.bf16.msra.mxu0 %v3998_v52  ;;  %4223 = vmatpush3.bf16.msra.mxu1 %v4220_v46  ;;  %v1281_v46 = vld [vmem:[#allocation3 + $0xac0] sm:$0xff]  ;;  %v4338_v52 = vpack.c.bf16 %v1230_v43, %v1227_v58  ;;  %v464_v58 = vld [vmem:[#allocation3 + $0x568] sm:$0xff] }
  0xd6   : > { %4001 = vmatprep.subr.bf16.mxu0 %v4000_v55  ;;  %4225 = vmatprep.subr.bf16.mxu1 %v4224_v61  ;;  %v4020_v55 = vpack.c.bf16 %v494_v45, %v491_v44  ;;  %v4340_v63 = vpack.c.bf16 %v1284_v47, %v1281_v46  ;;  %v1254_v43 = vld [vmem:[#allocation3 + $0x9e8] sm:$0xff]  ;;  %v515_v44 = vld [vmem:[#allocation3 + $0x700] sm:$0xff]  ;;  %v518_v45 = vld [vmem:[#allocation3 + $0x718] sm:$0xff] }
  0xd7   : > { %v1305_v46 = vld [vmem:[#allocation3 + $0xb80] sm:$0xff]  ;;  %v1308_v47 = vld [vmem:[#allocation3 + $0xb98] sm:$0xff]  ;;  %v4354_v50 = vpack.c.bf16 %v1254_v43, %v1251_v40  ;;  %v1222_v43 = vld [vmem:[%s5431_s14 + $0x38] sm:$0x3] }
  0xd9   : > { %4003 = vmatpush1.bf16.msra.mxu0 %v4002_v4  ;;  %4227 = vmatpush3.bf16.msra.mxu1 %v4224_v61  ;;  %v1233_v61 = vld [vmem:[#allocation3 + $0x940] sm:$0xff]  ;;  %v1287_v4 = vld [vmem:[#allocation3 + $0xaf0] sm:$0xff] }
  0xda   : > { %4005 = vmatprep.subr.bf16.mxu0 %v4004_v5  ;;  %4229 = vmatprep.subr.bf16.mxu1 %v4228_v8  ;;  %v1290_v5 = vld [vmem:[#allocation3 + $0xb08] sm:$0xff] }
  0xdd   : > { %4007 = vmatpush1.bf16.msra.mxu0 %v4006_v13  ;;  %4231 = vmatpush3.bf16.msra.mxu1 %v4228_v8  ;;  %v4342_v8 = vpack.c.bf16 %v1236_v0, %v1233_v61  ;;  %v4344_v13 = vpack.c.bf16 %v1290_v5, %v1287_v4  ;;  %v4356_v61 = vpack.c.bf16 %v1308_v47, %v1305_v46  ;;  %v521_v0 = vld [vmem:[#allocation3 + $0x730] sm:$0xff]  ;;  %v1314_v4 = vld [vmem:[#allocation3 + $0xbc8] sm:$0xff] }
  0xde   : > { %4009 = vmatprep.subr.bf16.mxu0 %v4008_v14  ;;  %4233 = vmatprep.subr.bf16.mxu1 %v4232_v17  ;;  %v1242_v14 = vld [vmem:[#allocation3 + $0x988] sm:$0xff]  ;;  %v300_v46 = vld [vmem:[#allocation3 + $0x50] sm:$0xff] }
  0xdf   : > { %v4346_v22 = vpack.c.bf16 %v1242_v14, %v1239_v12  ;;  %v4360_v12 = vpack.c.bf16 %v1314_v4, %v1311_v2  ;;  %v527_v14 = vld [vmem:[#allocation3 + $0x760] sm:$0xff]  ;;  %v1221_v47 = vld [vmem:[%s5431_s14 + $0x30] sm:$0x3] }
  0xe0   : > { %v303_v4 = vld [vmem:[#allocation3 + $0x68] sm:$0xff] }
  0xe1   : > { %4011 = vmatpush1.bf16.msra.mxu0 %v4010_v24  ;;  %4235 = vmatpush3.bf16.msra.mxu1 %v4232_v17  ;;  %v1293_v17 = vld [vmem:[#allocation3 + $0xb20] sm:$0xff] }
  0xe2   : > { %4013 = vmatprep.subr.bf16.mxu0 %v4012_v25  ;;  %4237 = vmatprep.subr.bf16.mxu1 %v4236_v28  ;;  %v455_v24 = vld [vmem:[#allocation3 + $0x520] sm:$0xff]  ;;  %v458_v25 = vld [vmem:[#allocation3 + $0x538] sm:$0xff]  ;;  %v4348_v27 = vpack.c.bf16 %v1296_v19, %v1293_v17 }
  0xe3   : > { %v1320_v17 = vld [vmem:[#allocation3 + $0xbf8] sm:$0xff] }
  0xe5   : > { %4015 = vmatpush1.bf16.msra.mxu0 %v4014_v36  ;;  %4239 = vmatpush3.bf16.msra.mxu1 %v4236_v28  ;;  %v1248_v28 = vld [vmem:[#allocation3 + $0x9b8] sm:$0xff]  ;;  %v4030_v36 = vpack.c.bf16 %v458_v25, %v455_v24  ;;  %v1269_v25 = vld [vmem:[#allocation3 + $0xa60] sm:$0xff] }
  0xe6   : > { %4017 = vmatprep.subr.bf16.mxu0 %v4016_v38  ;;  %4337 = vmatprep.subr.bf16.mxu1 %v4336_v41  ;;  %v4350_v37 = vpack.c.bf16 %v1248_v28, %v1245_v26  ;;  %v4032_v38 = vpack.c.bf16 %v512_v32, %v509_v29  ;;  %v4352_v41 = vpack.c.bf16 %v1302_v35, %v1299_v34  ;;  %v482_v24 = vld [vmem:[#allocation3 + $0x5f8] sm:$0xff]  ;;  %v291_v28 = vld [vmem:[#allocation3 + $0x8] sm:$0xff]  ;;  %v294_v29 = vld [vmem:[#allocation3 + $0x20] sm:$0xff] }
  0xe7   : > { %v1272_v26 = vld [vmem:[#allocation3 + $0xa78] sm:$0xff]  ;;  %v1323_v34 = vld [vmem:[#allocation3 + $0xc10] sm:$0xff]  ;;  %v1326_v35 = vld [vmem:[#allocation3 + $0xc28] sm:$0xff] }
  0xe8   : > { %752 = vmatmul.mubr.f32.vlgmr.msra.gmra.mrb[0].mxu0 %v5439_v62  ;;  %3778 = vmatmul.mubr.f32.vlgmr.msra.gmra.mrb[0].mxu1 %v5435_v53  ;;  %v1218_v32 = vld [vmem:[%s5431_s14] sm:$0xfc] }
  0xe9   : > { %4019 = vmatpush3.bf16.msra.mxu0 %v4018_v48  ;;  %4339 = vmatpush3.bf16.msra.mxu1 %v4338_v52  ;;  %v4034_v48 = vpack.c.bf16 %v464_v58, %v461_v39  ;;  %v4036_v52 = vpack.c.bf16 %v518_v45, %v515_v44  ;;  %v290_v39 = vld [vmem:[#allocation3] sm:$0xff]  ;;  %v293_v58 = vld [vmem:[#allocation3 + $0x18] sm:$0xff]  ;;  %v1376_v40 = vrot.slane %v1218_v32, 2  ;;  %v4368_v44 = vpack.c.bf16 %v1326_v35, %v1323_v34  ;;  %v1347_v32 = vld [vmem:[#allocation3 + $0xcd0] sm:$0xff] }
  0xea   : > { %4021 = vmatprep.subr.bf16.mxu0 %v4020_v55  ;;  %4341 = vmatprep.subr.bf16.mxu1 %v4340_v63  ;;  %v467_v55 = vld [vmem:[#allocation3 + $0x580] sm:$0xff]  ;;  %v1260_v63 = vld [vmem:[#allocation3 + $0xa18] sm:$0xff]  ;;  %v1350_v34 = vld [vmem:[#allocation3 + $0xce8] sm:$0xff] }
  0xeb   : > { %757 = vmatprep.mubr.f32.mxu0 %v5224_v49  ;;  %1615 = vmatprep.mubr.f32.mxu1 %v5501_v7  ;;  %v4038_v5 = vpack.c.bf16 %v470_v57, %v467_v55  ;;  %v297_v45 = vld [vmem:[#allocation3 + $0x38] sm:$0xff]  ;;  %v1387_v55 = vrot.slane %v1222_v43, 2  ;;  %v1220_v57 = vld [vmem:[%s5431_s14 + $0x10] sm:$0xfc] }
  0xec   : > { %758 = vmatmul.mubr.f32.gmra.mrb[2].mxu0 %v5444_v30  ;;  %v1356_v43 = vld [vmem:[#allocation3 + $0xd18] sm:$0xff] }
  0xed   : > { %4023 = vmatpush3.bf16.msra.mxu0 %v4022_v6  ;;  %828 = vmatprep.mubr.f32.mxu0 %v5459_v3  ;;  %v4358_v6 = vpack.c.bf16 %v1260_v63, %v1257_v60  ;;  %v296_v63 = vld [vmem:[#allocation3 + $0x30] sm:$0xff] }
  0xee   : > { %4343 = vmatpush3.bf16.msra.mxu1 %v4342_v8  ;;  %4025 = vmatprep.subr.bf16.mxu0 %v4024_v9  ;;  %v4040_v8 = vpack.c.bf16 %v524_v1, %v521_v0  ;;  %v473_v9 = vld [vmem:[#allocation3 + $0x5b0] sm:$0xff]  ;;  %v299_v0 = vld [vmem:[#allocation3 + $0x48] sm:$0xff]  ;;  %v1385_v1 = vrot.slane %v1221_v47, 2 }
  0xef   : > { %4345 = vmatprep.subr.bf16.mxu1 %v4344_v13  ;;  %v1266_v13 = vld [vmem:[#allocation3 + $0xa48] sm:$0xff]  ;;  %v4042_v19 = vpack.c.bf16 %v476_v10, %v473_v9  ;;  %v1382_v9 = vrot.slane %v1220_v57, 2  ;;  %v1383_v10 = vrot.slane %v5435_v53, 2  ;;  %v360_v53 = vld [vmem:[#allocation3 + $0x230] sm:$0xff] }
  0xf1   : > { %4027 = vmatpush3.bf16.msra.mxu0 %v4026_v20  ;;  %v479_v20 = vld [vmem:[#allocation3 + $0x5e0] sm:$0xff]  ;;  %v5532_v54 = vsel %vm1375_vm1, %v1382_v9, %v1383_v10 }
  0xf2   : > { %4347 = vmatpush3.bf16.msra.mxu1 %v4346_v22  ;;  %4029 = vmatprep.subr.bf16.mxu0 %v4028_v23  ;;  %v4362_v22 = vpack.c.bf16 %v1266_v13, %v1263_v11  ;;  %v4044_v23 = vpack.c.bf16 %v530_v15, %v527_v14  ;;  %v4086_v11 = vpack.c.bf16 %v299_v0, %v296_v63  ;;  %v302_v14 = vld [vmem:[#allocation3 + $0x60] sm:$0xff]  ;;  %v305_v15 = vld [vmem:[#allocation3 + $0x78] sm:$0xff] }
  0xf3   : > { %4349 = vmatprep.subr.bf16.mxu1 %v4348_v27  ;;  %v4364_v27 = vpack.c.bf16 %v1320_v17, %v1317_v16  ;;  %v326_v63 = vld [vmem:[#allocation3 + $0x120] sm:$0xff]  ;;  %v329_v0 = vld [vmem:[#allocation3 + $0x138] sm:$0xff] }
  0xf5   : > { %4031 = vmatpush3.bf16.msra.mxu0 %v4030_v36  ;;  %v4046_v36 = vpack.c.bf16 %v482_v24, %v479_v20  ;;  %v312_v20 = vld [vmem:[#allocation3 + $0xb0] sm:$0xff] }
  0xf6   : > { %4351 = vmatpush3.bf16.msra.mxu1 %v4350_v37  ;;  %4033 = vmatprep.subr.bf16.mxu0 %v4032_v38  ;;  %v4366_v37 = vpack.c.bf16 %v1272_v26, %v1269_v25  ;;  %v4080_v38 = vpack.c.bf16 %v294_v29, %v291_v28  ;;  %v308_v25 = vld [vmem:[#allocation3 + $0x90] sm:$0xff]  ;;  %v311_v26 = vld [vmem:[#allocation3 + $0xa8] sm:$0xff]  ;;  %v318_v29 = vld [vmem:[#allocation3 + $0xe0] sm:$0xff] }
  0xf7   : > { %4353 = vmatprep.subr.bf16.mxu1 %v4352_v41  ;;  %v1377_v41 = vrot.slane %v5464_v56, 2  ;;  %v315_v28 = vld [vmem:[#allocation3 + $0xc8] sm:$0xff]  ;;  %v4094_v35 = vpack.c.bf16 %v311_v26, %v308_v25  ;;  %v345_v25 = vld [vmem:[#allocation3 + $0x1b8] sm:$0xff]  ;;  %v348_v26 = vld [vmem:[#allocation3 + $0x1d0] sm:$0xff] }
  0xf9   : > { %4035 = vmatpush3.bf16.msra.mxu0 %v4034_v48  ;;  %v1329_v48 = vld [vmem:[#allocation3 + $0xc40] sm:$0xff]  ;;  %v5513_v60 = vsel %vm1375_vm1, %v1376_v40, %v1377_v41  ;;  %v5524_v16 = vsel %vm1375_vm1, %v1377_v41, %v1385_v1  ;;  %v324_v40 = vld [vmem:[#allocation3 + $0x110] sm:$0xff] }
  0xfa   : > { %4355 = vmatpush3.bf16.msra.mxu1 %v4354_v50  ;;  %4037 = vmatprep.subr.bf16.mxu0 %v4036_v52  ;;  %v1332_v50 = vld [vmem:[#allocation3 + $0xc58] sm:$0xff]  ;;  %v4082_v52 = vpack.c.bf16 %v293_v58, %v290_v39  ;;  %v4384_v39 = vpack.c.bf16 %v1350_v34, %v1347_v32  ;;  %v1353_v41 = vld [vmem:[#allocation3 + $0xd00] sm:$0xff]  ;;  %v344_v32 = vld [vmem:[#allocation3 + $0x1b0] sm:$0xff] }
  0xfb   : > { %4357 = vmatprep.subr.bf16.mxu1 %v4356_v61  ;;  %v4084_v61 = vpack.c.bf16 %v300_v46, %v297_v45  ;;  %v4372_v2 = vpack.c.bf16 %v1332_v50, %v1329_v48  ;;  %v321_v58 = vld [vmem:[#allocation3 + $0xf8] sm:$0xff]  ;;  %v320_v46 = vld [vmem:[#allocation3 + $0xf0] sm:$0xff]  ;;  %v4388_v47 = vpack.c.bf16 %v1356_v43, %v1353_v41  ;;  %v327_v48 = vld [vmem:[#allocation3 + $0x128] sm:$0xff] }
  0xfc   : > { %v4100_v45 = vpack.c.bf16 %v324_v40, %v321_v58  ;;  %v330_v50 = vld [vmem:[#allocation3 + $0x140] sm:$0xff]  ;;  %v347_v34 = vld [vmem:[#allocation3 + $0x1c8] sm:$0xff]  ;;  %v353_v58 = vld [vmem:[#allocation3 + $0x1f8] sm:$0xff] }
  0xfd   : > { %4039 = vmatpush3.bf16.msra.mxu0 %v4038_v5  ;;  %v306_v5 = vld [vmem:[#allocation3 + $0x80] sm:$0xff]  ;;  %v357_v40 = vld [vmem:[#allocation3 + $0x218] sm:$0xff]  ;;  %v356_v43 = vld [vmem:[#allocation3 + $0x210] sm:$0xff] }
  0xfe   : > { %4359 = vmatpush3.bf16.msra.mxu1 %v4358_v6  ;;  %4041 = vmatprep.subr.bf16.mxu0 %v4040_v8  ;;  %v1335_v6 = vld [vmem:[#allocation3 + $0xc70] sm:$0xff]  ;;  %v1338_v8 = vld [vmem:[#allocation3 + $0xc88] sm:$0xff]  ;;  %v4088_v13 = vpack.c.bf16 %v306_v5, %v303_v4  ;;  %v1365_v5 = vld [vmem:[#allocation3 + $0xd60] sm:$0xff]  ;;  %v4124_v41 = vpack.c.bf16 %v360_v53, %v357_v40 }
  0xff   : > { %4361 = vmatprep.subr.bf16.mxu1 %v4360_v12  ;;  %v5521_v12 = vsel %vm1375_vm1, %v1380_v51, %v1387_v55  ;;  %v4376_v17 = vpack.c.bf16 %v1338_v8, %v1335_v6  ;;  %v4090_v51 = vpack.c.bf16 %v305_v15, %v302_v14  ;;  %v1362_v55 = vld [vmem:[#allocation3 + $0xd48] sm:$0xff]  ;;  %v336_v4 = vld [vmem:[#allocation3 + $0x170] sm:$0xff]  ;;  %v1368_v6 = vld [vmem:[#allocation3 + $0xd78] sm:$0xff]  ;;  %v4106_v8 = vpack.c.bf16 %v329_v0, %v326_v63 }
 0x100   : > { %v4396_v14 = vpack.c.bf16 %v1368_v6, %v1365_v5  ;;  %v339_v15 = vld [vmem:[#allocation3 + $0x188] sm:$0xff]  ;;  %v368_v63 = vld [vmem:[#allocation3 + $0x270] sm:$0xff]  ;;  %v374_v6 = vld [vmem:[#allocation3 + $0x2a0] sm:$0xff] }
 0x101   : > { %4043 = vmatpush3.bf16.msra.mxu0 %v4042_v19  ;;  %v309_v19 = vld [vmem:[#allocation3 + $0x98] sm:$0xff]  ;;  %v371_v0 = vld [vmem:[#allocation3 + $0x288] sm:$0xff] }
 0x102   : > { %4363 = vmatpush3.bf16.msra.mxu1 %v4362_v22  ;;  %4045 = vmatprep.subr.bf16.mxu0 %v4044_v23  ;;  %v1341_v22 = vld [vmem:[#allocation3 + $0xca0] sm:$0xff]  ;;  %v1344_v23 = vld [vmem:[#allocation3 + $0xcb8] sm:$0xff]  ;;  %v4092_v24 = vpack.c.bf16 %v312_v20, %v309_v19 }
 0x103   : > { %4365 = vmatprep.subr.bf16.mxu1 %v4364_v27  ;;  %v4380_v27 = vpack.c.bf16 %v1344_v23, %v1341_v22  ;;  %v1223_v19 = vld [vmem:[%s5431_s14 + $0x40] sm:$0x3] }
 0x104   : > { %v1389_v23 = vrot.slane %v1223_v19, 2  ;;  %v387_v19 = vld [vmem:[#allocation3 + $0x308] sm:$0xff]  ;;  %v401_v40 = vld [vmem:[#allocation3 + $0x378] sm:$0xff] }
 0x105   : > { %4047 = vmatpush3.bf16.msra.mxu0 %v4046_v36  ;;  %v4096_v36 = vpack.c.bf16 %v318_v29, %v315_v28  ;;  %v4116_v29 = vpack.c.bf16 %v348_v26, %v345_v25  ;;  %v393_v25 = vld [vmem:[#allocation3 + $0x338] sm:$0xff]  ;;  %v396_v26 = vld [vmem:[#allocation3 + $0x350] sm:$0xff] }
 0x106   : > { %4367 = vmatpush3.bf16.msra.mxu1 %v4366_v37  ;;  %4081 = vmatprep.subr.bf16.mxu0 %v4080_v38  ;;  %v314_v37 = vld [vmem:[#allocation3 + $0xc0] sm:$0xff]  ;;  %v317_v38 = vld [vmem:[#allocation3 + $0xd8] sm:$0xff]  ;;  %v5541_v28 = vsel %vm1375_vm1, %v1383_v10, %v1389_v23 }
 0x107   : > { %4369 = vmatprep.subr.bf16.mxu1 %v4368_v44  ;;  %v405_v53 = vld [vmem:[#allocation3 + $0x398] sm:$0xff] }
 0x108   : > { %829 = vmatmul.mubr.f32.vlgmr.msra.gmra.mrb[4].mxu0 %v5470_v18 }
 0x109   : > { %4083 = vmatpush1.bf16.msra.mxu0 %v4082_v52  ;;  %1616 = vmatmul.mubr.f32.vlgmr.msra.gmra.mrb[6].mxu1 %v5513_v60  ;;  %v1359_v52 = vld [vmem:[#allocation3 + $0xd30] sm:$0xff] }
 0x10a   : > { %4371 = vmatpush3.bf16.msra.mxu1 %v4368_v44  ;;  %4085 = vmatprep.subr.bf16.mxu0 %v4084_v61  ;;  %v4098_v44 = vpack.c.bf16 %v317_v38, %v314_v37  ;;  %v4104_v61 = vpack.c.bf16 %v330_v50, %v327_v48  ;;  %v4392_v1 = vpack.c.bf16 %v1362_v55, %v1359_v52  ;;  %v362_v48 = vld [vmem:[#allocation3 + $0x240] sm:$0xff]  ;;  %v365_v50 = vld [vmem:[#allocation3 + $0x258] sm:$0xff]  ;;  %v372_v55 = vld [vmem:[#allocation3 + $0x290] sm:$0xff] }
 0x10b   : > { %4373 = vmatprep.subr.bf16.mxu1 %v4372_v2  ;;  %833 = vmatprep.mubr.f32.mxu0 %v5479_v31  ;;  %v4118_v37 = vpack.c.bf16 %v347_v34, %v344_v32  ;;  %v369_v52 = vld [vmem:[#allocation3 + $0x278] sm:$0xff]  ;;  %v392_v32 = vld [vmem:[#allocation3 + $0x330] sm:$0xff]  ;;  %v395_v34 = vld [vmem:[#allocation3 + $0x348] sm:$0xff] }
 0x10c   : > { %834 = vmatmul.mubr.f32.gmra.mrb[6].mxu0 %v5483_v33  ;;  %1620 = vmatprep.mubr.f32.mxu1 %v5521_v12 }
 0x10d   : > { %4087 = vmatpush1.bf16.msra.mxu0 %v4086_v11  ;;  %1621 = vmatmul.mubr.f32.gmra.mrb[8].mxu1 %v5524_v16  ;;  %v332_v11 = vld [vmem:[#allocation3 + $0x150] sm:$0xff] }
 0x10e   : > { %4375 = vmatpush3.bf16.msra.mxu1 %v4372_v2  ;;  %4089 = vmatprep.subr.bf16.mxu0 %v4088_v13  ;;  %v333_v2 = vld [vmem:[#allocation3 + $0x158] sm:$0xff]  ;;  %v335_v13 = vld [vmem:[#allocation3 + $0x168] sm:$0xff] }
 0x10f   : > { %4377 = vmatprep.subr.bf16.mxu1 %v4376_v17  ;;  %3812 = vmatprep.mubr.f32.mxu1 %v5532_v54  ;;  %v4108_v9 = vpack.c.bf16 %v336_v4, %v333_v2  ;;  %v4110_v20 = vpack.c.bf16 %v335_v13, %v332_v11  ;;  %v378_v2 = vld [vmem:[#allocation3 + $0x2c0] sm:$0xff]  ;;  %v4134_v4 = vpack.c.bf16 %v371_v0, %v368_v63  ;;  %v384_v11 = vld [vmem:[#allocation3 + $0x2f0] sm:$0xff]  ;;  %v419_v63 = vld [vmem:[#allocation3 + $0x408] sm:$0xff] }
 0x110   : > { %978 = vmatprep.mubr.f32.mxu0 %v5453_v59  ;;  %v323_v59 = vld [vmem:[#allocation3 + $0x108] sm:$0xff] }
 0x111   : > { %4091 = vmatpush1.bf16.msra.mxu0 %v4090_v51  ;;  %v4102_v57 = vpack.c.bf16 %v323_v59, %v320_v46  ;;  %v338_v51 = vld [vmem:[#allocation3 + $0x180] sm:$0xff]  ;;  %v423_v0 = vld [vmem:[#allocation3 + $0x428] sm:$0xff] }
 0x112   : > { %4379 = vmatpush3.bf16.msra.mxu1 %v4376_v17  ;;  %4093 = vmatprep.subr.bf16.mxu0 %v4092_v24  ;;  %v342_v17 = vld [vmem:[#allocation3 + $0x1a0] sm:$0xff]  ;;  %v341_v24 = vld [vmem:[#allocation3 + $0x198] sm:$0xff] }
 0x113   : > { %4381 = vmatprep.subr.bf16.mxu1 %v4380_v27  ;;  %v4112_v22 = vpack.c.bf16 %v342_v17, %v339_v15  ;;  %v366_v46 = vld [vmem:[#allocation3 + $0x260] sm:$0xff]  ;;  %v380_v15 = vld [vmem:[#allocation3 + $0x2d0] sm:$0xff]  ;;  %v383_v17 = vld [vmem:[#allocation3 + $0x2e8] sm:$0xff] }
 0x115   : > { %4095 = vmatpush1.bf16.msra.mxu0 %v4094_v35  ;;  %v351_v35 = vld [vmem:[#allocation3 + $0x1e8] sm:$0xff] }
 0x116   : > { %4383 = vmatpush3.bf16.msra.mxu1 %v4380_v27  ;;  %4097 = vmatprep.subr.bf16.mxu0 %v4096_v36  ;;  %v4114_v27 = vpack.c.bf16 %v341_v24, %v338_v51  ;;  %v354_v36 = vld [vmem:[#allocation3 + $0x200] sm:$0xff]  ;;  %v389_v24 = vld [vmem:[#allocation3 + $0x318] sm:$0xff] }
 0x117   : > { %4385 = vmatprep.subr.bf16.mxu1 %v4384_v39  ;;  %v4120_v38 = vpack.c.bf16 %v354_v36, %v351_v35  ;;  %v386_v51 = vld [vmem:[#allocation3 + $0x300] sm:$0xff]  ;;  %v399_v35 = vld [vmem:[#allocation3 + $0x368] sm:$0xff] }
 0x118   : > { %v402_v36 = vld [vmem:[#allocation3 + $0x380] sm:$0xff] }
 0x119   : > { %4099 = vmatpush1.bf16.msra.mxu0 %v4098_v44  ;;  %v359_v44 = vld [vmem:[#allocation3 + $0x228] sm:$0xff] }
 0x11a   : > { %4387 = vmatpush3.bf16.msra.mxu1 %v4384_v39  ;;  %4101 = vmatprep.subr.bf16.mxu0 %v4100_v45  ;;  %v350_v39 = vld [vmem:[#allocation3 + $0x1e0] sm:$0xff]  ;;  %v363_v45 = vld [vmem:[#allocation3 + $0x248] sm:$0xff]  ;;  %v4126_v59 = vpack.c.bf16 %v359_v44, %v356_v43  ;;  %v404_v44 = vld [vmem:[#allocation3 + $0x390] sm:$0xff] }
 0x11b   : > { %4389 = vmatprep.subr.bf16.mxu1 %v4388_v47  ;;  %v4122_v10 = vpack.c.bf16 %v353_v58, %v350_v39  ;;  %v4152_v39 = vpack.c.bf16 %v402_v36, %v399_v35  ;;  %v398_v58 = vld [vmem:[#allocation3 + $0x360] sm:$0xff]  ;;  %v2047_v35 = vld [vmem:[#allocation8 + $0x7c8] sm:$0xff] }
 0x11c   : > { %v2051_v36 = vld [vmem:[#allocation8 + $0x7e8] sm:$0xff] }
 0x11d   : > { %4103 = vmatpush1.bf16.msra.mxu0 %v4102_v57  ;;  %v4130_v57 = vpack.c.bf16 %v365_v50, %v362_v48  ;;  %v410_v48 = vld [vmem:[#allocation3 + $0x3c0] sm:$0xff]  ;;  %v413_v50 = vld [vmem:[#allocation3 + $0x3d8] sm:$0xff] }
 0x11e   : > { %4391 = vmatpush3.bf16.msra.mxu1 %v4388_v47  ;;  %4105 = vmatprep.subr.bf16.mxu0 %v4104_v61  ;;  %v4128_v47 = vpack.c.bf16 %v366_v46, %v363_v45  ;;  %v4132_v61 = vpack.c.bf16 %v372_v55, %v369_v52  ;;  %v411_v45 = vld [vmem:[#allocation3 + $0x3c8] sm:$0xff]  ;;  %v414_v46 = vld [vmem:[#allocation3 + $0x3e0] sm:$0xff]  ;;  %v417_v52 = vld [vmem:[#allocation3 + $0x3f8] sm:$0xff] }
 0x11f   : > { %4393 = vmatprep.subr.bf16.mxu1 %v4392_v1  ;;  %v420_v55 = vld [vmem:[#allocation3 + $0x410] sm:$0xff] }
 0x121   : > { %4107 = vmatpush1.bf16.msra.mxu0 %v4106_v8  ;;  %v377_v8 = vld [vmem:[#allocation3 + $0x2b8] sm:$0xff] }
 0x122   : > { %4395 = vmatpush3.bf16.msra.mxu1 %v4392_v1  ;;  %4109 = vmatprep.subr.bf16.mxu0 %v4108_v9  ;;  %v375_v1 = vld [vmem:[#allocation3 + $0x2a8] sm:$0xff]  ;;  %v381_v9 = vld [vmem:[#allocation3 + $0x2d8] sm:$0xff]  ;;  %v4138_v13 = vpack.c.bf16 %v377_v8, %v374_v6 }
 0x123   : > { %4397 = vmatprep.subr.bf16.mxu1 %v4396_v14  ;;  %v4136_v5 = vpack.c.bf16 %v378_v2, %v375_v1  ;;  %v426_v1 = vld [vmem:[#allocation3 + $0x440] sm:$0xff]  ;;  %v425_v6 = vld [vmem:[#allocation3 + $0x438] sm:$0xff] }
 0x124   : > { %v429_v8 = vld [vmem:[#allocation3 + $0x458] sm:$0xff] }
 0x125   : > { %4111 = vmatpush1.bf16.msra.mxu0 %v4110_v20  ;;  %v390_v20 = vld [vmem:[#allocation3 + $0x320] sm:$0xff] }
 0x126   : > { %4399 = vmatpush3.bf16.msra.mxu1 %v4396_v14  ;;  %4113 = vmatprep.subr.bf16.mxu0 %v4112_v22  ;;  %v4140_v14 = vpack.c.bf16 %v384_v11, %v381_v9  ;;  %v4142_v22 = vpack.c.bf16 %v383_v17, %v380_v15  ;;  %v4144_v23 = vpack.c.bf16 %v390_v20, %v387_v19  ;;  %v432_v9 = vld [vmem:[#allocation3 + $0x470] sm:$0xff]  ;;  %v431_v15 = vld [vmem:[#allocation3 + $0x468] sm:$0xff]  ;;  %v1229_v19 = vld [vmem:[#allocation3 + $0x920] sm:$0xff] }
 0x127   : > { %v1226_v17 = vld [vmem:[#allocation3 + $0x908] sm:$0xff] }
 0x128   : > { %v2039_v20 = vld [vmem:[#allocation8 + $0x788] sm:$0xff] }
 0x129   : > { %3813 = vmatmul.mubr.f32.vlgmr.msra.gmra.mrb[0].mxu1 %v5541_v28  ;;  %4115 = vmatpush1.bf16.msra.mxu0 %v4114_v27  ;;  %v4146_v27 = vpack.c.bf16 %v389_v24, %v386_v51  ;;  %v2041_v24 = vld [vmem:[#allocation8 + $0x798] sm:$0xff] }
 0x12a   : > { %4117 = vmatprep.subr.bf16.mxu0 %v4116_v29  ;;  %2227 = vmatprep.mubr.f32.mxu1 %v5224_v49  ;;  %v4148_v29 = vpack.c.bf16 %v396_v26, %v393_v25  ;;  %v2045_v25 = vld [vmem:[#allocation8 + $0x7b8] sm:$0xff]  ;;  %v2048_v26 = vld [vmem:[#allocation8 + $0x7d0] sm:$0xff] }
 0x12d   : > { %4119 = vmatpush1.bf16.msra.mxu0 %v4118_v37  ;;  %v4150_v37 = vpack.c.bf16 %v395_v34, %v392_v32  ;;  %v4468_v32 = vpack.c.bf16 %v2048_v26, %v2045_v25  ;;  %v2044_v34 = vld [vmem:[#allocation8 + $0x7b0] sm:$0xff] }
 0x12e   : > { %4121 = vmatprep.subr.bf16.mxu0 %v4120_v38  ;;  %v5028_v38 = vld [vmem:[%s5431_s14 + $0x20] sm:$0xff] }
 0x131   : > { %4123 = vmatpush1.bf16.msra.mxu0 %v4122_v10  ;;  %v408_v10 = vld [vmem:[#allocation3 + $0x3b0] sm:$0xff] }
 0x132   : > { %4125 = vmatprep.subr.bf16.mxu0 %v4124_v41  ;;  %v4154_v41 = vpack.c.bf16 %v401_v40, %v398_v58  ;;  %v4156_v43 = vpack.c.bf16 %v408_v10, %v405_v53  ;;  %v2054_v58 = vld [vmem:[#allocation8 + $0x800] sm:$0xff]  ;;  %v1232_v40 = vld [vmem:[#allocation3 + $0x938] sm:$0xff]  ;;  %v1235_v53 = vld [vmem:[#allocation3 + $0x950] sm:$0xff]  ;;  %v4470_v10 = vpack.c.bf16 %v2047_v35, %v2044_v34 }
 0x133   : > { %v1249_v35 = vld [vmem:[#allocation3 + $0x9c0] sm:$0xff] }
 0x135   : > { %4127 = vmatpush1.bf16.msra.mxu0 %v4126_v59 }
 0x136   : > { %4129 = vmatprep.subr.bf16.mxu0 %v4128_v47  ;;  %v4160_v47 = vpack.c.bf16 %v414_v46, %v411_v45  ;;  %v2057_v45 = vld [vmem:[#allocation8 + $0x818] sm:$0xff]  ;;  %v2060_v46 = vld [vmem:[#allocation8 + $0x830] sm:$0xff] }
 0x139   : > { %4131 = vmatpush1.bf16.msra.mxu0 %v4130_v57  ;;  %v4164_v57 = vpack.c.bf16 %v420_v55, %v417_v52  ;;  %v1241_v52 = vld [vmem:[#allocation3 + $0x980] sm:$0xff] }
 0x13a   : > { %4133 = vmatprep.subr.bf16.mxu0 %v4132_v61  ;;  %v416_v61 = vld [vmem:[#allocation3 + $0x3f0] sm:$0xff] }
 0x13b   : > { %v4166_v2 = vpack.c.bf16 %v419_v63, %v416_v61  ;;  %v2059_v61 = vld [vmem:[#allocation8 + $0x828] sm:$0xff] }
 0x13d   : > { %4135 = vmatpush1.bf16.msra.mxu0 %v4134_v4  ;;  %v4168_v4 = vpack.c.bf16 %v426_v1, %v423_v0  ;;  %v2063_v0 = vld [vmem:[#allocation8 + $0x848] sm:$0xff]  ;;  %v2066_v1 = vld [vmem:[#allocation8 + $0x860] sm:$0xff] }
 0x13e   : > { %4137 = vmatprep.subr.bf16.mxu0 %v4136_v5  ;;  %v422_v5 = vld [vmem:[#allocation3 + $0x420] sm:$0xff] }
 0x13f   : > { %v4170_v11 = vpack.c.bf16 %v425_v6, %v422_v5  ;;  %v1240_v5 = vld [vmem:[#allocation3 + $0x978] sm:$0xff] }
 0x140   : > { %v1244_v6 = vld [vmem:[#allocation3 + $0x998] sm:$0xff] }
 0x141   : > { %4139 = vmatpush1.bf16.msra.mxu0 %v4138_v13  ;;  %v428_v13 = vld [vmem:[#allocation3 + $0x450] sm:$0xff] }
 0x142   : > { %4141 = vmatprep.subr.bf16.mxu0 %v4140_v14  ;;  %v4172_v14 = vpack.c.bf16 %v432_v9, %v429_v8  ;;  %v1247_v8 = vld [vmem:[#allocation3 + $0x9b0] sm:$0xff] }
 0x145   : > { %4143 = vmatpush1.bf16.msra.mxu0 %v4142_v22  ;;  %v2042_v22 = vld [vmem:[#allocation8 + $0x7a0] sm:$0xff] }
 0x146   : > { %4145 = vmatprep.subr.bf16.mxu0 %v4144_v23  ;;  %v2038_v23 = vld [vmem:[#allocation8 + $0x780] sm:$0xff]  ;;  %v4464_v51 = vpack.c.bf16 %v2042_v22, %v2039_v20  ;;  %v4252_v20 = vpack.c.bf16 %v1247_v8, %v1244_v6  ;;  %v1243_v22 = vld [vmem:[#allocation3 + $0x990] sm:$0xff] }
 0x147   : > { %v2080_v6 = vld [vmem:[#allocation8 + $0x8d0] sm:$0xff]  ;;  %v2083_v8 = vld [vmem:[#allocation8 + $0x8e8] sm:$0xff] }
 0x148   : > { %979 = vmatmul.mubr.f32.vlgmr.msra.gmra.mrb[0].mxu0 %v5473_v21  ;;  %v407_v21 = vld [vmem:[#allocation3 + $0x3a8] sm:$0xff]  ;;  %4465 = vmatprep.subr.bf16.mxu1 %v4464_v51 }
 0x149   : > { %4147 = vmatpush1.bf16.msra.mxu0 %v4146_v27  ;;  %984 = vmatprep.mubr.f32.mxu0 %v5028_v38  ;;  %v4158_v59 = vpack.c.bf16 %v407_v21, %v404_v44  ;;  %v4174_v27 = vpack.c.bf16 %v431_v15, %v428_v13  ;;  %v1225_v38 = vld [vmem:[#allocation3 + $0x900] sm:$0xff]  ;;  %v1250_v51 = vld [vmem:[#allocation3 + $0x9c8] sm:$0xff] }
 0x14a   : > { %4149 = vmatprep.subr.bf16.mxu0 %v4148_v29  ;;  %v4466_v29 = vpack.c.bf16 %v2041_v24, %v2038_v23  ;;  %v2053_v44 = vld [vmem:[#allocation8 + $0x7f8] sm:$0xff]  ;;  %v2062_v13 = vld [vmem:[#allocation8 + $0x840] sm:$0xff] }
 0x14b   : > { %v1246_v23 = vld [vmem:[#allocation3 + $0x9a8] sm:$0xff]  ;;  %v1253_v24 = vld [vmem:[#allocation3 + $0x9e0] sm:$0xff] }
 0x14c   : > { %985 = vmatmul.mubr.f32.gmra.mrb[2].mxu0 %v5464_v56  ;;  %v4162_v56 = vpack.c.bf16 %v413_v50, %v410_v48  ;;  %4467 = vmatpush1.bf16.msra.mxu1 %v4466_v29  ;;  %v1234_v48 = vld [vmem:[#allocation3 + $0x948] sm:$0xff]  ;;  %v4256_v34 = vpack.c.bf16 %v1253_v24, %v1250_v51  ;;  %v1283_v51 = vld [vmem:[#allocation3 + $0xad0] sm:$0xff] }
 0x14d   : > { %4151 = vmatpush1.bf16.msra.mxu0 %v4150_v37  ;;  %1055 = vmatprep.mubr.f32.mxu0 %v5224_v49  ;;  %v4240_v37 = vpack.c.bf16 %v1229_v19, %v1226_v17  ;;  %v1238_v50 = vld [vmem:[#allocation3 + $0x968] sm:$0xff]  ;;  %v2069_v17 = vld [vmem:[#allocation8 + $0x878] sm:$0xff]  ;;  %v2072_v19 = vld [vmem:[#allocation8 + $0x890] sm:$0xff] }
 0x14e   : > { %4153 = vmatprep.subr.bf16.mxu0 %v4152_v39  ;;  %v1228_v39 = vld [vmem:[#allocation3 + $0x918] sm:$0xff]  ;;  %4469 = vmatprep.subr.bf16.mxu1 %v4468_v32  ;;  %v4484_v26 = vpack.c.bf16 %v2072_v19, %v2069_v17  ;;  %v2071_v29 = vld [vmem:[#allocation8 + $0x888] sm:$0xff]  ;;  %v4254_v32 = vpack.c.bf16 %v1246_v23, %v1243_v22  ;;  %v1273_v19 = vld [vmem:[#allocation3 + $0xa80] sm:$0xff] }
 0x14f   : > { %v4242_v21 = vpack.c.bf16 %v1228_v39, %v1225_v38  ;;  %v1280_v23 = vld [vmem:[#allocation3 + $0xab8] sm:$0xff] }
 0x150   : > { %4471 = vmatpush1.bf16.msra.mxu1 %v4470_v10  ;;  %v1262_v10 = vld [vmem:[#allocation3 + $0xa28] sm:$0xff] }
 0x151   : > { %4155 = vmatpush1.bf16.msra.mxu0 %v4154_v41  ;;  %v4472_v41 = vpack.c.bf16 %v2054_v58, %v2051_v36  ;;  %v1256_v36 = vld [vmem:[#allocation3 + $0x9f8] sm:$0xff] }
 0x152   : > { %4157 = vmatprep.subr.bf16.mxu0 %v4156_v43  ;;  %v2050_v43 = vld [vmem:[#allocation8 + $0x7e0] sm:$0xff] }
 0x153   : > { %v4474_v55 = vpack.c.bf16 %v2053_v44, %v2050_v43  ;;  %4473 = vmatprep.subr.bf16.mxu1 %v4472_v41  ;;  %v1265_v41 = vld [vmem:[#allocation3 + $0xa40] sm:$0xff] }
 0x154   : > { %v1261_v44 = vld [vmem:[#allocation3 + $0xa20] sm:$0xff] }
 0x155   : > { %4159 = vmatpush1.bf16.msra.mxu0 %v4158_v59  ;;  %v4244_v59 = vpack.c.bf16 %v1235_v53, %v1232_v40  ;;  %4475 = vmatpush1.bf16.msra.mxu1 %v4474_v55  ;;  %v1255_v40 = vld [vmem:[#allocation3 + $0x9f0] sm:$0xff]  ;;  %v1258_v53 = vld [vmem:[#allocation3 + $0xa08] sm:$0xff] }
 0x156   : > { %4161 = vmatprep.subr.bf16.mxu0 %v4160_v47  ;;  %v1231_v47 = vld [vmem:[#allocation3 + $0x930] sm:$0xff]  ;;  %v4262_v43 = vpack.c.bf16 %v1258_v53, %v1255_v40  ;;  %v1294_v53 = vld [vmem:[#allocation3 + $0xb28] sm:$0xff] }
 0x157   : > { %v4246_v63 = vpack.c.bf16 %v1234_v48, %v1231_v47  ;;  %v2074_v48 = vld [vmem:[#allocation8 + $0x8a0] sm:$0xff]  ;;  %v1271_v55 = vld [vmem:[#allocation3 + $0xa70] sm:$0xff] }
 0x158   : > { %v1291_v40 = vld [vmem:[#allocation3 + $0xb10] sm:$0xff] }
 0x159   : > { %4163 = vmatpush1.bf16.msra.mxu0 %v4162_v56  ;;  %v4476_v56 = vpack.c.bf16 %v2060_v46, %v2057_v45  ;;  %v2078_v45 = vld [vmem:[#allocation8 + $0x8c0] sm:$0xff]  ;;  %v4264_v46 = vpack.c.bf16 %v1265_v41, %v1262_v10 }
 0x15a   : > { %4165 = vmatprep.subr.bf16.mxu0 %v4164_v57  ;;  %v2056_v57 = vld [vmem:[#allocation8 + $0x810] sm:$0xff]  ;;  %v1298_v10 = vld [vmem:[#allocation3 + $0xb48] sm:$0xff]  ;;  %v1301_v41 = vld [vmem:[#allocation3 + $0xb60] sm:$0xff] }
 0x15b   : > { %v4478_v9 = vpack.c.bf16 %v2059_v61, %v2056_v57  ;;  %4477 = vmatprep.subr.bf16.mxu1 %v4476_v56  ;;  %v1267_v61 = vld [vmem:[#allocation3 + $0xa50] sm:$0xff] }
 0x15d   : > { %4167 = vmatpush1.bf16.msra.mxu0 %v4166_v2  ;;  %v4248_v2 = vpack.c.bf16 %v1241_v52, %v1238_v50  ;;  %4479 = vmatpush1.bf16.msra.mxu1 %v4478_v9  ;;  %v2077_v50 = vld [vmem:[#allocation8 + $0x8b8] sm:$0xff]  ;;  %v1274_v9 = vld [vmem:[#allocation3 + $0xa88] sm:$0xff] }
 0x15e   : > { %4169 = vmatprep.subr.bf16.mxu0 %v4168_v4  ;;  %v1237_v4 = vld [vmem:[#allocation3 + $0x960] sm:$0xff]  ;;  %v1268_v52 = vld [vmem:[#allocation3 + $0xa58] sm:$0xff]  ;;  %v4490_v56 = vpack.c.bf16 %v2077_v50, %v2074_v48  ;;  %v1303_v50 = vld [vmem:[#allocation3 + $0xb70] sm:$0xff] }
 0x15f   : > { %v4250_v15 = vpack.c.bf16 %v1240_v5, %v1237_v4  ;;  %v1270_v4 = vld [vmem:[#allocation3 + $0xa68] sm:$0xff] }
 0x161   : > { %4171 = vmatpush1.bf16.msra.mxu0 %v4170_v11  ;;  %v4480_v11 = vpack.c.bf16 %v2066_v1, %v2063_v0  ;;  %v2081_v0 = vld [vmem:[#allocation8 + $0x8d8] sm:$0xff]  ;;  %v2084_v1 = vld [vmem:[#allocation8 + $0x8f0] sm:$0xff] }
 0x162   : > { %4173 = vmatprep.subr.bf16.mxu0 %v4172_v14  ;;  %v2065_v14 = vld [vmem:[#allocation8 + $0x858] sm:$0xff]  ;;  %v4492_v5 = vpack.c.bf16 %v2084_v1, %v2081_v0 }
 0x163   : > { %v4482_v25 = vpack.c.bf16 %v2065_v14, %v2062_v13  ;;  %4481 = vmatprep.subr.bf16.mxu1 %v4480_v11  ;;  %v4494_v11 = vpack.c.bf16 %v2083_v8, %v2080_v6  ;;  %v4270_v13 = vpack.c.bf16 %v1270_v4, %v1267_v61  ;;  %v2040_v14 = vld [vmem:[#allocation8 + $0x790] sm:$0xff]  ;;  %v1309_v0 = vld [vmem:[#allocation3 + $0xba0] sm:$0xff] }
 0x164   : > { %v1312_v1 = vld [vmem:[#allocation3 + $0xbb8] sm:$0xff]  ;;  %v1319_v4 = vld [vmem:[#allocation3 + $0xbf0] sm:$0xff] }
 0x165   : > { %4175 = vmatpush1.bf16.msra.mxu0 %v4174_v27  ;;  %v2068_v27 = vld [vmem:[#allocation8 + $0x870] sm:$0xff]  ;;  %4483 = vmatpush1.bf16.msra.mxu1 %v4482_v25  ;;  %v4276_v25 = vpack.c.bf16 %v1283_v51, %v1280_v23  ;;  %v4298_v6 = vpack.c.bf16 %v1312_v1, %v1309_v0  ;;  %v1321_v51 = vld [vmem:[#allocation3 + $0xc00] sm:$0xff] }
 0x166   : > { %4241 = vmatprep.subr.bf16.mxu0 %v4240_v37  ;;  %v1259_v37 = vld [vmem:[#allocation3 + $0xa10] sm:$0xff]  ;;  %v4486_v38 = vpack.c.bf16 %v2071_v29, %v2068_v27  ;;  %4485 = vmatprep.subr.bf16.mxu1 %v4484_v26  ;;  %v1282_v27 = vld [vmem:[#allocation3 + $0xac8] sm:$0xff]  ;;  %v1357_v1 = vld [vmem:[#allocation3 + $0xd20] sm:$0xff] }
 0x167   : > { %v4260_v58 = vpack.c.bf16 %v1259_v37, %v1256_v36  ;;  %v1279_v26 = vld [vmem:[#allocation3 + $0xab0] sm:$0xff]  ;;  %v1286_v29 = vld [vmem:[#allocation3 + $0xae8] sm:$0xff]  ;;  %v1288_v36 = vld [vmem:[#allocation3 + $0xaf8] sm:$0xff] }
 0x168   : > { %1056 = vmatmul.mubr.f32.vlgmr.msra.gmra.mrb[0].mxu0 %v5490_v42  ;;  %v5029_v42 = vld [vmem:[%s5431_s14 + $0x28] sm:$0xff]  ;;  %v1292_v37 = vld [vmem:[#allocation3 + $0xb18] sm:$0xff] }
 0x169   : > { %4243 = vmatpush1.bf16.msra.mxu0 %v4242_v21  ;;  %1061 = vmatprep.mubr.f32.mxu0 %v5224_v49  ;;  %v2075_v21 = vld [vmem:[#allocation8 + $0x8a8] sm:$0xff] }
 0x16a   : > { %4245 = vmatprep.subr.bf16.mxu0 %v4244_v59  ;;  %4487 = vmatpush1.bf16.msra.mxu1 %v4486_v38  ;;  %v1264_v59 = vld [vmem:[#allocation3 + $0xa38] sm:$0xff]  ;;  %v4488_v47 = vpack.c.bf16 %v2078_v45, %v2075_v21  ;;  %v1295_v38 = vld [vmem:[#allocation3 + $0xb30] sm:$0xff]  ;;  %v1297_v21 = vld [vmem:[#allocation3 + $0xb40] sm:$0xff] }
 0x16b   : > { %v4266_v57 = vpack.c.bf16 %v1264_v59, %v1261_v44  ;;  %v4288_v44 = vpack.c.bf16 %v1301_v41, %v1298_v10  ;;  %v1300_v45 = vld [vmem:[#allocation3 + $0xb58] sm:$0xff]  ;;  %v1307_v59 = vld [vmem:[#allocation3 + $0xb90] sm:$0xff] }
 0x16c   : > { %1062 = vmatmul.mubr.f32.gmra.mrb[2].mxu0 %v5029_v42  ;;  %4489 = vmatprep.subr.bf16.mxu1 %v4488_v47  ;;  %v1277_v42 = vld [vmem:[#allocation3 + $0xaa0] sm:$0xff]  ;;  %v4290_v47 = vpack.c.bf16 %v1300_v45, %v1297_v21 }
 0x16d   : > { %4247 = vmatpush1.bf16.msra.mxu0 %v4246_v63  ;;  %1461 = vmatprep.mubr.f32.mxu0 %v5501_v7  ;;  %v1252_v7 = vld [vmem:[#allocation3 + $0x9d8] sm:$0xff]  ;;  %v1709_v63 = vlaneseq  ;;  %v4272_v17 = vpack.c.bf16 %v1277_v42, %v1274_v9  ;;  %v1315_v42 = vld [vmem:[#allocation3 + $0xbd0] sm:$0xff]  ;;  %v1349_v21 = vld [vmem:[#allocation3 + $0xce0] sm:$0xff] }
 0x16e   : > { %4249 = vmatprep.subr.bf16.mxu0 %v4248_v2  ;;  %v4258_v39 = vpack.c.bf16 %v1252_v7, %v1249_v35  ;;  %4491 = vmatpush1.bf16.msra.mxu1 %v4490_v56  ;;  %v4268_v2 = vpack.c.bf16 %v1271_v55, %v1268_v52  ;;  %v1285_v7 = vld [vmem:[#allocation3 + $0xae0] sm:$0xff]  ;;  %v1306_v52 = vld [vmem:[#allocation3 + $0xb88] sm:$0xff] }
 0x16f   : > { %vm1750_vm2 = vcmp.lt.s32.totalorder %v1709_v63, 384  ;;  %4493 = vmatprep.subr.bf16.mxu1 %v4492_v5  ;;  %v1310_v55 = vld [vmem:[#allocation3 + $0xba8] sm:$0xff]  ;;  %v1313_v56 = vld [vmem:[#allocation3 + $0xbc0] sm:$0xff] }
 0x170   : > { %1752 = vst.msk [vmem:[#allocation2] ss:$8 sm:$0x7] %vm1750_vm2, %v5224_v49  ;;  %1755 = vst.msk [vmem:[#allocation2 + $0x31] ss:$8 sm:$0x7] %vm1750_vm2, %v5224_v49  ;;  %v4296_v61 = vpack.c.bf16 %v1313_v56, %v1310_v55 }
 0x171   : > { %4251 = vmatpush1.bf16.msra.mxu0 %v4250_v15  ;;  %v2043_v15 = vld [vmem:[#allocation8 + $0x7a8] sm:$0xff] }
 0x172   : > { %4253 = vmatprep.subr.bf16.mxu0 %v4252_v20  ;;  %4495 = vmatpush1.bf16.msra.mxu1 %v4494_v11  ;;  %v1276_v20 = vld [vmem:[#allocation3 + $0xa98] sm:$0xff]  ;;  %v5556_v22 = vpack.c.bf16 %v2043_v15, %v2040_v14  ;;  %v1318_v11 = vld [vmem:[#allocation3 + $0xbe8] sm:$0xff]  ;;  %v1325_v15 = vld [vmem:[#allocation3 + $0xc20] sm:$0xff] }
 0x173   : > { %v4274_v24 = vpack.c.bf16 %v1276_v20, %v1273_v19  ;;  %v1322_v14 = vld [vmem:[#allocation3 + $0xc08] sm:$0xff]  ;;  %v4302_v19 = vpack.c.bf16 %v1318_v11, %v1315_v42 }
 0x174   : > { %4529 = vmatprep.subr.bf16.mxu1 %v5556_v22  ;;  %v4304_v23 = vpack.c.bf16 %v1325_v15, %v1322_v14  ;;  %v1354_v55 = vld [vmem:[#allocation3 + $0xd08] sm:$0xff] }
 0x175   : > { %4255 = vmatpush1.bf16.msra.mxu0 %v4254_v32  ;;  %v1289_v32 = vld [vmem:[#allocation3 + $0xb00] sm:$0xff]  ;;  %v1358_v56 = vld [vmem:[#allocation3 + $0xd28] sm:$0xff] }
 0x176   : > { %4257 = vmatprep.subr.bf16.mxu0 %v4256_v34  ;;  %v4278_v34 = vpack.c.bf16 %v1282_v27, %v1279_v26  ;;  %v4280_v35 = vpack.c.bf16 %v1289_v32, %v1286_v29  ;;  %v1328_v26 = vld [vmem:[#allocation3 + $0xc38] sm:$0xff]  ;;  %v1331_v27 = vld [vmem:[#allocation3 + $0xc50] sm:$0xff]  ;;  %v1366_v42 = vld [vmem:[#allocation3 + $0xd68] sm:$0xff] }
 0x177   : > { %v4308_v32 = vpack.c.bf16 %v1331_v27, %v1328_v26  ;;  %v1943_v11 = vld [vmem:[#allocation8 + $0x488] sm:$0xff]  ;;  %v1946_v14 = vld [vmem:[#allocation8 + $0x4a0] sm:$0xff]  ;;  %v1948_v27 = vld [vmem:[#allocation8 + $0x4b0] sm:$0xff] }
 0x179   : > { %4259 = vmatpush1.bf16.msra.mxu0 %v4258_v39  ;;  %v4282_v39 = vpack.c.bf16 %v1288_v36, %v1285_v7  ;;  %v1334_v7 = vld [vmem:[#allocation3 + $0xc68] sm:$0xff]  ;;  %v1337_v36 = vld [vmem:[#allocation3 + $0xc80] sm:$0xff] }
 0x17a   : > { %4261 = vmatprep.subr.bf16.mxu0 %v4260_v58  ;;  %v4284_v58 = vpack.c.bf16 %v1295_v38, %v1292_v37  ;;  %v4312_v38 = vpack.c.bf16 %v1337_v36, %v1334_v7  ;;  %v1954_v36 = vld [vmem:[#allocation8 + $0x4e0] sm:$0xff] }
 0x17d   : > { %4263 = vmatpush1.bf16.msra.mxu0 %v4262_v43  ;;  %v4286_v43 = vpack.c.bf16 %v1294_v53, %v1291_v40  ;;  %v1340_v40 = vld [vmem:[#allocation3 + $0xc98] sm:$0xff]  ;;  %v1343_v53 = vld [vmem:[#allocation3 + $0xcb0] sm:$0xff] }
 0x17e   : > { %4265 = vmatprep.subr.bf16.mxu0 %v4264_v46  ;;  %v1304_v46 = vld [vmem:[#allocation3 + $0xb78] sm:$0xff]  ;;  %v4316_v41 = vpack.c.bf16 %v1343_v53, %v1340_v40 }
 0x17f   : > { %v4292_v48 = vpack.c.bf16 %v1307_v59, %v1304_v46  ;;  %v1345_v46 = vld [vmem:[#allocation3 + $0xcc0] sm:$0xff]  ;;  %v1348_v59 = vld [vmem:[#allocation3 + $0xcd8] sm:$0xff] }
 0x180   : > { %v1960_v53 = vld [vmem:[#allocation8 + $0x510] sm:$0xff] }
 0x181   : > { %4267 = vmatpush1.bf16.msra.mxu0 %v4266_v57  ;;  %v4294_v57 = vpack.c.bf16 %v1306_v52, %v1303_v50  ;;  %v1351_v52 = vld [vmem:[#allocation3 + $0xcf0] sm:$0xff] }
 0x182   : > { %4269 = vmatprep.subr.bf16.mxu0 %v4268_v2  ;;  %v1316_v2 = vld [vmem:[#allocation3 + $0xbd8] sm:$0xff] }
 0x183   : > { %v4300_v9 = vpack.c.bf16 %v1319_v4, %v1316_v2  ;;  %v1360_v2 = vld [vmem:[#allocation3 + $0xd38] sm:$0xff] }
 0x184   : > { %v1364_v4 = vld [vmem:[#allocation3 + $0xd58] sm:$0xff] }
 0x185   : > { %4271 = vmatpush1.bf16.msra.mxu0 %v4270_v13 }
 0x186   : > { %4273 = vmatprep.subr.bf16.mxu0 %v4272_v17 }
 0x189   : > { %4275 = vmatpush1.bf16.msra.mxu0 %v4274_v24  ;;  %v1324_v24 = vld [vmem:[#allocation3 + $0xc18] sm:$0xff] }
 0x18a   : > { %4277 = vmatprep.subr.bf16.mxu0 %v4276_v25  ;;  %v4306_v29 = vpack.c.bf16 %v1324_v24, %v1321_v51  ;;  %v1952_v51 = vld [vmem:[#allocation8 + $0x4d0] sm:$0xff] }
 0x18d   : > { %4279 = vmatpush1.bf16.msra.mxu0 %v4278_v34  ;;  %v1327_v34 = vld [vmem:[#allocation3 + $0xc30] sm:$0xff] }
 0x18e   : > { %4281 = vmatprep.subr.bf16.mxu0 %v4280_v35  ;;  %v1330_v35 = vld [vmem:[#allocation3 + $0xc48] sm:$0xff] }
 0x18f   : > { %v4310_v37 = vpack.c.bf16 %v1330_v35, %v1327_v34  ;;  %v1958_v34 = vld [vmem:[#allocation8 + $0x500] sm:$0xff] }
 0x191   : > { %4283 = vmatpush1.bf16.msra.mxu0 %v4282_v39  ;;  %v1333_v39 = vld [vmem:[#allocation3 + $0xc60] sm:$0xff] }
 0x192   : > { %4285 = vmatprep.subr.bf16.mxu0 %v4284_v58  ;;  %v1336_v58 = vld [vmem:[#allocation3 + $0xc78] sm:$0xff] }
 0x193   : > { %v4314_v10 = vpack.c.bf16 %v1336_v58, %v1333_v39  ;;  %v1964_v39 = vld [vmem:[#allocation8 + $0x530] sm:$0xff] }
 0x195   : > { %4287 = vmatpush1.bf16.msra.mxu0 %v4286_v43  ;;  %v1339_v43 = vld [vmem:[#allocation3 + $0xc90] sm:$0xff] }
 0x196   : > { %4289 = vmatprep.subr.bf16.mxu0 %v4288_v44  ;;  %v1346_v44 = vld [vmem:[#allocation3 + $0xcc8] sm:$0xff] }
 0x197   : > { %v4320_v45 = vpack.c.bf16 %v1349_v21, %v1346_v44  ;;  %v1966_v44 = vld [vmem:[#allocation8 + $0x540] sm:$0xff]  ;;  %v1969_v21 = vld [vmem:[#allocation8 + $0x558] sm:$0xff] }
 0x199   : > { %4291 = vmatpush1.bf16.msra.mxu0 %v4290_v47  ;;  %v1352_v47 = vld [vmem:[#allocation3 + $0xcf8] sm:$0xff] }
 0x19a   : > { %4293 = vmatprep.subr.bf16.mxu0 %v4292_v48  ;;  %v1355_v48 = vld [vmem:[#allocation3 + $0xd10] sm:$0xff] }
 0x19b   : > { %v3462_v5 = vpop.f32.mrb[2].mxu1  ;;  %v4324_v50 = vpack.c.bf16 %v1355_v48, %v1352_v47  ;;  %v1975_v47 = vld [vmem:[#allocation8 + $0x588] sm:$0xff] }
 0x19c   : > { %v3463_v8 = vpop.f32.mrb[3].mxu1  ;;  %v1979_v48 = vld [vmem:[#allocation8 + $0x5a8] sm:$0xff] }
 0x19d   : > { %4295 = vmatpush1.bf16.msra.mxu0 %v4294_v57  ;;  %v5559_v13 = vadd.f32 %v3463_v8, %v3462_v5  ;;  %v1361_v57 = vld [vmem:[#allocation3 + $0xd40] sm:$0xff]  ;;  %v1367_v5 = vld [vmem:[#allocation3 + $0xd70] sm:$0xff] }
 0x19e   : > { %4297 = vmatprep.subr.bf16.mxu0 %v4296_v61  ;;  %v4326_v61 = vpack.c.bf16 %v1354_v55, %v1351_v52  ;;  %v4328_v0 = vpack.c.bf16 %v1361_v57, %v1358_v56  ;;  %v4332_v8 = vpack.c.bf16 %v1367_v5, %v1364_v4  ;;  %v1978_v55 = vld [vmem:[#allocation8 + $0x5a0] sm:$0xff]  ;;  %v1981_v56 = vld [vmem:[#allocation8 + $0x5b8] sm:$0xff] }
 0x19f   : > { %v3465_v17 = vpop.f32.mrb[4].mxu1 }
 0x1a0   : > { %v3466_v20 = vpop.f32.mrb[5].mxu1 }
 0x1a1   : > { %4299 = vmatpush1.bf16.msra.mxu0 %v4298_v6  ;;  %v5561_v25 = vadd.f32 %v3466_v20, %v3465_v17  ;;  %v4330_v6 = vpack.c.bf16 %v1360_v2, %v1357_v1  ;;  %v4400_v17 = vpack.c.bf16 %v1946_v14, %v1943_v11  ;;  %v1945_v20 = vld [vmem:[#allocation8 + $0x498] sm:$0xff]  ;;  %v1987_v11 = vld [vmem:[#allocation8 + $0x5e8] sm:$0xff] }
 0x1a2   : > { %4301 = vmatprep.subr.bf16.mxu0 %v4300_v9  ;;  %v1363_v9 = vld [vmem:[#allocation3 + $0xd50] sm:$0xff] }
 0x1a3   : > { %v4334_v15 = vpack.c.bf16 %v1366_v42, %v1363_v9  ;;  %v1984_v42 = vld [vmem:[#allocation8 + $0x5d0] sm:$0xff] }
 0x1a5   : > { %4303 = vmatpush1.bf16.msra.mxu0 %v4302_v19  ;;  %v1942_v19 = vld [vmem:[#allocation8 + $0x480] sm:$0xff] }
 0x1a6   : > { %4305 = vmatprep.subr.bf16.mxu0 %v4304_v23  ;;  %v1949_v23 = vld [vmem:[#allocation8 + $0x4b8] sm:$0xff]  ;;  %v4402_v24 = vpack.c.bf16 %v1945_v20, %v1942_v19  ;;  %v1994_v19 = vld [vmem:[#allocation8 + $0x620] sm:$0xff] }
 0x1a7   : > { %v4404_v26 = vpack.c.bf16 %v1952_v51, %v1949_v23 }
 0x1a8   : > { %1462 = vmatmul.mubr.f32.vlgmr.msra.gmra.mrb[0].mxu0 %v5513_v60  ;;  %v1342_v60 = vld [vmem:[#allocation3 + $0xca8] sm:$0xff] }
 0x1a9   : > { %4307 = vmatpush1.bf16.msra.mxu0 %v4306_v29  ;;  %1467 = vmatprep.mubr.f32.mxu0 %v5521_v12  ;;  %v4318_v12 = vpack.c.bf16 %v1342_v60, %v1339_v43  ;;  %v1951_v29 = vld [vmem:[#allocation8 + $0x4c8] sm:$0xff] }
 0x1aa   : > { %4309 = vmatprep.subr.bf16.mxu0 %v4308_v32  ;;  %v1955_v32 = vld [vmem:[#allocation8 + $0x4e8] sm:$0xff]  ;;  %v4406_v35 = vpack.c.bf16 %v1951_v29, %v1948_v27  ;;  %v4430_v27 = vpack.c.bf16 %v1987_v11, %v1984_v42 }
 0x1ab   : > { %v4408_v7 = vpack.c.bf16 %v1958_v34, %v1955_v32  ;;  %v1990_v34 = vld [vmem:[#allocation8 + $0x600] sm:$0xff] }
 0x1ac   : > { %1468 = vmatmul.mubr.f32.gmra.mrb[2].mxu0 %v5524_v16  ;;  %v4322_v16 = vpack.c.bf16 %v1348_v59, %v1345_v46  ;;  %v4418_v46 = vpack.c.bf16 %v1969_v21, %v1966_v44  ;;  %v1972_v59 = vld [vmem:[#allocation8 + $0x570] sm:$0xff]  ;;  %v2009_v44 = vld [vmem:[#allocation8 + $0x698] sm:$0xff] }
 0x1ad   : > { %4311 = vmatpush1.bf16.msra.mxu0 %v4310_v37  ;;  %1538 = vmatprep.mubr.f32.mxu0 %v5224_v49  ;;  %v1957_v37 = vld [vmem:[#allocation8 + $0x4f8] sm:$0xff]  ;;  %v2012_v21 = vld [vmem:[#allocation8 + $0x6b0] sm:$0xff] }
 0x1ae   : > { %4313 = vmatprep.subr.bf16.mxu0 %v4312_v38  ;;  %v1961_v38 = vld [vmem:[#allocation8 + $0x518] sm:$0xff]  ;;  %v4410_v58 = vpack.c.bf16 %v1957_v37, %v1954_v36 }
 0x1af   : > { %v4412_v40 = vpack.c.bf16 %v1964_v39, %v1961_v38  ;;  %v1997_v36 = vld [vmem:[#allocation8 + $0x638] sm:$0xff] }
 0x1b1   : > { %4315 = vmatpush1.bf16.msra.mxu0 %v4314_v10  ;;  %v1963_v10 = vld [vmem:[#allocation8 + $0x528] sm:$0xff] }
 0x1b2   : > { %4317 = vmatprep.subr.bf16.mxu0 %v4316_v41  ;;  %v1967_v41 = vld [vmem:[#allocation8 + $0x548] sm:$0xff]  ;;  %v4414_v43 = vpack.c.bf16 %v1963_v10, %v1960_v53  ;;  %v2006_v10 = vld [vmem:[#allocation8 + $0x680] sm:$0xff] }
 0x1b3   : > { %v2003_v53 = vld [vmem:[#allocation8 + $0x668] sm:$0xff] }
 0x1b5   : > { %4319 = vmatpush1.bf16.msra.mxu0 %v4318_v12  ;;  %v1973_v12 = vld [vmem:[#allocation8 + $0x578] sm:$0xff] }
 0x1b6   : > { %4321 = vmatprep.subr.bf16.mxu0 %v4320_v45  ;;  %v1976_v45 = vld [vmem:[#allocation8 + $0x590] sm:$0xff] }
 0x1b9   : > { %4323 = vmatpush1.bf16.msra.mxu0 %v4322_v16  ;;  %v1982_v16 = vld [vmem:[#allocation8 + $0x5c0] sm:$0xff] }
 0x1ba   : > { %4325 = vmatprep.subr.bf16.mxu0 %v4324_v50  ;;  %v4422_v50 = vpack.c.bf16 %v1975_v47, %v1972_v59  ;;  %v4424_v52 = vpack.c.bf16 %v1982_v16, %v1979_v48  ;;  %v2018_v59 = vld [vmem:[#allocation8 + $0x6e0] sm:$0xff] }
 0x1bb   : > { %v2014_v16 = vld [vmem:[#allocation8 + $0x6c0] sm:$0xff] }
 0x1bd   : > { %4327 = vmatpush1.bf16.msra.mxu0 %v4326_v61  ;;  %v1985_v61 = vld [vmem:[#allocation8 + $0x5d8] sm:$0xff] }
 0x1be   : > { %4329 = vmatprep.subr.bf16.mxu0 %v4328_v0  ;;  %v1988_v0 = vld [vmem:[#allocation8 + $0x5f0] sm:$0xff] }
 0x1bf   : > { %v4428_v9 = vpack.c.bf16 %v1988_v0, %v1985_v61  ;;  %v2020_v0 = vld [vmem:[#allocation8 + $0x6f0] sm:$0xff] }
 0x1c1   : > { %4331 = vmatpush1.bf16.msra.mxu0 %v4330_v6  ;;  %v4426_v6 = vpack.c.bf16 %v1981_v56, %v1978_v55  ;;  %v2021_v55 = vld [vmem:[#allocation8 + $0x6f8] sm:$0xff]  ;;  %v2024_v56 = vld [vmem:[#allocation8 + $0x710] sm:$0xff] }
 0x1c2   : > { %4333 = vmatprep.subr.bf16.mxu0 %v4332_v8  ;;  %v4452_v61 = vpack.c.bf16 %v2024_v56, %v2021_v55  ;;  %v2035_v55 = vld [vmem:[#allocation8 + $0x768] sm:$0xff] }
 0x1c5   : > { %4335 = vmatpush1.bf16.msra.mxu0 %v4334_v15 }
 0x1c6   : > { %4401 = vmatprep.subr.bf16.mxu0 %v4400_v17  ;;  %v1991_v17 = vld [vmem:[#allocation8 + $0x608] sm:$0xff] }
 0x1c7   : > { %v4432_v32 = vpack.c.bf16 %v1994_v19, %v1991_v17 }
 0x1c8   : > { %1539 = vmatmul.mubr.f32.vlgmr.msra.gmra.mrb[0].mxu0 %v5532_v54  ;;  %v1970_v54 = vld [vmem:[#allocation8 + $0x560] sm:$0xff] }
 0x1c9   : > { %1544 = vmatprep.mubr.f32.mxu0 %v5224_v49  ;;  %4403 = vmatpush1.bf16.msra.mxu0 %v4402_v24  ;;  %v4416_v60 = vpack.c.bf16 %v1970_v54, %v1967_v41  ;;  %v4440_v54 = vpack.c.bf16 %v2006_v10, %v2003_v53  ;;  %v2070_v53 = vld [vmem:[#allocation8 + $0x880] sm:$0xff]  ;;  %v2073_v10 = vld [vmem:[#allocation8 + $0x898] sm:$0xff] }
 0x1ca   : > { %4405 = vmatprep.subr.bf16.mxu0 %v4404_v26 }
 0x1cc   : > { %1545 = vmatmul.mubr.f32.gmra.mrb[2].mxu0 %v5541_v28  ;;  %v4420_v28 = vpack.c.bf16 %v1976_v45, %v1973_v12  ;;  %v4444_v12 = vpack.c.bf16 %v2012_v21, %v2009_v44  ;;  %v2008_v45 = vld [vmem:[#allocation8 + $0x690] sm:$0xff]  ;;  %v2082_v44 = vld [vmem:[#allocation8 + $0x8e0] sm:$0xff]  ;;  %v2085_v21 = vld [vmem:[#allocation8 + $0x8f8] sm:$0xff] }
 0x1cd   : > { %4407 = vmatpush1.bf16.msra.mxu0 %v4406_v35  ;;  %v1993_v35 = vld [vmem:[#allocation8 + $0x618] sm:$0xff] }
 0x1ce   : > { %4409 = vmatprep.subr.bf16.mxu0 %v4408_v7  ;;  %v4434_v38 = vpack.c.bf16 %v1993_v35, %v1990_v34  ;;  %v2052_v35 = vld [vmem:[#allocation8 + $0x7f0] sm:$0xff] }
 0x1d1   : > { %4411 = vmatpush1.bf16.msra.mxu0 %v4410_v58  ;;  %v1996_v58 = vld [vmem:[#allocation8 + $0x630] sm:$0xff] }
 0x1d2   : > { %4413 = vmatprep.subr.bf16.mxu0 %v4412_v40  ;;  %v1999_v40 = vld [vmem:[#allocation8 + $0x648] sm:$0xff] }
 0x1d3   : > { %v4438_v41 = vpack.c.bf16 %v1999_v40, %v1996_v58  ;;  %v2064_v58 = vld [vmem:[#allocation8 + $0x850] sm:$0xff]  ;;  %v2067_v40 = vld [vmem:[#allocation8 + $0x868] sm:$0xff] }
 0x1d5   : > { %4415 = vmatpush1.bf16.msra.mxu0 %v4414_v43  ;;  %v2002_v43 = vld [vmem:[#allocation8 + $0x660] sm:$0xff] }
 0x1d6   : > { %4417 = vmatprep.subr.bf16.mxu0 %v4416_v60  ;;  %v2005_v60 = vld [vmem:[#allocation8 + $0x678] sm:$0xff] }
 0x1d9   : > { %4419 = vmatpush1.bf16.msra.mxu0 %v4418_v46  ;;  %v2011_v46 = vld [vmem:[#allocation8 + $0x6a8] sm:$0xff] }
 0x1da   : > { %4421 = vmatprep.subr.bf16.mxu0 %v4420_v28  ;;  %v2015_v28 = vld [vmem:[#allocation8 + $0x6c8] sm:$0xff]  ;;  %v4446_v47 = vpack.c.bf16 %v2011_v46, %v2008_v45  ;;  %v4556_v45 = vpack.c.bf16 %v2085_v21, %v2082_v44  ;;  %v1833_v44 = vld [vmem:[#allocation8 + $0x120] sm:$0xff]  ;;  %v1836_v21 = vld [vmem:[#allocation8 + $0x138] sm:$0xff] }
 0x1db   : > { %v3406_v57 = vpop.f32.mrb[4].mxu0  ;;  %v4448_v48 = vpack.c.bf16 %v2018_v59, %v2015_v28  ;;  %v1798_v28 = vld [vmem:[#allocation8 + $0x8] sm:$0xff]  ;;  %v1801_v59 = vld [vmem:[#allocation8 + $0x20] sm:$0xff] }
 0x1dc   : > { %v3407_v1 = vpop.f32.mrb[5].mxu0  ;;  %v3518_v2 = vpop.f32.mrb[6].mxu1  ;;  %v4560_v56 = vpack.c.bf16 %v1801_v59, %v1798_v28  ;;  %v1839_v28 = vld [vmem:[#allocation8 + $0x150] sm:$0xff]  ;;  %v1842_v59 = vld [vmem:[#allocation8 + $0x168] sm:$0xff] }
 0x1dd   : > { %v3408_v4 = vadd.f32 %v3407_v1, %v3406_v57  ;;  %v3519_v5 = vpop.f32.mrb[7].mxu1  ;;  %4423 = vmatpush1.bf16.msra.mxu0 %v4422_v50  ;;  %v2017_v50 = vld [vmem:[#allocation8 + $0x6d8] sm:$0xff]  ;;  %v2023_v1 = vld [vmem:[#allocation8 + $0x708] sm:$0xff] }
 0x1de   : > { %v3520_v8 = vadd.f32 %v3519_v5, %v3518_v2  ;;  %4425 = vmatprep.subr.bf16.mxu0 %v4424_v52  ;;  %v5575_v52 = vshrl.u32 %v1709_v63, 7  ;;  %v4450_v57 = vpack.c.bf16 %v2017_v50, %v2014_v16  ;;  %v2030_v5 = vld [vmem:[#allocation8 + $0x740] sm:$0xff]  ;;  %v2032_v50 = vld [vmem:[#allocation8 + $0x750] sm:$0xff] }
 0x1df   : > { %v4883_v14 = vadd.f32 %v5559_v13, %v3408_v4  ;;  %v3409_v15 = vpop.f32.mrb[6].mxu0  ;;  %v2000_v13 = vld [vmem:[#allocation8 + $0x650] sm:$0xff]  ;;  %v2027_v4 = vld [vmem:[#allocation8 + $0x728] sm:$0xff] }
 0x1e0   : > { %v3410_v20 = vpop.f32.mrb[7].mxu0  ;;  %v3521_v23 = vpop.f32.mrb[8].mxu1  ;;  %v4436_v39 = vpack.c.bf16 %v2000_v13, %v1997_v36  ;;  %v1719_v2 = vsub.s32 2, %v5575_v52 }
 0x1e1   : > { %v3411_v51 = vadd.f32 %v3410_v20, %v3409_v15  ;;  %v3522_v24 = vpop.f32.mrb[9].mxu1  ;;  %v5571_v26 = vadd.f32 %v4883_v14, %v3520_v8  ;;  %4427 = vmatpush1.bf16.msra.mxu0 %v4426_v6  ;;  %v5578_v6 = vld [vmem:[#allocation6] sm:$0x7]  ;;  %v4454_v8 = vpack.c.bf16 %v2023_v1, %v2020_v0  ;;  %v2046_v20 = vld [vmem:[#allocation8 + $0x7c0] sm:$0xff]  ;;  %v4462_v0 = vpack.c.bf16 %v2035_v55, %v2032_v50 }
 0x1e2   : > { %v3523_v29 = vadd.f32 %v3522_v24, %v3521_v23  ;;  %4429 = vmatprep.subr.bf16.mxu0 %v4428_v9  ;;  %v4456_v9 = vpack.c.bf16 %v2030_v5, %v2027_v4  ;;  %v1720_v63 = vrot.slane %v5578_v6, %v1719_v2  ;;  %v2049_v23 = vld [vmem:[#allocation8 + $0x7d8] sm:$0xff]  ;;  %v1807_v4 = vld [vmem:[#allocation8 + $0x50] sm:$0xff]  ;;  %v1845_v55 = vld [vmem:[#allocation8 + $0x180] sm:$0xff] }
 0x1e3   : > { %v4880_v7 = vadd.f32 %v5561_v25, %v3411_v51  ;;  %v4442_v25 = vpack.c.bf16 %v2005_v60, %v2002_v43  ;;  %v2079_v43 = vld [vmem:[#allocation8 + $0x8c8] sm:$0xff]  ;;  %v1804_v1 = vld [vmem:[#allocation8 + $0x38] sm:$0xff]  ;;  %v1992_v5 = vld [vmem:[#allocation8 + $0x610] sm:$0xff] }
 0x1e5   : > { %v4881_v37 = vadd.f32 %v4880_v7, %v3523_v29  ;;  %4431 = vmatpush1.bf16.msra.mxu0 %v4430_v27  ;;  %v4532_v27 = vpack.c.bf16 %v2049_v23, %v2046_v20  ;;  %v2055_v7 = vld [vmem:[#allocation8 + $0x808] sm:$0xff]  ;;  %v1809_v23 = vld [vmem:[#allocation8 + $0x60] sm:$0xff] }
 0x1e6   : > { %4433 = vmatprep.subr.bf16.mxu0 %v4432_v32  ;;  %v4536_v13 = vpack.c.bf16 %v2055_v7, %v2052_v35  ;;  %v1815_v35 = vld [vmem:[#allocation8 + $0x90] sm:$0xff]  ;;  %v1818_v7 = vld [vmem:[#allocation8 + $0xa8] sm:$0xff] }
 0x1e9   : > { %4435 = vmatpush1.bf16.msra.mxu0 %v4434_v38  ;;  %v2061_v38 = vld [vmem:[#allocation8 + $0x838] sm:$0xff] }
 0x1ea   : > { %4437 = vmatprep.subr.bf16.mxu0 %v4436_v39 }
 0x1ed   : > { %4439 = vmatpush1.bf16.msra.mxu0 %v4438_v41  ;;  %v4548_v41 = vpack.c.bf16 %v2073_v10, %v2070_v53  ;;  %v1827_v53 = vld [vmem:[#allocation8 + $0xf0] sm:$0xff]  ;;  %v1830_v10 = vld [vmem:[#allocation8 + $0x108] sm:$0xff] }
 0x1ee   : > { %4441 = vmatprep.subr.bf16.mxu0 %v4440_v54  ;;  %v2076_v54 = vld [vmem:[#allocation8 + $0x8b0] sm:$0xff] }
 0x1ef   : > { %v4552_v60 = vpack.c.bf16 %v2079_v43, %v2076_v54  ;;  %v1837_v54 = vld [vmem:[#allocation8 + $0x140] sm:$0xff]  ;;  %v4582_v43 = vpack.c.bf16 %v1830_v10, %v1827_v53  ;;  %v1884_v10 = vld [vmem:[#allocation8 + $0x2b8] sm:$0xff] }
 0x1f0   : > { %v1881_v53 = vld [vmem:[#allocation8 + $0x2a0] sm:$0xff] }
 0x1f1   : > { %4443 = vmatpush1.bf16.msra.mxu0 %v4442_v25  ;;  %v2026_v25 = vld [vmem:[#allocation8 + $0x720] sm:$0xff] }
 0x1f2   : > { %4445 = vmatprep.subr.bf16.mxu0 %v4444_v12  ;;  %v2029_v12 = vld [vmem:[#allocation8 + $0x738] sm:$0xff] }
 0x1f3   : > { %v4458_v46 = vpack.c.bf16 %v2029_v12, %v2026_v25  ;;  %v1840_v25 = vld [vmem:[#allocation8 + $0x158] sm:$0xff]  ;;  %v1843_v12 = vld [vmem:[#allocation8 + $0x170] sm:$0xff] }
 0x1f5   : > { %4447 = vmatpush1.bf16.msra.mxu0 %v4446_v47  ;;  %v2033_v47 = vld [vmem:[#allocation8 + $0x758] sm:$0xff] }
 0x1f6   : > { %4449 = vmatprep.subr.bf16.mxu0 %v4448_v48  ;;  %v2036_v48 = vld [vmem:[#allocation8 + $0x770] sm:$0xff] }
 0x1f7   : > { %v4460_v16 = vpack.c.bf16 %v2036_v48, %v2033_v47  ;;  %v1846_v47 = vld [vmem:[#allocation8 + $0x188] sm:$0xff]  ;;  %v1849_v48 = vld [vmem:[#allocation8 + $0x1a0] sm:$0xff] }
 0x1f8   : > { %v4592_v50 = vpack.c.bf16 %v1849_v48, %v1846_v47 }
 0x1f9   : > { %4451 = vmatpush1.bf16.msra.mxu0 %v4450_v57  ;;  %v1797_v57 = vld [vmem:[#allocation8] sm:$0xff] }
 0x1fa   : > { %4453 = vmatprep.subr.bf16.mxu0 %v4452_v61  ;;  %v1800_v61 = vld [vmem:[#allocation8 + $0x18] sm:$0xff] }
 0x1fc   : > { %v3814_v42 = vpop.f32.mrb[0].mxu1 }
 0x1fd   : > { %v4882_v11 = vadd.f32 %v4881_v37, %v3814_v42  ;;  %v1692_v14 = vpop.f32.mrb[1].mxu1  ;;  %4455 = vmatpush1.bf16.msra.mxu0 %v4454_v8  ;;  %v2058_v37 = vld [vmem:[#allocation8 + $0x820] sm:$0xff]  ;;  %v1995_v8 = vld [vmem:[#allocation8 + $0x628] sm:$0xff]  ;;  %v4564_v42 = vpack.c.bf16 %v1807_v4, %v1804_v1  ;;  %v1851_v4 = vld [vmem:[#allocation8 + $0x1b0] sm:$0xff] }
 0x1fe   : > { %v4885_v15 = vadd.f32 %v5571_v26, %v1692_v14  ;;  %4457 = vmatprep.subr.bf16.mxu0 %v4456_v9  ;;  %v4540_v39 = vpack.c.bf16 %v2061_v38, %v2058_v37  ;;  %v4562_v9 = vpack.c.bf16 %v1800_v61, %v1797_v57  ;;  %v1806_v14 = vld [vmem:[#allocation8 + $0x48] sm:$0xff]  ;;  %v1821_v37 = vld [vmem:[#allocation8 + $0xc0] sm:$0xff]  ;;  %v1824_v38 = vld [vmem:[#allocation8 + $0xd8] sm:$0xff] }
 0x1ff   : > { %v1729_v17 = vadd.f32 %v4882_v11, %v1720_v63  ;;  %v1803_v11 = vld [vmem:[#allocation8 + $0x30] sm:$0xff]  ;;  %v1852_v57 = vld [vmem:[#allocation8 + $0x1b8] sm:$0xff] }
 0x200   : > { %v1726_v19 = vadd.f32 %v4885_v15, %v1720_v63  ;;  %v4496_v63 = vpack.c.bf16 %v1995_v8, %v1992_v5  ;;  %v1810_v15 = vld [vmem:[#allocation8 + $0x68] sm:$0xff]  ;;  %v1855_v61 = vld [vmem:[#allocation8 + $0x1d0] sm:$0xff] }
 0x201   : > { %vm1735_vm3 = vcmp.ge.f32.partialorder %v1729_v17, 0.0  ;;  %v1741_v51 = vmul.f32 0.2, %v1729_v17  ;;  %4459 = vmatpush1.bf16.msra.mxu0 %v4458_v46  ;;  %v4588_v46 = vpack.c.bf16 %v1843_v12, %v1840_v25  ;;  %v4596_v1 = vpack.c.bf16 %v1855_v61, %v1852_v57  ;;  %v1854_v5 = vld [vmem:[#allocation8 + $0x1c8] sm:$0xff]  ;;  %v1897_v12 = vld [vmem:[#allocation8 + $0x320] sm:$0xff]  ;;  %v1944_v57 = vld [vmem:[#allocation8 + $0x490] sm:$0xff] }
 0x202   : > { %v1738_v24 = vmul.f32 0.2, %v1726_v19  ;;  %vm1732_vm4 = vcmp.ge.f32.partialorder %v1726_v19, 0.0  ;;  %4461 = vmatprep.subr.bf16.mxu0 %v4460_v16  ;;  %v4590_v16 = vpack.c.bf16 %v1842_v59, %v1839_v28  ;;  %v1858_v8 = vld [vmem:[#allocation8 + $0x1e8] sm:$0xff]  ;;  %v1711_v28 = vsub.s32 0, %v5575_v52 }
 0x203   : > { %v5584_v29 = vsel %vm1735_vm3, %v1729_v17, %v1741_v51  ;;  %v1813_v17 = vld [vmem:[#allocation8 + $0x80] sm:$0xff]  ;;  %v1812_v51 = vld [vmem:[#allocation8 + $0x78] sm:$0xff]  ;;  %v1894_v25 = vld [vmem:[#allocation8 + $0x308] sm:$0xff]  ;;  %v1715_v59 = vsub.s32 1, %v5575_v52 }
 0x204   : > { %v1744_v32 = vsel %vm1732_vm4, %v1726_v19, %v1738_v24  ;;  %v1771_v34 = vrot.slane %v5584_v29, 7  ;;  %v4566_v19 = vpack.c.bf16 %v1806_v14, %v1803_v11  ;;  %v4568_v20 = vpack.c.bf16 %v1813_v17, %v1810_v15  ;;  %v1816_v24 = vld [vmem:[#allocation8 + $0x98] sm:$0xff]  ;;  %v1857_v11 = vld [vmem:[#allocation8 + $0x1e0] sm:$0xff]  ;;  %v1867_v17 = vld [vmem:[#allocation8 + $0x230] sm:$0xff] }
 0x205   : > { %v1766_v36 = vrot.slane %v1744_v32, 7  ;;  %2228 = vmatmul.mubr.f32.vlgmr.msra.gmra.mrb[10].mxu1 %v1744_v32  ;;  %4463 = vmatpush1.bf16.msra.mxu0 %v4462_v0  ;;  %v1860_v14 = vld [vmem:[#allocation8 + $0x1f8] sm:$0xff]  ;;  %v1712_v47 = vrot.slane %v5578_v6, %v1711_v28  ;;  %v1716_v48 = vrot.slane %v5578_v6, %v1715_v59  ;;  %v1947_v61 = vld [vmem:[#allocation8 + $0x4a8] sm:$0xff] }
 0x206   : > { %4531 = vmatpush3.bf16.msra.mxu1 %v5556_v22  ;;  %2233 = vmatprep.mubr.f32.mxu1 %v5224_v49  ;;  %1790 = vst [vmem:[#allocation2 + $0x40] sm:$0x1] %v1771_v34  ;;  %v4544_v22 = vpack.c.bf16 %v2067_v40, %v2064_v58  ;;  %v1831_v58 = vld [vmem:[#allocation8 + $0x110] sm:$0xff]  ;;  %v4578_v40 = vpack.c.bf16 %v1824_v38, %v1821_v37  ;;  %v1864_v15 = vld [vmem:[#allocation8 + $0x218] sm:$0xff]  ;;  %v1878_v38 = vld [vmem:[#allocation8 + $0x288] sm:$0xff] }
 0x207   : > { %1784 = vst [vmem:[#allocation2 + $0x10] sm:$0xfe] %v1766_v36  ;;  %4533 = vmatprep.subr.bf16.mxu1 %v4532_v27  ;;  %v1772_v26 = vsel %vm1763_vm5, %v1766_v36, %v1771_v34  ;;  %4497 = vmatprep.subr.bf16.mxu0 %v4496_v63  ;;  %v1822_v36 = vld [vmem:[#allocation8 + $0xc8] sm:$0xff]  ;;  %v4598_v63 = vpack.c.bf16 %v1854_v5, %v1851_v4  ;;  %v1875_v37 = vld [vmem:[#allocation8 + $0x270] sm:$0xff]  ;;  %v2001_v4 = vld [vmem:[#allocation8 + $0x658] sm:$0xff] }
 0x208   : > { %1787 = vst [vmem:[#allocation2 + $0x28] sm:$0xff] %v1772_v26  ;;  %v1825_v26 = vld [vmem:[#allocation8 + $0xe0] sm:$0xff] }
 0x209   : > { %2234 = vmatmul.mubr.f32.gmra.mrb[12].mxu1 %v5584_v29 }
 0x20a   : > { %4535 = vmatpush3.bf16.msra.mxu1 %v4532_v27  ;;  %3847 = vmatprep.mubr.f32.mxu1 %v1744_v32  ;;  %v1819_v27 = vld [vmem:[#allocation8 + $0xb0] sm:$0xff]  ;;  %v4570_v32 = vpack.c.bf16 %v1812_v51, %v1809_v23  ;;  %v1866_v51 = vld [vmem:[#allocation8 + $0x228] sm:$0xff] }
 0x20b   : > { %4537 = vmatprep.subr.bf16.mxu1 %v4536_v13  ;;  %v4572_v34 = vpack.c.bf16 %v1819_v27, %v1816_v24  ;;  %v1863_v23 = vld [vmem:[#allocation8 + $0x210] sm:$0xff]  ;;  %v1870_v24 = vld [vmem:[#allocation8 + $0x248] sm:$0xff]  ;;  %v1873_v27 = vld [vmem:[#allocation8 + $0x260] sm:$0xff] }
 0x20e   : > { %4539 = vmatpush3.bf16.msra.mxu1 %v4536_v13  ;;  %v4574_v13 = vpack.c.bf16 %v1818_v7, %v1815_v35  ;;  %v1869_v35 = vld [vmem:[#allocation8 + $0x240] sm:$0xff]  ;;  %v1872_v7 = vld [vmem:[#allocation8 + $0x258] sm:$0xff] }
 0x20f   : > { %4541 = vmatprep.subr.bf16.mxu1 %v4540_v39 }
 0x212   : > { %4543 = vmatpush3.bf16.msra.mxu1 %v4540_v39  ;;  %v1828_v39 = vld [vmem:[#allocation8 + $0xf8] sm:$0xff] }
 0x213   : > { %4545 = vmatprep.subr.bf16.mxu1 %v4544_v22 }
 0x216   : > { %4547 = vmatpush3.bf16.msra.mxu1 %v4544_v22  ;;  %v4580_v22 = vpack.c.bf16 %v1831_v58, %v1828_v39  ;;  %v1882_v39 = vld [vmem:[#allocation8 + $0x2a8] sm:$0xff]  ;;  %v1885_v58 = vld [vmem:[#allocation8 + $0x2c0] sm:$0xff] }
 0x217   : > { %4549 = vmatprep.subr.bf16.mxu1 %v4548_v41 }
 0x21a   : > { %4551 = vmatpush3.bf16.msra.mxu1 %v4548_v41  ;;  %v1834_v41 = vld [vmem:[#allocation8 + $0x128] sm:$0xff] }
 0x21b   : > { %4553 = vmatprep.subr.bf16.mxu1 %v4552_v60 }
 0x21e   : > { %4555 = vmatpush3.bf16.msra.mxu1 %v4552_v60  ;;  %v4584_v60 = vpack.c.bf16 %v1837_v54, %v1834_v41  ;;  %v1888_v41 = vld [vmem:[#allocation8 + $0x2d8] sm:$0xff]  ;;  %v1891_v54 = vld [vmem:[#allocation8 + $0x2f0] sm:$0xff] }
 0x21f   : > { %4557 = vmatprep.subr.bf16.mxu1 %v4556_v45 }
 0x222   : > { %4559 = vmatpush3.bf16.msra.mxu1 %v4556_v45  ;;  %v4586_v45 = vpack.c.bf16 %v1836_v21, %v1833_v44  ;;  %v1887_v44 = vld [vmem:[#allocation8 + $0x2d0] sm:$0xff]  ;;  %v1890_v21 = vld [vmem:[#allocation8 + $0x2e8] sm:$0xff] }
 0x223   : > { %4561 = vmatprep.subr.bf16.mxu1 %v4560_v56  ;;  %v1848_v56 = vld [vmem:[#allocation8 + $0x198] sm:$0xff] }
 0x224   : > { %v4594_v0 = vpack.c.bf16 %v1848_v56, %v1845_v55 }
 0x225   : > { %3848 = vmatmul.mubr.f32.vlgmr.msra.gmra.mrb[14].mxu1 %v5584_v29  ;;  %v4576_v29 = vpack.c.bf16 %v1825_v26, %v1822_v36  ;;  %v1876_v36 = vld [vmem:[#allocation8 + $0x278] sm:$0xff]  ;;  %v1879_v26 = vld [vmem:[#allocation8 + $0x290] sm:$0xff] }
 0x226   : > { %4563 = vmatpush1.bf16.msra.mxu1 %v4562_v9  ;;  %v1861_v9 = vld [vmem:[#allocation8 + $0x200] sm:$0xff] }
 0x227   : > { %4565 = vmatprep.subr.bf16.mxu1 %v4564_v42  ;;  %v4600_v42 = vpack.c.bf16 %v1861_v9, %v1858_v8 }
 0x22a   : > { %4567 = vmatpush1.bf16.msra.mxu1 %v4566_v19  ;;  %v4602_v19 = vpack.c.bf16 %v1860_v14, %v1857_v11  ;;  %v4498_v11 = vpack.c.bf16 %v1947_v61, %v1944_v57  ;;  %v1968_v61 = vld [vmem:[#allocation8 + $0x550] sm:$0xff] }
 0x22b   : > { %4569 = vmatprep.subr.bf16.mxu1 %v4568_v20  ;;  %v4604_v20 = vpack.c.bf16 %v1867_v17, %v1864_v15 }
 0x22e   : > { %4571 = vmatpush1.bf16.msra.mxu1 %v4570_v32  ;;  %v4606_v32 = vpack.c.bf16 %v1866_v51, %v1863_v23 }
 0x22f   : > { %4573 = vmatprep.subr.bf16.mxu1 %v4572_v34  ;;  %v4608_v34 = vpack.c.bf16 %v1873_v27, %v1870_v24  ;;  %v2004_v24 = vld [vmem:[#allocation8 + $0x670] sm:$0xff]  ;;  %v2007_v27 = vld [vmem:[#allocation8 + $0x688] sm:$0xff] }
 0x232   : > { %4575 = vmatpush1.bf16.msra.mxu1 %v4574_v13  ;;  %v4610_v13 = vpack.c.bf16 %v1872_v7, %v1869_v35 }
 0x233   : > { %4577 = vmatprep.subr.bf16.mxu1 %v4576_v29  ;;  %v4612_v29 = vpack.c.bf16 %v1879_v26, %v1876_v36  ;;  %v4504_v26 = vpack.c.bf16 %v2007_v27, %v2004_v24  ;;  %v1911_v27 = vld [vmem:[#allocation8 + $0x390] sm:$0xff] }
 0x236   : > { %4579 = vmatpush1.bf16.msra.mxu1 %v4578_v40  ;;  %v4614_v40 = vpack.c.bf16 %v1878_v38, %v1875_v37  ;;  %v2010_v38 = vld [vmem:[#allocation8 + $0x6a0] sm:$0xff] }
 0x237   : > { %4581 = vmatprep.subr.bf16.mxu1 %v4580_v22  ;;  %v4616_v22 = vpack.c.bf16 %v1885_v58, %v1882_v39  ;;  %v2013_v39 = vld [vmem:[#allocation8 + $0x6b8] sm:$0xff] }
 0x23a   : > { %4583 = vmatpush1.bf16.msra.mxu1 %v4582_v43  ;;  %v4618_v43 = vpack.c.bf16 %v1884_v10, %v1881_v53 }
 0x23b   : > { %4585 = vmatprep.subr.bf16.mxu1 %v4584_v60  ;;  %v4620_v60 = vpack.c.bf16 %v1891_v54, %v1888_v41  ;;  %v1900_v41 = vld [vmem:[#allocation8 + $0x338] sm:$0xff]  ;;  %v1903_v54 = vld [vmem:[#allocation8 + $0x350] sm:$0xff] }
 0x23e   : > { %4587 = vmatpush1.bf16.msra.mxu1 %v4586_v45  ;;  %v4622_v45 = vpack.c.bf16 %v1890_v21, %v1887_v44  ;;  %v1965_v44 = vld [vmem:[#allocation8 + $0x538] sm:$0xff] }
 0x23f   : > { %4589 = vmatprep.subr.bf16.mxu1 %v4588_v46  ;;  %v4624_v46 = vpack.c.bf16 %v1897_v12, %v1894_v25  ;;  %v2016_v25 = vld [vmem:[#allocation8 + $0x6d0] sm:$0xff]  ;;  %v2019_v12 = vld [vmem:[#allocation8 + $0x6e8] sm:$0xff] }
 0x240   : > { %v4512_v57 = vpack.c.bf16 %v2019_v12, %v2016_v25  ;;  %v1989_v25 = vld [vmem:[#allocation8 + $0x5f8] sm:$0xff] }
 0x242   : > { %4591 = vmatpush1.bf16.msra.mxu1 %v4590_v16 }
 0x243   : > { %4593 = vmatprep.subr.bf16.mxu1 %v4592_v50 }
 0x246   : > { %4595 = vmatpush1.bf16.msra.mxu1 %v4594_v0 }
 0x247   : > { %4597 = vmatprep.subr.bf16.mxu1 %v4596_v1  ;;  %v1998_v1 = vld [vmem:[#allocation8 + $0x640] sm:$0xff] }
 0x248   : > { %v4500_v17 = vpack.c.bf16 %v2001_v4, %v1998_v1  ;;  %v2022_v4 = vld [vmem:[#allocation8 + $0x700] sm:$0xff] }
 0x24a   : > { %4599 = vmatpush1.bf16.msra.mxu1 %v4598_v63 }
 0x24b   : > { %4601 = vmatprep.subr.bf16.mxu1 %v4600_v42 }
 0x24e   : > { %4603 = vmatpush1.bf16.msra.mxu1 %v4602_v19  ;;  %v1950_v19 = vld [vmem:[#allocation8 + $0x4c0] sm:$0xff] }
 0x24f   : > { %4605 = vmatprep.subr.bf16.mxu1 %v4604_v20  ;;  %v1953_v20 = vld [vmem:[#allocation8 + $0x4d8] sm:$0xff] }
 0x250   : > { %v4502_v35 = vpack.c.bf16 %v1953_v20, %v1950_v19  ;;  %v1977_v19 = vld [vmem:[#allocation8 + $0x598] sm:$0xff] }
 0x252   : > { %4607 = vmatpush1.bf16.msra.mxu1 %v4606_v32 }
 0x253   : > { %4609 = vmatprep.subr.bf16.mxu1 %v4608_v34 }
 0x256   : > { %4611 = vmatpush1.bf16.msra.mxu1 %v4610_v13  ;;  %v1956_v13 = vld [vmem:[#allocation8 + $0x4f0] sm:$0xff] }
 0x257   : > { %4613 = vmatprep.subr.bf16.mxu1 %v4612_v29  ;;  %v1959_v29 = vld [vmem:[#allocation8 + $0x508] sm:$0xff] }
 0x258   : > { %v4506_v10 = vpack.c.bf16 %v1959_v29, %v1956_v13  ;;  %v1980_v29 = vld [vmem:[#allocation8 + $0x5b0] sm:$0xff] }
 0x25a   : > { %4615 = vmatpush1.bf16.msra.mxu1 %v4614_v40  ;;  %v1893_v40 = vld [vmem:[#allocation8 + $0x300] sm:$0xff] }
 0x25b   : > { %4617 = vmatprep.subr.bf16.mxu1 %v4616_v22  ;;  %v1896_v22 = vld [vmem:[#allocation8 + $0x318] sm:$0xff] }
 0x25c   : > { %v4626_v21 = vpack.c.bf16 %v1896_v22, %v1893_v40  ;;  %v2037_v40 = vld [vmem:[#allocation8 + $0x778] sm:$0xff] }
 0x25e   : > { %4619 = vmatpush1.bf16.msra.mxu1 %v4618_v43  ;;  %v4508_v43 = vpack.c.bf16 %v2013_v39, %v2010_v38  ;;  %v2034_v39 = vld [vmem:[#allocation8 + $0x760] sm:$0xff] }
 0x25f   : > { %4621 = vmatprep.subr.bf16.mxu1 %v4620_v60  ;;  %v1962_v60 = vld [vmem:[#allocation8 + $0x520] sm:$0xff] }
 0x262   : > { %4623 = vmatpush1.bf16.msra.mxu1 %v4622_v45 }
 0x263   : > { %4625 = vmatprep.subr.bf16.mxu1 %v4624_v46  ;;  %v4628_v46 = vpack.c.bf16 %v1903_v54, %v1900_v41  ;;  %v1920_v41 = vld [vmem:[#allocation8 + $0x3d8] sm:$0xff] }
 0x29b   : > { %v1540_v16 = vpop.f32.mrb[0].mxu0 }
 0x29c   : > { %v1724_v50 = vadd.f32 %v1712_v47, %v1540_v16  ;;  %v1542_v55 = vpop.f32.mrb[1].mxu0 }
 0x29d   : > { %v1725_v56 = vadd.f32 %v1716_v48, %v1542_v55  ;;  %v1906_v55 = vld [vmem:[#allocation8 + $0x368] sm:$0xff] }
 0x29e   : > { %vm1730_vm6 = vcmp.ge.f32.partialorder %v1724_v50, 0.0  ;;  %v1736_v0 = vmul.f32 0.2, %v1724_v50 }
 0x29f   : > { %v1737_v5 = vmul.f32 0.2, %v1725_v56  ;;  %v1546_v8 = vpop.f32.mrb[2].mxu0  ;;  %vm1731_vm7 = vcmp.ge.f32.partialorder %v1725_v56, 0.0 }
 0x2a0   : > { %v5600_v9 = vsel %vm1730_vm6, %v1724_v50, %v1736_v0  ;;  %v1727_v63 = vadd.f32 %v1712_v47, %v1546_v8  ;;  %v1548_v42 = vpop.f32.mrb[3].mxu0  ;;  %v1899_v47 = vld [vmem:[#allocation8 + $0x330] sm:$0xff]  ;;  %v4510_v50 = vpack.c.bf16 %v1965_v44, %v1962_v60  ;;  %v1971_v0 = vld [vmem:[#allocation8 + $0x568] sm:$0xff]  ;;  %v4524_v44 = vpack.c.bf16 %v2037_v40, %v2034_v39 }
 0x2a1   : > { %v1764_v6 = vrot.slane %v5600_v9, 7  ;;  %v1728_v14 = vadd.f32 %v1716_v48, %v1548_v42  ;;  %v1743_v15 = vsel %vm1731_vm7, %v1725_v56, %v1737_v5  ;;  %v1902_v48 = vld [vmem:[#allocation8 + $0x348] sm:$0xff]  ;;  %v1909_v56 = vld [vmem:[#allocation8 + $0x380] sm:$0xff]  ;;  %v2025_v5 = vld [vmem:[#allocation8 + $0x718] sm:$0xff] }
 0x2a2   : > { %v1739_v23 = vmul.f32 0.2, %v1727_v63  ;;  %v1765_v51 = vrot.slane %v1743_v15, 7  ;;  %2150 = vmatprep.mubr.f32.mxu0 %v1743_v15  ;;  %vm1733_vm8 = vcmp.ge.f32.partialorder %v1727_v63, 0.0  ;;  %v4630_v1 = vpack.c.bf16 %v1902_v48, %v1899_v47  ;;  %v1908_v42 = vld [vmem:[#allocation8 + $0x378] sm:$0xff]  ;;  %v1927_v60 = vld [vmem:[#allocation8 + $0x410] sm:$0xff] }
 0x2a3   : > { %1782 = vst [vmem:[#allocation2] sm:$0xfe] %v1764_v6  ;;  %v1740_v32 = vmul.f32 0.2, %v1728_v14  ;;  %2151 = vmatmul.mubr.f32.vlgmr.msra.gmra.mrb[8].mxu0 %v5600_v9  ;;  %vm1734_vm9 = vcmp.ge.f32.partialorder %v1728_v14, 0.0  ;;  %v4632_v8 = vpack.c.bf16 %v1909_v56, %v1906_v55  ;;  %v1850_v47 = vld [vmem:[#allocation8 + $0x1a8] sm:$0xff] }
 0x2a4   : > { %1783 = vst [vmem:[#allocation2 + $0x8] sm:$0xfe] %v1765_v51  ;;  %4499 = vmatpush3.bf16.msra.mxu0 %v4498_v11  ;;  %v5604_v34 = vsel %vm1733_vm8, %v1727_v63, %v1739_v23  ;;  %v1905_v63 = vld [vmem:[#allocation8 + $0x360] sm:$0xff]  ;;  %v4514_v11 = vpack.c.bf16 %v1971_v0, %v1968_v61  ;;  %v2028_v23 = vld [vmem:[#allocation8 + $0x730] sm:$0xff]  ;;  %v1926_v55 = vld [vmem:[#allocation8 + $0x408] sm:$0xff] }
 0x2a5   : > { %v5606_v7 = vsel %vm1734_vm9, %v1728_v14, %v1740_v32  ;;  %4501 = vmatprep.subr.bf16.mxu0 %v4500_v17  ;;  %v1767_v36 = vrot.slane %v5604_v34, 7  ;;  %v1915_v14 = vld [vmem:[#allocation8 + $0x3b0] sm:$0xff]  ;;  %v1974_v17 = vld [vmem:[#allocation8 + $0x580] sm:$0xff]  ;;  %v4634_v20 = vpack.c.bf16 %v1908_v42, %v1905_v63  ;;  %v1914_v32 = vld [vmem:[#allocation8 + $0x3a8] sm:$0xff] }
 0x2a6   : > { %v1769_v37 = vrot.slane %v5606_v7, 7  ;;  %2156 = vmatprep.mubr.f32.mxu0 %v5606_v7  ;;  %v4638_v38 = vpack.c.bf16 %v1914_v32, %v1911_v27  ;;  %v1933_v61 = vld [vmem:[#allocation8 + $0x440] sm:$0xff]  ;;  %v1856_v63 = vld [vmem:[#allocation8 + $0x1d8] sm:$0xff]  ;;  %v1862_v27 = vld [vmem:[#allocation8 + $0x208] sm:$0xff] }
 0x2a7   : > { %v5612_v58 = vsel %vm1763_vm5, %v1764_v6, %v1767_v36  ;;  %1788 = vst [vmem:[#allocation2 + $0x30] sm:$0x1] %v1767_v36  ;;  %2157 = vmatmul.mubr.f32.gmra.mrb[10].mxu0 %v5604_v34  ;;  %v1912_v6 = vld [vmem:[#allocation8 + $0x398] sm:$0xff]  ;;  %v1918_v36 = vld [vmem:[#allocation8 + $0x3c8] sm:$0xff] }
 0x2a8   : > { %v5616_v53 = vsel %vm1763_vm5, %v1765_v51, %v1769_v37  ;;  %1789 = vst [vmem:[#allocation2 + $0x38] sm:$0x1] %v1769_v37  ;;  %4503 = vmatpush3.bf16.msra.mxu0 %v4502_v35  ;;  %2304 = vmatprep.mubr.f32.mxu0 %v1743_v15  ;;  %v4516_v15 = vpack.c.bf16 %v2025_v5, %v2022_v4  ;;  %v2031_v51 = vld [vmem:[#allocation8 + $0x748] sm:$0xff] }
 0x2a9   : > { %4505 = vmatprep.subr.bf16.mxu0 %v4504_v26  ;;  %v4636_v24 = vpack.c.bf16 %v1915_v14, %v1912_v6  ;;  %v4518_v35 = vpack.c.bf16 %v1977_v19, %v1974_v17  ;;  %v1921_v26 = vld [vmem:[#allocation8 + $0x3e0] sm:$0xff]  ;;  %v4520_v13 = vpack.c.bf16 %v2031_v51, %v2028_v23  ;;  %v1983_v37 = vld [vmem:[#allocation8 + $0x5c8] sm:$0xff]  ;;  %v1932_v6 = vld [vmem:[#allocation8 + $0x438] sm:$0xff] }
 0x2aa   : > { %v5621_v16 = vld [vmem:[#allocation2] sm:$0xff]  ;;  %v4640_v22 = vpack.c.bf16 %v1921_v26, %v1918_v36  ;;  %v4522_v54 = vpack.c.bf16 %v1983_v37, %v1980_v29  ;;  %v1802_v4 = vld [vmem:[#allocation8 + $0x28] sm:$0xff] }
 0x2ab   : > { %v5618_v45 = vld [vmem:[#allocation2 + $0x8] sm:$0xff]  ;;  %v1939_v17 = vld [vmem:[#allocation8 + $0x470] sm:$0xff]  ;;  %v1938_v36 = vld [vmem:[#allocation8 + $0x468] sm:$0xff] }
 0x2ac   : > { %4507 = vmatpush3.bf16.msra.mxu0 %v4506_v10  ;;  %2454 = vmatprep.mubr.f32.mxu1 %v5618_v45  ;;  %v1917_v10 = vld [vmem:[#allocation8 + $0x3c0] sm:$0xff]  ;;  %v1808_v23 = vld [vmem:[#allocation8 + $0x58] sm:$0xff]  ;;  %v1898_v29 = vld [vmem:[#allocation8 + $0x328] sm:$0xff] }
 0x2ad   : > { %2455 = vmatmul.mubr.f32.vlgmr.msra.gmra.mrb[10].mxu1 %v5621_v16  ;;  %4509 = vmatprep.subr.bf16.mxu0 %v4508_v43  ;;  %v1924_v43 = vld [vmem:[#allocation8 + $0x3f8] sm:$0xff]  ;;  %v4642_v12 = vpack.c.bf16 %v1920_v41, %v1917_v10  ;;  %v1814_v39 = vld [vmem:[#allocation8 + $0x88] sm:$0xff]  ;;  %v1901_v41 = vld [vmem:[#allocation8 + $0x340] sm:$0xff] }
 0x2ae   : > { %4627 = vmatpush1.bf16.msra.mxu1 %v4626_v21  ;;  %2460 = vmatprep.mubr.f32.mxu1 %v5616_v53  ;;  %v1986_v21 = vld [vmem:[#allocation8 + $0x5e0] sm:$0xff]  ;;  %v4644_v48 = vpack.c.bf16 %v1927_v60, %v1924_v43  ;;  %v1868_v10 = vld [vmem:[#allocation8 + $0x238] sm:$0xff] }
 0x2af   : > { %4629 = vmatprep.subr.bf16.mxu1 %v4628_v46  ;;  %v1847_v46 = vld [vmem:[#allocation8 + $0x190] sm:$0xff]  ;;  %v4526_v56 = vpack.c.bf16 %v1989_v25, %v1986_v21  ;;  %v1817_v60 = vld [vmem:[#allocation8 + $0xa0] sm:$0xff]  ;;  %v1874_v25 = vld [vmem:[#allocation8 + $0x268] sm:$0xff] }
 0x2b0   : > { %4511 = vmatpush3.bf16.msra.mxu0 %v4510_v50  ;;  %v1923_v50 = vld [vmem:[#allocation8 + $0x3f0] sm:$0xff]  ;;  %v4656_v0 = vpack.c.bf16 %v1850_v47, %v1847_v46  ;;  %v1793_v46 = vld [vmem:[#allocation2 + $0x10] sm:$0xff] }
 0x2b1   : > { %4513 = vmatprep.subr.bf16.mxu0 %v4512_v57  ;;  %2461 = vmatmul.mubr.f32.gmra.mrb[12].mxu1 %v5612_v58  ;;  %v1930_v57 = vld [vmem:[#allocation8 + $0x428] sm:$0xff]  ;;  %v4646_v5 = vpack.c.bf16 %v1926_v55, %v1923_v50  ;;  %v1871_v21 = vld [vmem:[#allocation8 + $0x250] sm:$0xff] }
 0x2b2   : > { %4631 = vmatpush1.bf16.msra.mxu1 %v4630_v1  ;;  %2531 = vmatprep.mubr.f32.mxu1 %v5224_v49  ;;  %v1799_v1 = vld [vmem:[#allocation8 + $0x10] sm:$0xff]  ;;  %v4648_v42 = vpack.c.bf16 %v1933_v61, %v1930_v57  ;;  %v1826_v55 = vld [vmem:[#allocation8 + $0xe8] sm:$0xff]  ;;  %v1880_v57 = vld [vmem:[#allocation8 + $0x298] sm:$0xff] }
 0x2b3   : > { %4633 = vmatprep.subr.bf16.mxu1 %v4632_v8  ;;  %v1853_v8 = vld [vmem:[#allocation8 + $0x1c0] sm:$0xff]  ;;  %v4658_v14 = vpack.c.bf16 %v1802_v4, %v1799_v1  ;;  %v1907_v47 = vld [vmem:[#allocation8 + $0x370] sm:$0xff] }
 0x2b4   : > { %4515 = vmatpush3.bf16.msra.mxu0 %v4514_v11  ;;  %v1929_v11 = vld [vmem:[#allocation8 + $0x420] sm:$0xff]  ;;  %v4660_v19 = vpack.c.bf16 %v1856_v63, %v1853_v8  ;;  %v1823_v50 = vld [vmem:[#allocation8 + $0xd0] sm:$0xff] }
 0x2b5   : > { %4517 = vmatprep.subr.bf16.mxu0 %v4516_v15  ;;  %v1936_v15 = vld [vmem:[#allocation8 + $0x458] sm:$0xff]  ;;  %v4650_v51 = vpack.c.bf16 %v1932_v6, %v1929_v11  ;;  %v4674_v1 = vpack.c.bf16 %v1826_v55, %v1823_v50  ;;  %v1913_v4 = vld [vmem:[#allocation8 + $0x3a0] sm:$0xff]  ;;  %v1883_v11 = vld [vmem:[#allocation8 + $0x2b0] sm:$0xff] }
 0x2b6   : > { %4635 = vmatpush1.bf16.msra.mxu1 %v4634_v20  ;;  %v1805_v20 = vld [vmem:[#allocation8 + $0x40] sm:$0xff]  ;;  %v4652_v32 = vpack.c.bf16 %v1939_v17, %v1936_v15  ;;  %v1886_v6 = vld [vmem:[#allocation8 + $0x2c8] sm:$0xff]  ;;  %v1919_v17 = vld [vmem:[#allocation8 + $0x3d0] sm:$0xff] }
 0x2b7   : > { %4637 = vmatprep.subr.bf16.mxu1 %v4636_v24  ;;  %v1859_v24 = vld [vmem:[#allocation8 + $0x1f0] sm:$0xff]  ;;  %v4662_v26 = vpack.c.bf16 %v1808_v23, %v1805_v20  ;;  %v1829_v63 = vld [vmem:[#allocation8 + $0x100] sm:$0xff]  ;;  %v4680_v20 = vpack.c.bf16 %v1886_v6, %v1883_v11  ;;  %v2769_v50 = vld [vmem:[#allocation8 + $0xb08] sm:$0xff] }
 0x2b8   : > { %4519 = vmatpush3.bf16.msra.mxu0 %v4518_v35  ;;  %v1935_v35 = vld [vmem:[#allocation8 + $0x450] sm:$0xff]  ;;  %v4664_v37 = vpack.c.bf16 %v1862_v27, %v1859_v24  ;;  %v1889_v24 = vld [vmem:[#allocation8 + $0x2e0] sm:$0xff]  ;;  %v1892_v27 = vld [vmem:[#allocation8 + $0x2f8] sm:$0xff] }
 0x2b9   : > { %4521 = vmatprep.subr.bf16.mxu0 %v4520_v13  ;;  %v1895_v13 = vld [vmem:[#allocation8 + $0x310] sm:$0xff]  ;;  %v4654_v40 = vpack.c.bf16 %v1938_v36, %v1935_v35  ;;  %v1925_v36 = vld [vmem:[#allocation8 + $0x400] sm:$0xff]  ;;  %v2775_v11 = vld [vmem:[#allocation8 + $0xb38] sm:$0xff] }
 0x2ba   : > { %4639 = vmatpush1.bf16.msra.mxu1 %v4638_v38  ;;  %v1811_v38 = vld [vmem:[#allocation8 + $0x70] sm:$0xff] }
 0x2bb   : > { %4641 = vmatprep.subr.bf16.mxu1 %v4640_v22  ;;  %v1865_v22 = vld [vmem:[#allocation8 + $0x220] sm:$0xff]  ;;  %v1835_v23 = vld [vmem:[#allocation8 + $0x130] sm:$0xff] }
 0x2bc   : > { %4523 = vmatpush3.bf16.msra.mxu0 %v4522_v54  ;;  %v1904_v54 = vld [vmem:[#allocation8 + $0x358] sm:$0xff]  ;;  %v4668_v43 = vpack.c.bf16 %v1868_v10, %v1865_v22  ;;  %v1931_v10 = vld [vmem:[#allocation8 + $0x430] sm:$0xff] }
 0x2bd   : > { %4525 = vmatprep.subr.bf16.mxu0 %v4524_v44  ;;  %v1820_v44 = vld [vmem:[#allocation8 + $0xb8] sm:$0xff] }
 0x2be   : > { %4643 = vmatpush1.bf16.msra.mxu1 %v4642_v12  ;;  %v4692_v12 = vpack.c.bf16 %v1904_v54, %v1901_v41  ;;  %v2706_v41 = vld [vmem:[#allocation8 + $0x910] sm:$0xff]  ;;  %v2709_v54 = vld [vmem:[#allocation8 + $0x928] sm:$0xff] }
 0x2bf   : > { %4645 = vmatprep.subr.bf16.mxu1 %v4644_v48  ;;  %v1910_v48 = vld [vmem:[#allocation8 + $0x388] sm:$0xff] }
 0x2c0   : > { %4527 = vmatpush3.bf16.msra.mxu0 %v4526_v56  ;;  %v1877_v56 = vld [vmem:[#allocation8 + $0x280] sm:$0xff]  ;;  %v4696_v61 = vpack.c.bf16 %v1910_v48, %v1907_v47  ;;  %v2715_v48 = vld [vmem:[#allocation8 + $0x958] sm:$0xff] }
 0x2c1   : > { %4657 = vmatprep.subr.bf16.mxu0 %v4656_v0  ;;  %v5632_v0 = vld [vmem:[#allocation2 + $0x28] sm:$0xff]  ;;  %v4676_v8 = vpack.c.bf16 %v1880_v57, %v1877_v56 }
 0x2c2   : > { %4647 = vmatpush1.bf16.msra.mxu1 %v4646_v5  ;;  %v1916_v5 = vld [vmem:[#allocation8 + $0x3b8] sm:$0xff]  ;;  %v2712_v47 = vld [vmem:[#allocation8 + $0x940] sm:$0xff] }
 0x2c3   : > { %2305 = vmatmul.mubr.f32.vlgmr.msra.gmra.mrb[12].mxu0 %v5600_v9  ;;  %4649 = vmatprep.subr.bf16.mxu1 %v4648_v42  ;;  %v4688_v9 = vpack.c.bf16 %v1898_v29, %v1895_v13  ;;  %v1832_v42 = vld [vmem:[#allocation8 + $0x118] sm:$0xff]  ;;  %v4684_v13 = vpack.c.bf16 %v1892_v27, %v1889_v24  ;;  %v1841_v29 = vld [vmem:[#allocation8 + $0x160] sm:$0xff]  ;;  %v4822_v57 = vpack.c.bf16 %v2715_v48, %v2712_v47  ;;  %v2790_v47 = vld [vmem:[#allocation8 + $0xbb0] sm:$0xff] }
 0x2c4   : > { %2309 = vmatprep.mubr.f32.mxu0 %v5606_v7  ;;  %4659 = vmatpush3.bf16.msra.mxu0 %v4658_v14  ;;  %v4666_v7 = vpack.c.bf16 %v1814_v39, %v1811_v38  ;;  %v4700_v14 = vpack.c.bf16 %v1916_v5, %v1913_v4  ;;  %v4678_v15 = vpack.c.bf16 %v1832_v42, %v1829_v63  ;;  %v2754_v38 = vld [vmem:[#allocation8 + $0xa90] sm:$0xff]  ;;  %v2757_v39 = vld [vmem:[#allocation8 + $0xaa8] sm:$0xff]  ;;  %v2861_v4 = vrot.slane %v5616_v53, 2  ;;  %v2772_v42 = vld [vmem:[#allocation8 + $0xb20] sm:$0xff] }
 0x2c5   : > { %4661 = vmatprep.subr.bf16.mxu0 %v4660_v19  ;;  %v1922_v19 = vld [vmem:[#allocation8 + $0x3e8] sm:$0xff]  ;;  %v2727_v24 = vld [vmem:[#allocation8 + $0x9b8] sm:$0xff] }
 0x2c6   : > { %4651 = vmatpush1.bf16.msra.mxu1 %v4650_v51  ;;  %v1838_v51 = vld [vmem:[#allocation8 + $0x148] sm:$0xff] }
 0x2c7   : > { %2310 = vmatmul.mubr.f32.gmra.mrb[14].mxu0 %v5604_v34  ;;  %4653 = vmatprep.subr.bf16.mxu1 %v4652_v32  ;;  %v4670_v34 = vpack.c.bf16 %v1820_v44, %v1817_v60  ;;  %v4704_v32 = vpack.c.bf16 %v1922_v19, %v1919_v17  ;;  %v4682_v35 = vpack.c.bf16 %v1838_v51, %v1835_v23  ;;  %v2763_v60 = vld [vmem:[#allocation8 + $0xad8] sm:$0xff]  ;;  %v2721_v63 = vld [vmem:[#allocation8 + $0x988] sm:$0xff]  ;;  %v2724_v51 = vld [vmem:[#allocation8 + $0x9a0] sm:$0xff] }
 0x2c8   : > { %4663 = vmatpush3.bf16.msra.mxu0 %v4662_v26  ;;  %2608 = vmatprep.mubr.f32.mxu0 %v5618_v45  ;;  %v4672_v45 = vpack.c.bf16 %v1874_v25, %v1871_v21  ;;  %v1928_v26 = vld [vmem:[#allocation8 + $0x418] sm:$0xff]  ;;  %v4818_v21 = vpack.c.bf16 %v2709_v54, %v2706_v41  ;;  %v4828_v23 = vpack.c.bf16 %v2775_v11, %v2772_v42  ;;  %v2716_v54 = vld [vmem:[#allocation8 + $0x960] sm:$0xff]  ;;  %v2793_v48 = vld [vmem:[#allocation8 + $0xbc8] sm:$0xff] }
 0x2c9   : > { %4665 = vmatprep.subr.bf16.mxu0 %v4664_v37  ;;  %v1844_v37 = vld [vmem:[#allocation8 + $0x178] sm:$0xff]  ;;  %v2796_v42 = vld [vmem:[#allocation8 + $0xbe0] sm:$0xff] }
 0x2ca   : > { %4655 = vmatpush1.bf16.msra.mxu1 %v4654_v40  ;;  %v4708_v40 = vpack.c.bf16 %v1928_v26, %v1925_v36  ;;  %v4686_v22 = vpack.c.bf16 %v1844_v37, %v1841_v29  ;;  %v2695_v25 = vld [vmem:[#allocation2 + $0x8] sm:$0xfc]  ;;  %v2710_v26 = vld [vmem:[#allocation8 + $0x930] sm:$0xff]  ;;  %v4830_v29 = vpack.c.bf16 %v2727_v24, %v2724_v51  ;;  %v2717_v37 = vld [vmem:[#allocation8 + $0x968] sm:$0xff] }
 0x2cb   : > { %4689 = vmatprep.subr.bf16.mxu1 %v4688_v9  ;;  %v2860_v55 = vrot.slane %v2695_v25, 2  ;;  %v2711_v19 = vld [vmem:[#allocation8 + $0x938] sm:$0xff] }
 0x2cc   : > { %4667 = vmatpush3.bf16.msra.mxu0 %v4666_v7  ;;  %v4816_v7 = vpack.c.bf16 %v2757_v39, %v2754_v38  ;;  %v2720_v38 = vld [vmem:[#allocation8 + $0x980] sm:$0xff]  ;;  %v2799_v11 = vld [vmem:[#allocation8 + $0xbf8] sm:$0xff] }
 0x2cd   : > { %2532 = vmatmul.mubr.f32.vlgmr.msra.gmra.mrb[10].mxu1 %v1793_v46  ;;  %4669 = vmatprep.subr.bf16.mxu0 %v4668_v43  ;;  %v2760_v43 = vld [vmem:[#allocation8 + $0xac0] sm:$0xff]  ;;  %v4728_v41 = vpack.c.bf16 %v2720_v38, %v2717_v37  ;;  %v2751_v51 = vld [vmem:[#allocation8 + $0xa78] sm:$0xff] }
 0x2ce   : > { %4691 = vmatpush3.bf16.msra.mxu1 %v4688_v9  ;;  %2537 = vmatprep.mubr.f32.mxu1 %v5224_v49  ;;  %v1934_v9 = vld [vmem:[#allocation8 + $0x448] sm:$0xff]  ;;  %v2744_v37 = vld [vmem:[#allocation8 + $0xa40] sm:$0xff] }
 0x2cf   : > { %4693 = vmatprep.subr.bf16.mxu1 %v4692_v12  ;;  %v4712_v44 = vpack.c.bf16 %v1934_v9, %v1931_v10  ;;  %v2784_v9 = vld [vmem:[#allocation8 + $0xb80] sm:$0xff] }
 0x2d0   : > { %4671 = vmatpush3.bf16.msra.mxu0 %v4670_v34  ;;  %v4820_v34 = vpack.c.bf16 %v2763_v60, %v2760_v43  ;;  %v2719_v43 = vld [vmem:[#allocation8 + $0x978] sm:$0xff] }
 0x2d1   : > { %2538 = vmatmul.mubr.f32.gmra.mrb[12].mxu1 %v5632_v0  ;;  %4673 = vmatprep.subr.bf16.mxu0 %v4672_v45  ;;  %v2766_v45 = vld [vmem:[#allocation8 + $0xaf0] sm:$0xff] }
 0x2d2   : > { %4695 = vmatpush3.bf16.msra.mxu1 %v4692_v12  ;;  %3882 = vmatprep.mubr.f32.mxu1 %v1793_v46  ;;  %v1937_v12 = vld [vmem:[#allocation8 + $0x460] sm:$0xff]  ;;  %v1940_v46 = vld [vmem:[#allocation8 + $0x478] sm:$0xff]  ;;  %v4824_v5 = vpack.c.bf16 %v2769_v50, %v2766_v45  ;;  %v2722_v50 = vld [vmem:[#allocation8 + $0x990] sm:$0xff] }
 0x2d3   : > { %4697 = vmatprep.subr.bf16.mxu1 %v4696_v61  ;;  %v4716_v56 = vpack.c.bf16 %v1940_v46, %v1937_v12  ;;  %v2736_v12 = vld [vmem:[#allocation8 + $0xa00] sm:$0xff]  ;;  %v2739_v46 = vld [vmem:[#allocation8 + $0xa18] sm:$0xff] }
 0x2d4   : > { %4675 = vmatpush3.bf16.msra.mxu0 %v4674_v1  ;;  %v2708_v1 = vld [vmem:[#allocation8 + $0x920] sm:$0xff] }
 0x2d5   : > { %4677 = vmatprep.subr.bf16.mxu0 %v4676_v8  ;;  %v2718_v8 = vld [vmem:[#allocation8 + $0x970] sm:$0xff] }
 0x2d6   : > { %4699 = vmatpush3.bf16.msra.mxu1 %v4696_v61  ;;  %v2705_v61 = vld [vmem:[#allocation8 + $0x908] sm:$0xff]  ;;  %v4826_v17 = vpack.c.bf16 %v2721_v63, %v2718_v8 }
 0x2d7   : > { %4701 = vmatprep.subr.bf16.mxu1 %v4700_v14  ;;  %v4720_v6 = vpack.c.bf16 %v2708_v1, %v2705_v61  ;;  %v2732_v61 = vld [vmem:[#allocation8 + $0x9e0] sm:$0xff]  ;;  %v4840_v1 = vpack.c.bf16 %v2793_v48, %v2790_v47  ;;  %v2745_v8 = vld [vmem:[#allocation8 + $0xa48] sm:$0xff] }
 0x2d8   : > { %4679 = vmatpush3.bf16.msra.mxu0 %v4678_v15  ;;  %v2707_v15 = vld [vmem:[#allocation8 + $0x918] sm:$0xff]  ;;  %v2756_v47 = vld [vmem:[#allocation8 + $0xaa0] sm:$0xff] }
 0x2d9   : > { %4681 = vmatprep.subr.bf16.mxu0 %v4680_v20  ;;  %v2714_v20 = vld [vmem:[#allocation8 + $0x950] sm:$0xff] }
 0x2da   : > { %4703 = vmatpush3.bf16.msra.mxu1 %v4700_v14  ;;  %v2704_v14 = vld [vmem:[#allocation8 + $0x900] sm:$0xff]  ;;  %v4724_v36 = vpack.c.bf16 %v2714_v20, %v2711_v19  ;;  %v2738_v19 = vld [vmem:[#allocation8 + $0xa10] sm:$0xff]  ;;  %v4844_v20 = vpack.c.bf16 %v2799_v11, %v2796_v42 }
 0x2db   : > { %4705 = vmatprep.subr.bf16.mxu1 %v4704_v32  ;;  %v4722_v27 = vpack.c.bf16 %v2707_v15, %v2704_v14  ;;  %v2731_v14 = vld [vmem:[#allocation8 + $0x9d8] sm:$0xff] }
 0x2dc   : > { %4683 = vmatpush3.bf16.msra.mxu0 %v4682_v35  ;;  %v2781_v35 = vld [vmem:[#allocation8 + $0xb68] sm:$0xff] }
 0x2dd   : > { %4685 = vmatprep.subr.bf16.mxu0 %v4684_v13  ;;  %v2713_v13 = vld [vmem:[#allocation8 + $0x948] sm:$0xff] }
 0x2de   : > { %4707 = vmatpush3.bf16.msra.mxu1 %v4704_v32  ;;  %v2778_v32 = vld [vmem:[#allocation8 + $0xb50] sm:$0xff]  ;;  %v4726_v10 = vpack.c.bf16 %v2713_v13, %v2710_v26  ;;  %v2701_v13 = vld [vmem:[#allocation2 + $0x38] sm:$0x3] }
 0x2df   : > { %4709 = vmatprep.subr.bf16.mxu1 %v4708_v40  ;;  %v4832_v39 = vpack.c.bf16 %v2781_v35, %v2778_v32  ;;  %v2734_v32 = vld [vmem:[#allocation8 + $0x9f0] sm:$0xff]  ;;  %v2737_v35 = vld [vmem:[#allocation8 + $0xa08] sm:$0xff] }
 0x2e0   : > { %4687 = vmatpush3.bf16.msra.mxu0 %v4686_v22  ;;  %v2733_v22 = vld [vmem:[#allocation8 + $0x9e8] sm:$0xff]  ;;  %v4742_v38 = vpack.c.bf16 %v2737_v35, %v2734_v32  ;;  %v2776_v35 = vld [vmem:[#allocation8 + $0xb40] sm:$0xff] }
 0x2e1   : > { %4817 = vmatprep.subr.bf16.mxu0 %v4816_v7  ;;  %v2787_v7 = vld [vmem:[#allocation8 + $0xb98] sm:$0xff] }
 0x2e2   : > { %4711 = vmatpush3.bf16.msra.mxu1 %v4708_v40  ;;  %v2730_v40 = vld [vmem:[#allocation8 + $0x9d0] sm:$0xff]  ;;  %v4836_v25 = vpack.c.bf16 %v2787_v7, %v2784_v9  ;;  %v2743_v9 = vld [vmem:[#allocation8 + $0xa38] sm:$0xff]  ;;  %v2700_v7 = vld [vmem:[#allocation2 + $0x30] sm:$0x3] }
 0x2e3   : > { %2609 = vmatmul.mubr.f32.vlgmr.msra.gmra.mrb[16].mxu0 %v5621_v16  ;;  %4713 = vmatprep.subr.bf16.mxu1 %v4712_v44  ;;  %v2862_v16 = vsel %vm1375_vm1, %v2860_v55, %v2861_v4  ;;  %v4834_v60 = vpack.c.bf16 %v2733_v22, %v2730_v40  ;;  %v2725_v55 = vld [vmem:[#allocation8 + $0x9a8] sm:$0xff]  ;;  %v2868_v40 = vrot.slane %v2701_v13, 2  ;;  %v2786_v13 = vld [vmem:[#allocation8 + $0xb90] sm:$0xff] }
 0x2e4   : > { %2613 = vmatprep.mubr.f32.mxu0 %v5616_v53  ;;  %4819 = vmatpush3.bf16.msra.mxu0 %v4818_v21  ;;  %v2726_v21 = vld [vmem:[#allocation8 + $0x9b0] sm:$0xff]  ;;  %v4734_v63 = vpack.c.bf16 %v2725_v55, %v2722_v50  ;;  %v2752_v50 = vld [vmem:[#allocation8 + $0xa80] sm:$0xff]  ;;  %v2759_v55 = vld [vmem:[#allocation8 + $0xab8] sm:$0xff] }
 0x2e5   : > { %4821 = vmatprep.subr.bf16.mxu0 %v4820_v34  ;;  %v4730_v34 = vpack.c.bf16 %v2719_v43, %v2716_v54  ;;  %v2747_v54 = vld [vmem:[#allocation8 + $0xa58] sm:$0xff]  ;;  %v2750_v43 = vld [vmem:[#allocation8 + $0xa70] sm:$0xff] }
 0x2e6   : > { %4715 = vmatpush3.bf16.msra.mxu1 %v4712_v44  ;;  %v2723_v44 = vld [vmem:[#allocation8 + $0x998] sm:$0xff] }
 0x2e7   : > { %2614 = vmatmul.mubr.f32.gmra.mrb[18].mxu0 %v5612_v58  ;;  %4717 = vmatprep.subr.bf16.mxu1 %v4716_v56  ;;  %v4732_v45 = vpack.c.bf16 %v2726_v21, %v2723_v44  ;;  %v2866_v21 = vrot.slane %v2700_v7, 2  ;;  %v2788_v7 = vld [vmem:[#allocation8 + $0xba0] sm:$0xff] }
 0x2e8   : > { %4823 = vmatpush3.bf16.msra.mxu0 %v4822_v57  ;;  %3096 = vmatprep.mubr.f32.mxu0 %v2862_v16  ;;  %v2729_v57 = vld [vmem:[#allocation8 + $0x9c8] sm:$0xff] }
 0x2e9   : > { %4825 = vmatprep.subr.bf16.mxu0 %v4824_v5  ;;  %v2742_v5 = vld [vmem:[#allocation8 + $0xa30] sm:$0xff] }
 0x2ea   : > { %4719 = vmatpush3.bf16.msra.mxu1 %v4716_v56  ;;  %v4838_v56 = vpack.c.bf16 %v2739_v46, %v2736_v12  ;;  %v4842_v15 = vpack.c.bf16 %v2745_v8, %v2742_v5  ;;  %v4748_v12 = vpack.c.bf16 %v2750_v43, %v2747_v54  ;;  %v2746_v46 = vld [vmem:[#allocation8 + $0xa50] sm:$0xff]  ;;  %v2761_v5 = vld [vmem:[#allocation8 + $0xac8] sm:$0xff]  ;;  %v2795_v54 = vld [vmem:[#allocation8 + $0xbd8] sm:$0xff] }
 0x2eb   : > { %4721 = vmatprep.subr.bf16.mxu1 %v4720_v6  ;;  %v2728_v6 = vld [vmem:[#allocation8 + $0x9c0] sm:$0xff]  ;;  %v2765_v8 = vld [vmem:[#allocation8 + $0xae8] sm:$0xff]  ;;  %v2798_v43 = vld [vmem:[#allocation8 + $0xbf0] sm:$0xff] }
 0x2ec   : > { %4827 = vmatpush3.bf16.msra.mxu0 %v4826_v17  ;;  %v2735_v17 = vld [vmem:[#allocation8 + $0x9f8] sm:$0xff]  ;;  %v4738_v24 = vpack.c.bf16 %v2731_v14, %v2728_v6 }
 0x2ed   : > { %3883 = vmatmul.mubr.f32.vlgmr.msra.gmra.mrb[14].mxu1 %v5632_v0  ;;  %4829 = vmatprep.subr.bf16.mxu0 %v4828_v23  ;;  %v2748_v23 = vld [vmem:[#allocation8 + $0xa60] sm:$0xff]  ;;  %v2767_v6 = vld [vmem:[#allocation8 + $0xaf8] sm:$0xff] }
 0x2ee   : > { %4723 = vmatpush1.bf16.msra.mxu1 %v4722_v27  ;;  %2942 = vmatprep.mubr.f32.mxu1 %v2862_v16  ;;  %v4736_v16 = vpack.c.bf16 %v2732_v61, %v2729_v57  ;;  %v4740_v27 = vpack.c.bf16 %v2738_v19, %v2735_v17  ;;  %v4846_v26 = vpack.c.bf16 %v2751_v51, %v2748_v23  ;;  %v2771_v14 = vld [vmem:[#allocation8 + $0xb18] sm:$0xff]  ;;  %v2773_v23 = vld [vmem:[#allocation8 + $0xb28] sm:$0xff] }
 0x2ef   : > { %4725 = vmatprep.subr.bf16.mxu1 %v4724_v36  ;;  %v2694_v36 = vld [vmem:[#allocation2] sm:$0xfc]  ;;  %v2777_v51 = vld [vmem:[#allocation8 + $0xb48] sm:$0xff] }
 0x2f0   : > { %4831 = vmatpush3.bf16.msra.mxu0 %v4830_v29  ;;  %v2741_v29 = vld [vmem:[#allocation8 + $0xa28] sm:$0xff] }
 0x2f1   : > { %4833 = vmatprep.subr.bf16.mxu0 %v4832_v39  ;;  %v2857_v39 = vrot.slane %v2694_v36, 2  ;;  %v4744_v22 = vpack.c.bf16 %v2744_v37, %v2741_v29  ;;  %v2779_v36 = vld [vmem:[#allocation8 + $0xb58] sm:$0xff] }
 0x2f2   : > { %4727 = vmatpush1.bf16.msra.mxu1 %v4726_v10  ;;  %v2740_v10 = vld [vmem:[#allocation8 + $0xa20] sm:$0xff]  ;;  %v4770_v29 = vpack.c.bf16 %v2779_v36, %v2776_v35  ;;  %v2834_v35 = vld [vmem:[#allocation8 + $0xd10] sm:$0xff] }
 0x2f3   : > { %4729 = vmatprep.subr.bf16.mxu1 %v4728_v41  ;;  %v2858_v41 = vrot.slane %v5612_v58, 2  ;;  %v4746_v44 = vpack.c.bf16 %v2743_v9, %v2740_v10  ;;  %v2753_v58 = vld [vmem:[#allocation8 + $0xa88] sm:$0xff] }
 0x2f4   : > { %4835 = vmatpush3.bf16.msra.mxu0 %v4834_v60  ;;  %v4752_v53 = vpack.c.bf16 %v2756_v47, %v2753_v58  ;;  %v2804_v58 = vld [vmem:[#allocation8 + $0xc20] sm:$0xff] }
 0x2f5   : > { %4837 = vmatprep.subr.bf16.mxu0 %v4836_v25  ;;  %v5645_v60 = vsel %vm1375_vm1, %v2857_v39, %v2858_v41  ;;  %v5651_v25 = vsel %vm1375_vm1, %v2861_v4, %v2868_v40  ;;  %v5655_v48 = vsel %vm1375_vm1, %v2858_v41, %v2866_v21  ;;  %v2755_v4 = vld [vmem:[#allocation8 + $0xa98] sm:$0xff]  ;;  %v2785_v39 = vld [vmem:[#allocation8 + $0xb88] sm:$0xff]  ;;  %v4780_v21 = vpack.c.bf16 %v2798_v43, %v2795_v54  ;;  %v2842_v54 = vld [vmem:[#allocation8 + $0xd50] sm:$0xff] }
 0x2f6   : > { %4731 = vmatpush1.bf16.msra.mxu1 %v4730_v34  ;;  %v2749_v34 = vld [vmem:[#allocation8 + $0xa68] sm:$0xff]  ;;  %v4754_v57 = vpack.c.bf16 %v2755_v4, %v2752_v50  ;;  %v2791_v41 = vld [vmem:[#allocation8 + $0xbb8] sm:$0xff] }
 0x2f7   : > { %4733 = vmatprep.subr.bf16.mxu1 %v4732_v45  ;;  %v4750_v45 = vpack.c.bf16 %v2749_v34, %v2746_v46  ;;  %v2789_v40 = vld [vmem:[#allocation8 + $0xba8] sm:$0xff]  ;;  %v2803_v50 = vld [vmem:[#allocation8 + $0xc18] sm:$0xff] }
 0x2f8   : > { %4839 = vmatpush3.bf16.msra.mxu0 %v4838_v56  ;;  %v2762_v56 = vld [vmem:[#allocation8 + $0xad0] sm:$0xff]  ;;  %v2797_v46 = vld [vmem:[#allocation8 + $0xbe8] sm:$0xff]  ;;  %v2807_v4 = vld [vmem:[#allocation8 + $0xc38] sm:$0xff] }
 0x2f9   : > { %4841 = vmatprep.subr.bf16.mxu0 %v4840_v1  ;;  %v4756_v61 = vpack.c.bf16 %v2762_v56, %v2759_v55  ;;  %v2758_v1 = vld [vmem:[#allocation8 + $0xab0] sm:$0xff]  ;;  %v2801_v34 = vld [vmem:[#allocation8 + $0xc08] sm:$0xff] }
 0x2fa   : > { %4735 = vmatpush1.bf16.msra.mxu1 %v4734_v63  ;;  %v2768_v63 = vld [vmem:[#allocation8 + $0xb00] sm:$0xff]  ;;  %v4758_v42 = vpack.c.bf16 %v2761_v5, %v2758_v1  ;;  %v2810_v55 = vld [vmem:[#allocation8 + $0xc50] sm:$0xff]  ;;  %v2809_v1 = vld [vmem:[#allocation8 + $0xc48] sm:$0xff] }
 0x2fb   : > { %4737 = vmatprep.subr.bf16.mxu1 %v4736_v16  ;;  %v4760_v11 = vpack.c.bf16 %v2768_v63, %v2765_v8  ;;  %v2764_v16 = vld [vmem:[#allocation8 + $0xae0] sm:$0xff]  ;;  %v2813_v5 = vld [vmem:[#allocation8 + $0xc68] sm:$0xff] }
 0x2fc   : > { %4843 = vmatpush3.bf16.msra.mxu0 %v4842_v15  ;;  %v2774_v15 = vld [vmem:[#allocation8 + $0xb30] sm:$0xff]  ;;  %v4762_v17 = vpack.c.bf16 %v2767_v6, %v2764_v16  ;;  %v2816_v8 = vld [vmem:[#allocation8 + $0xc80] sm:$0xff]  ;;  %v2815_v16 = vld [vmem:[#allocation8 + $0xc78] sm:$0xff] }
 0x2fd   : > { %4845 = vmatprep.subr.bf16.mxu0 %v4844_v20  ;;  %v4764_v19 = vpack.c.bf16 %v2774_v15, %v2771_v14  ;;  %v2770_v20 = vld [vmem:[#allocation8 + $0xb10] sm:$0xff]  ;;  %v2819_v6 = vld [vmem:[#allocation8 + $0xc98] sm:$0xff]  ;;  %v2845_v43 = vld [vmem:[#allocation8 + $0xd68] sm:$0xff] }
 0x2fe   : > { %4739 = vmatpush1.bf16.msra.mxu1 %v4738_v24  ;;  %v2780_v24 = vld [vmem:[#allocation8 + $0xb60] sm:$0xff]  ;;  %v2822_v14 = vld [vmem:[#allocation8 + $0xcb0] sm:$0xff] }
 0x2ff   : > { %4741 = vmatprep.subr.bf16.mxu1 %v4740_v27  ;;  %v4766_v27 = vpack.c.bf16 %v2773_v23, %v2770_v20  ;;  %v4768_v32 = vpack.c.bf16 %v2780_v24, %v2777_v51  ;;  %v2825_v20 = vld [vmem:[#allocation8 + $0xcc8] sm:$0xff]  ;;  %v2824_v24 = vld [vmem:[#allocation8 + $0xcc0] sm:$0xff] }
 0x300   : > { %4847 = vmatpush3.bf16.msra.mxu0 %v4846_v26  ;;  %v2783_v26 = vld [vmem:[#allocation8 + $0xb78] sm:$0xff] }
 0x301   : > { %v4772_v37 = vpack.c.bf16 %v2786_v13, %v2783_v26  ;;  %v2830_v26 = vld [vmem:[#allocation8 + $0xcf0] sm:$0xff]  ;;  %v2833_v13 = vld [vmem:[#allocation8 + $0xd08] sm:$0xff] }
 0x302   : > { %4743 = vmatpush1.bf16.msra.mxu1 %v4742_v38  ;;  %v2782_v38 = vld [vmem:[#allocation8 + $0xb70] sm:$0xff] }
 0x303   : > { %3097 = vmatmul.mubr.f32.vlgmr.msra.gmra.mrb[20].mxu0 %v5645_v60  ;;  %4745 = vmatprep.subr.bf16.mxu1 %v4744_v22  ;;  %v2792_v22 = vld [vmem:[#allocation8 + $0xbc0] sm:$0xff]  ;;  %v4774_v10 = vpack.c.bf16 %v2785_v39, %v2782_v38  ;;  %v4806_v38 = vpack.c.bf16 %v2833_v13, %v2830_v26 }
 0x304   : > { %3101 = vmatprep.mubr.f32.mxu0 %v5651_v25  ;;  %v4776_v9 = vpack.c.bf16 %v2792_v22, %v2789_v40  ;;  %v2836_v40 = vld [vmem:[#allocation8 + $0xd20] sm:$0xff]  ;;  %v2839_v22 = vld [vmem:[#allocation8 + $0xd38] sm:$0xff] }
 0x306   : > { %4747 = vmatpush1.bf16.msra.mxu1 %v4746_v44  ;;  %v4778_v44 = vpack.c.bf16 %v2791_v41, %v2788_v7  ;;  %v4810_v7 = vpack.c.bf16 %v2839_v22, %v2836_v40 }
 0x307   : > { %3102 = vmatmul.mubr.f32.gmra.mrb[22].mxu0 %v5655_v48  ;;  %4749 = vmatprep.subr.bf16.mxu1 %v4748_v12  ;;  %v2794_v12 = vld [vmem:[#allocation8 + $0xbd0] sm:$0xff] }
 0x308   : > { %v4782_v47 = vpack.c.bf16 %v2797_v46, %v2794_v12  ;;  %v2696_v12 = vld [vmem:[#allocation2 + $0x10] sm:$0xfc]  ;;  %v4814_v46 = vpack.c.bf16 %v2845_v43, %v2842_v54 }
 0x30a   : > { %4751 = vmatpush1.bf16.msra.mxu1 %v4750_v45  ;;  %v4784_v45 = vpack.c.bf16 %v2804_v58, %v2801_v34  ;;  %v2863_v58 = vrot.slane %v2696_v12, 2 }
 0x30b   : > { %4753 = vmatprep.subr.bf16.mxu1 %v4752_v53  ;;  %v2800_v53 = vld [vmem:[#allocation8 + $0xc00] sm:$0xff] }
 0x30c   : > { %v4786_v56 = vpack.c.bf16 %v2803_v50, %v2800_v53  ;;  %v2811_v53 = vld [vmem:[#allocation8 + $0xc58] sm:$0xff]  ;;  %v2702_v50 = vld [vmem:[#allocation2 + $0x40] sm:$0x3] }
 0x30e   : > { %4755 = vmatpush1.bf16.msra.mxu1 %v4754_v57  ;;  %v4788_v57 = vpack.c.bf16 %v2810_v55, %v2807_v4 }
 0x30f   : > { %4757 = vmatprep.subr.bf16.mxu1 %v4756_v61  ;;  %v2806_v61 = vld [vmem:[#allocation8 + $0xc30] sm:$0xff] }
 0x310   : > { %v4790_v63 = vpack.c.bf16 %v2809_v1, %v2806_v61  ;;  %v2870_v61 = vrot.slane %v2702_v50, 2 }
 0x312   : > { %4759 = vmatpush1.bf16.msra.mxu1 %v4758_v42  ;;  %v4792_v42 = vpack.c.bf16 %v2816_v8, %v2813_v5  ;;  %v2823_v8 = vld [vmem:[#allocation8 + $0xcb8] sm:$0xff] }
 0x313   : > { %4761 = vmatprep.subr.bf16.mxu1 %v4760_v11  ;;  %v2812_v11 = vld [vmem:[#allocation8 + $0xc60] sm:$0xff] }
 0x314   : > { %v4794_v15 = vpack.c.bf16 %v2815_v16, %v2812_v11  ;;  %v2829_v11 = vld [vmem:[#allocation8 + $0xce8] sm:$0xff] }
 0x316   : > { %4763 = vmatpush1.bf16.msra.mxu1 %v4762_v17  ;;  %v4796_v17 = vpack.c.bf16 %v2822_v14, %v2819_v6  ;;  %v2832_v6 = vld [vmem:[#allocation8 + $0xd00] sm:$0xff]  ;;  %v2835_v14 = vld [vmem:[#allocation8 + $0xd18] sm:$0xff] }
 0x317   : > { %4765 = vmatprep.subr.bf16.mxu1 %v4764_v19  ;;  %v2818_v19 = vld [vmem:[#allocation8 + $0xc90] sm:$0xff] }
 0x31a   : > { %4767 = vmatpush1.bf16.msra.mxu1 %v4766_v27  ;;  %v2827_v27 = vld [vmem:[#allocation8 + $0xcd8] sm:$0xff] }
 0x31b   : > { %4769 = vmatprep.subr.bf16.mxu1 %v4768_v32  ;;  %v2831_v32 = vld [vmem:[#allocation8 + $0xcf8] sm:$0xff] }
 0x31c   : > { %v4804_v36 = vpack.c.bf16 %v2834_v35, %v2831_v32 }
 0x31e   : > { %4771 = vmatpush1.bf16.msra.mxu1 %v4770_v29  ;;  %v2837_v29 = vld [vmem:[#allocation8 + $0xd28] sm:$0xff] }
 0x31f   : > { %4773 = vmatprep.subr.bf16.mxu1 %v4772_v37  ;;  %v2840_v37 = vld [vmem:[#allocation8 + $0xd40] sm:$0xff] }
 0x320   : > { %v4808_v39 = vpack.c.bf16 %v2840_v37, %v2837_v29 }
 0x322   : > { %4775 = vmatpush1.bf16.msra.mxu1 %v4774_v10  ;;  %v2843_v10 = vld [vmem:[#allocation8 + $0xd58] sm:$0xff] }
 0x323   : > { %4777 = vmatprep.subr.bf16.mxu1 %v4776_v9  ;;  %v2846_v9 = vld [vmem:[#allocation8 + $0xd70] sm:$0xff] }
 0x324   : > { %v4812_v41 = vpack.c.bf16 %v2846_v9, %v2843_v10 }
 0x326   : > { %4779 = vmatpush1.bf16.msra.mxu1 %v4778_v44  ;;  %v2802_v44 = vld [vmem:[#allocation8 + $0xc10] sm:$0xff] }
 0x327   : > { %4781 = vmatprep.subr.bf16.mxu1 %v4780_v21  ;;  %v2805_v21 = vld [vmem:[#allocation8 + $0xc28] sm:$0xff] }
 0x328   : > { %v4848_v34 = vpack.c.bf16 %v2805_v21, %v2802_v44 }
 0x32a   : > { %4783 = vmatpush1.bf16.msra.mxu1 %v4782_v47  ;;  %v2864_v47 = vrot.slane %v5632_v0, 2  ;;  %v2820_v0 = vld [vmem:[#allocation8 + $0xca0] sm:$0xff] }
 0x32b   : > { %4785 = vmatprep.subr.bf16.mxu1 %v4784_v45  ;;  %v2808_v45 = vld [vmem:[#allocation8 + $0xc40] sm:$0xff] }
 0x32c   : > { %v4852_v4 = vpack.c.bf16 %v2811_v53, %v2808_v45  ;;  %v2865_v55 = vsel %vm1375_vm1, %v2863_v58, %v2864_v47  ;;  %v2871_v5 = vsel %vm1375_vm1, %v2864_v47, %v2870_v61 }
 0x32d   : > { %2943 = vmatmul.mubr.f32.vlgmr.msra.gmra.mrb[10].mxu1 %v5645_v60  ;;  %v2821_v60 = vld [vmem:[#allocation8 + $0xca8] sm:$0xff] }
 0x32e   : > { %2948 = vmatprep.mubr.f32.mxu1 %v5651_v25  ;;  %4787 = vmatpush1.bf16.msra.mxu1 %v4786_v56  ;;  %v2828_v25 = vld [vmem:[#allocation8 + $0xce0] sm:$0xff]  ;;  %v4798_v23 = vpack.c.bf16 %v2821_v60, %v2818_v19  ;;  %v2814_v56 = vld [vmem:[#allocation8 + $0xc70] sm:$0xff] }
 0x32f   : > { %4789 = vmatprep.subr.bf16.mxu1 %v4788_v57  ;;  %v4800_v51 = vpack.c.bf16 %v2828_v25, %v2825_v20  ;;  %v2817_v57 = vld [vmem:[#allocation8 + $0xc88] sm:$0xff]  ;;  %v2844_v60 = vld [vmem:[#allocation8 + $0xd60] sm:$0xff]  ;;  %v2847_v20 = vld [vmem:[#allocation8 + $0xd78] sm:$0xff] }
 0x330   : > { %v4856_v1 = vpack.c.bf16 %v2817_v57, %v2814_v56  ;;  %v4876_v25 = vpack.c.bf16 %v2847_v20, %v2844_v60 }
 0x331   : > { %2949 = vmatmul.mubr.f32.gmra.mrb[12].mxu1 %v5655_v48  ;;  %v4802_v48 = vpack.c.bf16 %v2827_v27, %v2824_v24 }
 0x332   : > { %4791 = vmatpush1.bf16.msra.mxu1 %v4790_v63  ;;  %3019 = vmatprep.mubr.f32.mxu1 %v5224_v49  ;;  %v4860_v63 = vpack.c.bf16 %v2823_v8, %v2820_v0 }
 0x333   : > { %4793 = vmatprep.subr.bf16.mxu1 %v4792_v42  ;;  %v2826_v42 = vld [vmem:[#allocation8 + $0xcd0] sm:$0xff] }
 0x334   : > { %v4864_v16 = vpack.c.bf16 %v2829_v11, %v2826_v42 }
 0x336   : > { %4795 = vmatpush1.bf16.msra.mxu1 %v4794_v15  ;;  %v2838_v15 = vld [vmem:[#allocation8 + $0xd30] sm:$0xff] }
 0x337   : > { %4797 = vmatprep.subr.bf16.mxu1 %v4796_v17  ;;  %v2841_v17 = vld [vmem:[#allocation8 + $0xd48] sm:$0xff] }
 0x338   : > { %v4872_v19 = vpack.c.bf16 %v2841_v17, %v2838_v15 }
 0x33a   : > { %4799 = vmatpush1.bf16.msra.mxu1 %v4798_v23 }
 0x33b   : > { %4801 = vmatprep.subr.bf16.mxu1 %v4800_v51 }
 0x33e   : > { %4803 = vmatpush1.bf16.msra.mxu1 %v4802_v48 }
 0x33f   : > { %4805 = vmatprep.subr.bf16.mxu1 %v4804_v36 }
 0x342   : > { %4807 = vmatpush1.bf16.msra.mxu1 %v4806_v38 }
 0x343   : > { %4809 = vmatprep.subr.bf16.mxu1 %v4808_v39 }
 0x346   : > { %4811 = vmatpush1.bf16.msra.mxu1 %v4810_v7 }
 0x347   : > { %4813 = vmatprep.subr.bf16.mxu1 %v4812_v41 }
 0x34a   : > { %4815 = vmatpush1.bf16.msra.mxu1 %v4814_v46 }
 0x34b   : > { %4849 = vmatprep.subr.bf16.mxu1 %v4848_v34 }
 0x34d   : > { %3020 = vmatmul.mubr.f32.vlgmr.msra.gmra.mrb[10].mxu1 %v2865_v55 }
 0x34e   : > { %4851 = vmatpush3.bf16.msra.mxu1 %v4848_v34  ;;  %3025 = vmatprep.mubr.f32.mxu1 %v5224_v49  ;;  %v4868_v49 = vpack.c.bf16 %v2835_v14, %v2832_v6  ;;  %v3188_v34 = vld [vmem:[#allocation9] sm:$0x7] }
 0x34f   : > { %4853 = vmatprep.subr.bf16.mxu1 %v4852_v4  ;;  %v3193_v58 = vrot.slane %v3188_v34, %v1711_v28  ;;  %v3197_v45 = vrot.slane %v3188_v34, %v1715_v59  ;;  %v3201_v15 = vrot.slane %v3188_v34, %v1719_v2 }
 0x351   : > { %3026 = vmatmul.mubr.f32.gmra.mrb[12].mxu1 %v2871_v5 }
 0x352   : > { %4855 = vmatpush3.bf16.msra.mxu1 %v4852_v4  ;;  %3917 = vmatprep.mubr.f32.mxu1 %v2865_v55 }
 0x353   : > { %4857 = vmatprep.subr.bf16.mxu1 %v4856_v1 }
 0x356   : > { %4859 = vmatpush3.bf16.msra.mxu1 %v4856_v1 }
 0x357   : > { %4861 = vmatprep.subr.bf16.mxu1 %v4860_v63 }
 0x35a   : > { %4863 = vmatpush3.bf16.msra.mxu1 %v4860_v63 }
 0x35b   : > { %4865 = vmatprep.subr.bf16.mxu1 %v4864_v16 }
 0x35e   : > { %4867 = vmatpush3.bf16.msra.mxu1 %v4864_v16 }
 0x35f   : > { %4869 = vmatprep.subr.bf16.mxu1 %v4868_v49 }
 0x362   : > { %4871 = vmatpush3.bf16.msra.mxu1 %v4868_v49 }
 0x363   : > { %4873 = vmatprep.subr.bf16.mxu1 %v4872_v19 }
 0x366   : > { %4875 = vmatpush3.bf16.msra.mxu1 %v4872_v19 }
 0x367   : > { %4877 = vmatprep.subr.bf16.mxu1 %v4876_v25 }
 0x36a   : > { %4879 = vmatpush3.bf16.msra.mxu1 %v4876_v25 }
 0x36d   : > { %3918 = vmatmul.mubr.f32.vlgmr.msra.gmra.mrb[14].mxu1 %v2871_v5 }
 0x376   : > { %v2152_v23 = vpop.f32.mrb[8].mxu0 }
 0x377   : > { %v2154_v51 = vpop.f32.mrb[9].mxu0 }
 0x37a   : > { %v2158_v24 = vpop.f32.mrb[10].mxu0 }
 0x37b   : > { %v2160_v27 = vpop.f32.mrb[11].mxu0 }
 0x396   : > { %v3574_v32 = vpop.f32.mrb[12].mxu0 }
 0x397   : > { %v3575_v35 = vpop.f32.mrb[13].mxu0 }
 0x398   : > { %v3576_v48 = vadd.f32 %v3575_v35, %v3574_v32 }
 0x39a   : > { %v3577_v36 = vpop.f32.mrb[14].mxu0 }
 0x39b   : > { %v3578_v26 = vpop.f32.mrb[15].mxu0 }
 0x39c   : > { %v3579_v13 = vadd.f32 %v3578_v26, %v3577_v36 }
 0x3b6   : > { %v3630_v29 = vpop.f32.mrb[16].mxu0 }
 0x3b7   : > { %v3631_v37 = vpop.f32.mrb[17].mxu0 }
 0x3b8   : > { %v3632_v38 = vadd.f32 %v3631_v37, %v3630_v29 }
 0x3ba   : > { %v4893_v39 = vadd.f32 %v3632_v38, %v3576_v48  ;;  %v3633_v40 = vpop.f32.mrb[18].mxu0 }
 0x3bb   : > { %v3634_v22 = vpop.f32.mrb[19].mxu0 }
 0x3bc   : > { %v3635_v10 = vadd.f32 %v3634_v22, %v3633_v40 }
 0x3be   : > { %v4890_v9 = vadd.f32 %v3635_v10, %v3579_v13 }
 0x3d6   : > { %v3686_v7 = vpop.f32.mrb[20].mxu0 }
 0x3d7   : > { %v3687_v41 = vpop.f32.mrb[21].mxu0 }
 0x3d8   : > { %v3688_v54 = vadd.f32 %v3687_v41, %v3686_v7 }
 0x3da   : > { %v3689_v43 = vpop.f32.mrb[22].mxu0  ;;  %v4894_v44 = vadd.f32 %v4893_v39, %v3688_v54 }
 0x3db   : > { %v3690_v21 = vpop.f32.mrb[23].mxu0 }
 0x3dc   : > { %v3691_v12 = vadd.f32 %v3690_v21, %v3689_v43 }
 0x3de   : > { %v4891_v46 = vadd.f32 %v4890_v9, %v3691_v12 }
 0x420   : > { %v3021_v47 = vpop.f32.mrb[10].mxu1 }
 0x421   : > { %v4886_v53 = vadd.f32 %v3021_v47, %v2152_v23  ;;  %v3023_v50 = vpop.f32.mrb[11].mxu1 }
 0x422   : > { %v4887_v4 = vadd.f32 %v3023_v50, %v2154_v51 }
 0x423   : > { %v3205_v55 = vadd.f32 %v4886_v53, %v3193_v58 }
 0x424   : > { %v3206_v56 = vadd.f32 %v4887_v4, %v3197_v45  ;;  %v3027_v57 = vpop.f32.mrb[12].mxu1 }
 0x425   : > { %v3211_v61 = vadd.f32 %v3205_v55, %v5470_v18  ;;  %v4888_v1 = vadd.f32 %v3027_v57, %v2158_v24  ;;  %v3029_v5 = vpop.f32.mrb[13].mxu1 }
 0x426   : > { %v3212_v0 = vadd.f32 %v3206_v56, %v5459_v3  ;;  %v4889_v28 = vadd.f32 %v3029_v5, %v2160_v27 }
 0x427   : > { %vm3217_vm10 = vcmp.ge.f32.partialorder %v3211_v61, 0.0  ;;  %v3223_v8 = vmul.f32 0.2, %v3211_v61  ;;  %v3208_v63 = vadd.f32 %v4888_v1, %v3193_v58 }
 0x428   : > { %vm3218_vm11 = vcmp.ge.f32.partialorder %v3212_v0, 0.0  ;;  %v3224_v59 = vmul.f32 0.2, %v3212_v0  ;;  %v3209_v42 = vadd.f32 %v4889_v28, %v3197_v45 }
 0x429   : > { %v3229_v11 = vsel %vm3217_vm10, %v3211_v61, %v3223_v8  ;;  %v3214_v16 = vadd.f32 %v3208_v63, %v5483_v33 }
 0x42a   : > { %3235 = vst [vmem:[%s5676_s17] sm:$0xff] %v3229_v11  ;;  %v3230_v18 = vsel %vm3218_vm11, %v3212_v0, %v3224_v59  ;;  %v3215_v3 = vadd.f32 %v3209_v42, %v5479_v31 }
 0x42b   : > { %3236 = vst [vmem:[%s5676_s17 + $0x8] sm:$0xff] %v3230_v18  ;;  %vm3220_vm12 = vcmp.ge.f32.partialorder %v3214_v16, 0.0  ;;  %v3226_v6 = vmul.f32 0.2, %v3214_v16 }
 0x42c   : > { %vm3221_vm13 = vcmp.ge.f32.partialorder %v3215_v3, 0.0  ;;  %v3227_v14 = vmul.f32 0.2, %v3215_v3 }
 0x42d   : > { %v3232_v49 = vsel %vm3220_vm12, %v3214_v16, %v3226_v6 }
 0x42e   : > { %3238 = vst [vmem:[%s5676_s17 + $0x18] sm:$0xff] %v3232_v49  ;;  %v3233_v33 = vsel %vm3221_vm13, %v3215_v3, %v3227_v14 }
 0x42f   : > { %3239 = vst [vmem:[%s5676_s17 + $0x20] sm:$0xff] %v3233_v33 }
 0x440   : > { %v3919_v17 = vpop.f32.mrb[14].mxu1 }
 0x441   : > { %v4892_v19 = vadd.f32 %v4891_v46, %v3919_v17  ;;  %v3173_v60 = vpop.f32.mrb[15].mxu1 }
 0x442   : > { %v4895_v20 = vadd.f32 %v4894_v44, %v3173_v60 }
 0x443   : > { %v3210_v31 = vadd.f32 %v4892_v19, %v3201_v15 }
 0x444   : > { %v3207_v25 = vadd.f32 %v4895_v20, %v3201_v15 }
 0x445   : > { %v3216_v23 = vadd.f32 %v3210_v31, %v5444_v30 }
 0x446   : > { %v3213_v51 = vadd.f32 %v3207_v25, %v5439_v62 }
 0x447   : > { %vm3222_vm14 = vcmp.ge.f32.partialorder %v3216_v23, 0.0  ;;  %v3228_v24 = vmul.f32 0.2, %v3216_v23 }
 0x448   : > { %vm3219_vm15 = vcmp.ge.f32.partialorder %v3213_v51, 0.0  ;;  %v3225_v52 = vmul.f32 0.2, %v3213_v51 }
 0x449   : > { %v3234_v2 = vsel %vm3222_vm14, %v3216_v23, %v3228_v24 }
 0x44a   : > { %3240 = vst [vmem:[%s5676_s17 + $0x28] sm:$0xff] %v3234_v2  ;;  %v3231_v30 = vsel %vm3219_vm15, %v3213_v51, %v3225_v52 }
 0x44b   : > { %3237 = vst [vmem:[%s5676_s17 + $0x10] sm:$0xff] %v3231_v30 }
 0x44c   : > { %5155 = shalt.err (!%p5152_p1)
}
 0x44d   : > { %s5156_s1 = scalar_lea.hbm %s5692_s13, 768  ;;  %s5160_s23 = scalar_lea.hbm %s5746_s5, 1536 }
 0x44e   : > { %p5157_p0 = scmp.ne.s32.totalorder %s5692_s13, %s5156_s1  ;;  %p5161_p9 = scmp.lt.u32.totalorder %s5692_s13, %s5746_s5 }
 0x44f   : > { %p5162_p12 = scmp.lt.u32.totalorder %s5160_s23, %s5156_s1  ;;  %p5164_p2 = scmp.lt.u32.totalorder %s5156_s1, %s5692_s13 }
 0x450   : > { %p5158_p6 = pnand %p5157_p0, %p5764_p3 }
 0x451   : > { %p5163_p10 = por %p5162_p12, %p5161_p9 }
 0x452   : > { %p5159_p5 = pneg %p5158_p6 }
 0x453   : > { %p5165_p4 = por %p5164_p2, %p5163_p10 }
 0x455   : > { %p5166_p7 = pnand %p5165_p4, %p5159_p5 }
 0x457   : > { %5169 = shalt.err (!%p5166_p7)
}
 0x458   : > { %s5226_s16 = smov 384   ;;  %s5227_s17 = smov 24  }
 0x459   : > { %4959 = dma.vmem_to_hbm [thread:$0]  (%p5764_p3), %s5694_s26, 768, %s5692_s13, %s5700_s22, %s5226_s16, %s5226_s16, %s5227_s17  }
 0x45a PF: > { %p4986_p8 = scmp.ge.s32.totalorder %s5216_s21, 2  ;;  %s3270_s25 = sand.u32 1, %s5204_s18  }
 0x45b   : > { %p5765_p11 = scmp.ne.s32.totalorder %s5752_s29, 0  ;;  %s3271_s6 = scalar_lea.sflag [#allocation5], %s3270_s25 }
 0x45d   : > { %p4975_p13 = pnand %p4986_p8, %p5765_p11 }
 0x45f   : > { %5199 = dma.done.wait (!%p4975_p13), %s3271_s6, 768  }
 0x460   : > { %5201 = vsyncadd (!%p4975_p13), %s3271_s6, 4294966528  ;;  %p18_p1 = scmp.ge.s32.totalorder %s5283_s24, 4   ;;  %s5766_s18 = smov %s5208_s19 }
 0x461   : > { %s5767_s19 = smov %s5212_s20  ;;  %s5768_s20 = smov %s5294_s27 }
 0x462   : > { %s5769_s21 = smov %s5283_s24  ;;  %20 = sbr.rel (!%p18_p1) target bundleno = 8 (0x8), region = 97 }
 0x469   :  { %3276 = vsyncpa [#allocation4], 1 }
 0x46a   :  { %3278 = vsyncpa [#allocation4 + $0x1], 1 }
 0x46b   :  { %3279 = vsyncpa [#allocation7], 1 }
 0x46c   :  { %3280 = vsyncpa [#allocation10], 1 }
 0x46d   :  { %3281 = vsyncpa [#allocation5], 1 }
 0x46e   :  { %3283 = vsyncpa [#allocation5 + $0x1], 1 }

</bundles_post_ra>
